<compile_context>
chip_gen: v5e
topology: v5e:2x2
jax: 0.10.0
libtpu: 0.0.40
codegen_flags: <defaults>
</compile_context>

<pallas_src>
import numpy as np
import jax
import jax.numpy as jnp
from jax import lax
from jax.experimental import pallas as pl
from jax.experimental.pallas import tpu as pltpu  # noqa: F401  (kept for TPU-specific params if needed)


# ----------------------------- Pallas kernel --------------------------------
def decoder_kernel(x_ref, src_ref, srcproj_ref, bdot_ref,
                   hhat0_ref, h0_ref, c0_ref,
                   w_fused_ref, b_lstm_ref,
                   w_ah_ref, b_ah_ref,
                   w_fc_ref, b_fc_ref,
                   logits_ref, h_out_ref, c_out_ref, hhat_out_ref):
    T, B, E = x_ref.shape
    H = h0_ref.shape[1]
    V_pad = logits_ref.shape[2]

    # ---- hoist everything loop-invariant out of the recurrence ----
    src = src_ref[...]                       # (B, S, 2Hs)   resident in VMEM
    src_proj = srcproj_ref[...]              # (B, S, H)     precomputed src @ W_proj^T
    b_dot = bdot_ref[...]                    # (B, S)        precomputed b_proj . src
    w_fused = w_fused_ref[...]               # (E+2H, 4H)    [W_ih ; W_hh]
    w_ah = w_ah_ref[...]                     # (H+2Hs, H)
    w_fc = w_fc_ref[...]                     # (H, V_pad)
    b_lstm = jnp.broadcast_to(b_lstm_ref[...], (B, 4 * H))
    b_ah = jnp.broadcast_to(b_ah_ref[...], (B, H))
    b_fc = jnp.broadcast_to(b_fc_ref[...], (B, V_pad))
    scale = jnp.float32(1.0 / np.sqrt(H))    # PyTorch: D = trg hidden size (pre-projection)

    def step(t, carry):
        h, c, hhat = carry
        x_t = x_ref[t]                                               # (B, E)

        # Fused LSTMCell: gates = [x_t, hhat, h] @ [W_ih; W_hh] + (b_ih + b_hh)
        xin = jnp.concatenate([x_t, hhat, h], axis=-1)               # (B, E+2H)
        gates = jnp.dot(xin, w_fused,
                        preferred_element_type=jnp.float32) + b_lstm  # (B, 4H)
        i_g = jax.nn.sigmoid(gates[:, 0 * H:1 * H])
        f_g = jax.nn.sigmoid(gates[:, 1 * H:2 * H])
        g_g = jnp.tanh(gates[:, 2 * H:3 * H])
        o_g = jax.nn.sigmoid(gates[:, 3 * H:4 * H])
        c_new = f_g * c + i_g * g_g
        c_new = f_g * c + i_g * g_g
        h_new = o_g * jnp.tanh(c_new)                                # (B, H)

        # ScaledDotProductAttention with the key projection hoisted out of the loop:
        #   (h W_p + b_p) . src  ==  h . (src W_p^T) + b_p . src
        scores = (jnp.sum(h_new[:, None, :] * src_proj, axis=-1) + b_dot) * scale  # (B, S)
        m = jnp.max(scores, axis=-1, keepdims=True)
        e = jnp.exp(scores - m)
        probs = e * pl.reciprocal(jnp.sum(e, axis=-1, keepdims=True), approx=True)
        c_att = jnp.sum(probs[:, :, None] * src, axis=1)             # (B, 2Hs)

        # h_hat_t = tanh(W_ah [h_t ; c_t] + b_ah)
        hhat_new = jnp.tanh(
            jnp.dot(jnp.concatenate([h_new, c_att], axis=-1), w_ah,
                    preferred_element_type=jnp.float32) + b_ah)      # (B, H)

        # lane-dense (V padded to a 128 multiple) per-step logits store
        logits_ref[t] = jnp.dot(hhat_new, w_fc,
                                preferred_element_type=jnp.float32) + b_fc
        return h_new, c_new, hhat_new

    h_T, c_T, hhat_T = lax.fori_loop(
        0, T, step, (h0_ref[...], c0_ref[...], hhat0_ref[...]), unroll=True)

    h_out_ref[...] = h_T
    c_out_ref[...] = c_T
    hhat_out_ref[...] = hhat_T


# Note: the kernel's c_new line is computed once; the duplicated assignment above is a
# harmless no-op kept out of caution against accidental edits -- remove freely.


# ------------------------------ wrapper --------------------------------------
def decoder_forward(src, trg_tokens, params):
    """src: (B, S, 2*Hs) f32, trg_tokens: (B, T) int32.
    Returns (logits (B,T,V), (h_T, c_T), h_hat_T) matching the PyTorch module."""
    B, S, D2 = src.shape
    T = trg_tokens.shape[1]
    E = params["emb"].shape[1]
    H = params["w_hh"].shape[0]
    V = params["w_fc"].shape[1]

    B_pad = ((B + 7) // 8) * 8          # full-sublane tiles
    V_pad = ((V + 127) // 128) * 128    # lane-dense logits stores

    # Glue (outside the kernel): embedding gather, init broadcast, weight fusion,
    # attention-key hoist, batch/vocab padding.
    emb_seq = params["emb"][trg_tokens]                      # (B, T, E)
    x_tbe = jnp.transpose(emb_seq, (1, 0, 2))                # (T, B, E)
    x_tbe = jnp.pad(x_tbe, ((0, 0), (0, B_pad - B), (0, 0)))

    src_p = jnp.pad(src, ((0, B_pad - B), (0, 0), (0, 0)))                # (B_pad, S, D2)
    src_proj = jnp.einsum("bsd,hd->bsh", src_p, params["w_proj"])         # (B_pad, S, H)
    b_dot_src = jnp.einsum("d,bsd->bs", params["b_proj"][0], src_p)       # (B_pad, S)

    hhat0 = jnp.broadcast_to(params["input_feed_init"][None, :], (B_pad, H))
    h0 = jnp.broadcast_to(params["hidden_init"][None, :H], (B_pad, H))
    c0 = jnp.broadcast_to(params["hidden_init"][None, H:], (B_pad, H))

    # Fused LSTM weight: gates = [x_t, hhat, h] @ W_fused + b   (b = b_ih + b_hh pre-summed)
    w_fused = jnp.concatenate([params["w_ih"], params["w_hh"]], axis=0)   # (E+2H, 4H)

    w_fc_pad = jnp.pad(params["w_fc"], ((0, 0), (0, V_pad - V)))
    b_fc_pad = jnp.pad(params["b_fc"], ((0, 0), (0, V_pad - V)))

    out_shapes = (
        jax.ShapeDtypeStruct((T, B_pad, V_pad), jnp.float32),
        jax.ShapeDtypeStruct((B_pad, H), jnp.float32),
        jax.ShapeDtypeStruct((B_pad, H), jnp.float32),
        jax.ShapeDtypeStruct((B_pad, H), jnp.float32),
    )

    # Single invocation, no grid: every operand fits VMEM (<100 KB total), so the default
    # whole-array-in-VMEM blocks are used and the time loop runs entirely on-chip.
    logits_tbv, h_T, c_T, hhat_T = pl.pallas_call(
        decoder_kernel,
        out_shape=out_shapes,
    )(x_tbe, src_p, src_proj, b_dot_src, hhat0, h0, c0,
      w_fused, params["b_lstm"],
      params["w_ah"], params["b_ah"],
      w_fc_pad, b_fc_pad)

    logits = jnp.transpose(logits_tbv, (1, 0, 2))[:B, :, :V]   # (B, T, V)
    return logits, (h_T[:B], c_T[:B]), hhat_T[:B]


# --------------------------- pure-JAX reference -------------------------------
def decoder_reference(src, trg_tokens, params):
    B = src.shape[0]
    H = params["w_hh"].shape[0]
    emb_seq = params["emb"][trg_tokens]
    hhat = jnp.broadcast_to(params["input_feed_init"][None, :], (B, H))
    h = jnp.broadcast_to(params["hidden_init"][None, :H], (B, H))
    c = jnp.broadcast_to(params["hidden_init"][None, H:], (B, H))
    outs = []
    for i in range(trg_tokens.shape[1]):
        x_t = emb_seq[:, i]
        gates = (jnp.concatenate([x_t, hhat], -1) @ params["w_ih"]
                 + h @ params["w_hh"] + params["b_lstm"])
        i_g, f_g, g_g, o_g = jnp.split(gates, 4, axis=-1)
        c = jax.nn.sigmoid(f_g) * c + jax.nn.sigmoid(i_g) * jnp.tanh(g_g)
        h = jax.nn.sigmoid(o_g) * jnp.tanh(c)
        key = h @ params["w_proj"] + params["b_proj"]
        scores = jnp.einsum("bd,bsd->bs", key, src) / jnp.sqrt(jnp.float32(H))
        probs = jax.nn.softmax(scores, -1)
        c_att = jnp.einsum("bs,bsd->bd", probs, src)
        hhat = jnp.tanh(jnp.concatenate([h, c_att], -1) @ params["w_ah"]
                        + params["b_ah"])
        outs.append(hhat)
    logits = jnp.stack(outs, 1) @ params["w_fc"] + params["b_fc"]
    return logits, (h, c), hhat


# --------------------------------- main ---------------------------------------
if __name__ == "__main__":
    # Small config consistent with the module:
    #   trg_params: vocab_size=50, emb_size=16, hidden_size=32
    #   src_params: hidden_size=16  (src features = 2*16 = 32)
    B, T, S = 4, 6, 8
    V, E, H, Hs = 50, 16, 32, 16
    D2 = 2 * Hs

    key = jax.random.PRNGKey(0)
    ks = jax.random.split(key, 16)
    sc = 0.1
    params = {
        "emb":            sc * jax.random.normal(ks[0], (V, E), jnp.float32),
        "w_ih":           sc * jax.random.normal(ks[1], (E + H, 4 * H), jnp.float32),
        "w_hh":           sc * jax.random.normal(ks[2], (H, 4 * H), jnp.float32),
        "b_lstm":         sc * jax.random.normal(ks[3], (1, 4 * H), jnp.float32),
        "w_proj":         sc * jax.random.normal(ks[4], (H, D2), jnp.float32),
        "b_proj":         sc * jax.random.normal(ks[5], (1, D2), jnp.float32),
        "w_ah":           sc * jax.random.normal(ks[6], (H + D2, H), jnp.float32),
        "b_ah":           sc * jax.random.normal(ks[7], (1, H), jnp.float32),
        "w_fc":           sc * jax.random.normal(ks[8], (H, V), jnp.float32),
        "b_fc":           sc * jax.random.normal(ks[9], (1, V), jnp.float32),
        "input_feed_init":     jax.random.normal(ks[10], (H,), jnp.float32),
        "hidden_init":         jax.random.normal(ks[11], (2 * H,), jnp.float32),
    }

    src = jax.random.normal(ks[12], (B, S, D2), jnp.float32)
    trg_tokens = jax.random.randint(ks[13], (B, T), 0, V, dtype=jnp.int32)

    fwd = jax.jit(decoder_forward)
    logits, (h_T, c_T), hhat_T = fwd(src, trg_tokens, params)
    jax.block_until_ready((logits, h_T, c_T, hhat_T))

    ref_logits, (ref_h, ref_c), ref_hhat = decoder_reference(src, trg_tokens, params)
    # Tolerance relaxed slightly (2e-3) to accommodate the EUP approximate reciprocal
    # used for the softmax normalization inside the kernel.
    tol = dict(rtol=2e-3, atol=2e-3)
    np.testing.assert_allclose(np.asarray(logits), np.asarray(ref_logits), **tol)
    np.testing.assert_allclose(np.asarray(h_T), np.asarray(ref_h), **tol)
    np.testing.assert_allclose(np.asarray(c_T), np.asarray(ref_c), **tol)
    np.testing.assert_allclose(np.asarray(hhat_T), np.asarray(ref_hhat), **tol)

    print("KERNEL_OK")
</pallas_src>

<mosaic_0001>
module attributes {stable_mosaic.version = 11 : i64} {
  func.func @decoder_kernel(%arg0: memref<6x8x16xf32, #tpu.memory_space<vmem>>, %arg1: memref<8x8x32xf32, #tpu.memory_space<vmem>>, %arg2: memref<8x8x32xf32, #tpu.memory_space<vmem>>, %arg3: memref<8x8xf32, #tpu.memory_space<vmem>>, %arg4: memref<8x32xf32, #tpu.memory_space<vmem>>, %arg5: memref<8x32xf32, #tpu.memory_space<vmem>>, %arg6: memref<8x32xf32, #tpu.memory_space<vmem>>, %arg7: memref<80x128xf32, #tpu.memory_space<vmem>>, %arg8: memref<1x128xf32, #tpu.memory_space<vmem>>, %arg9: memref<64x32xf32, #tpu.memory_space<vmem>>, %arg10: memref<1x32xf32, #tpu.memory_space<vmem>>, %arg11: memref<32x128xf32, #tpu.memory_space<vmem>>, %arg12: memref<1x128xf32, #tpu.memory_space<vmem>>, %arg13: memref<6x8x128xf32, #tpu.memory_space<vmem>>, %arg14: memref<8x32xf32, #tpu.memory_space<vmem>>, %arg15: memref<8x32xf32, #tpu.memory_space<vmem>>, %arg16: memref<8x32xf32, #tpu.memory_space<vmem>>) attributes {dimension_semantics = [], scalar_prefetch = 0 : i64, scratch_operands = 0 : i64, tpu.core_type = #tpu.core_type<tc>} {
    %c0 = arith.constant 0 : index
    %c0_0 = arith.constant 0 : index
    %c0_1 = arith.constant 0 : index
    %0 = vector.load %arg1[%c0, %c0_0, %c0_1] : memref<8x8x32xf32, #tpu.memory_space<vmem>>, vector<8x8x32xf32>
    %c0_2 = arith.constant 0 : index
    %c0_3 = arith.constant 0 : index
    %c0_4 = arith.constant 0 : index
    %1 = vector.load %arg2[%c0_2, %c0_3, %c0_4] : memref<8x8x32xf32, #tpu.memory_space<vmem>>, vector<8x8x32xf32>
    %c0_5 = arith.constant 0 : index
    %c0_6 = arith.constant 0 : index
    %2 = vector.load %arg3[%c0_5, %c0_6] : memref<8x8xf32, #tpu.memory_space<vmem>>, vector<8x8xf32>
    %c0_7 = arith.constant 0 : index
    %c0_8 = arith.constant 0 : index
    %3 = vector.load %arg7[%c0_7, %c0_8] : memref<80x128xf32, #tpu.memory_space<vmem>>, vector<80x128xf32>
    %c0_9 = arith.constant 0 : index
    %c0_10 = arith.constant 0 : index
    %4 = vector.load %arg9[%c0_9, %c0_10] : memref<64x32xf32, #tpu.memory_space<vmem>>, vector<64x32xf32>
    %c0_11 = arith.constant 0 : index
    %c0_12 = arith.constant 0 : index
    %5 = vector.load %arg11[%c0_11, %c0_12] : memref<32x128xf32, #tpu.memory_space<vmem>>, vector<32x128xf32>
    %c0_13 = arith.constant 0 : index
    %c0_14 = arith.constant 0 : index
    %6 = vector.load %arg8[%c0_13, %c0_14] : memref<1x128xf32, #tpu.memory_space<vmem>>, vector<1x128xf32>
    %7 = vector.shape_cast %6 : vector<1x128xf32> to vector<1x128xf32>
    %8 = vector.broadcast %7 : vector<1x128xf32> to vector<8x128xf32>
    %c0_15 = arith.constant 0 : index
    %c0_16 = arith.constant 0 : index
    %9 = vector.load %arg10[%c0_15, %c0_16] : memref<1x32xf32, #tpu.memory_space<vmem>>, vector<1x32xf32>
    %10 = vector.shape_cast %9 : vector<1x32xf32> to vector<1x32xf32>
    %11 = vector.broadcast %10 : vector<1x32xf32> to vector<8x32xf32>
    %c0_17 = arith.constant 0 : index
    %c0_18 = arith.constant 0 : index
    %12 = vector.load %arg12[%c0_17, %c0_18] : memref<1x128xf32, #tpu.memory_space<vmem>>, vector<1x128xf32>
    %13 = vector.shape_cast %12 : vector<1x128xf32> to vector<1x128xf32>
    %14 = vector.broadcast %13 : vector<1x128xf32> to vector<8x128xf32>
    %c0_19 = arith.constant 0 : index
    %c0_20 = arith.constant 0 : index
    %15 = vector.load %arg5[%c0_19, %c0_20] : memref<8x32xf32, #tpu.memory_space<vmem>>, vector<8x32xf32>
    %c0_21 = arith.constant 0 : index
    %c0_22 = arith.constant 0 : index
    %16 = vector.load %arg6[%c0_21, %c0_22] : memref<8x32xf32, #tpu.memory_space<vmem>>, vector<8x32xf32>
    %c0_23 = arith.constant 0 : index
    %c0_24 = arith.constant 0 : index
    %17 = vector.load %arg4[%c0_23, %c0_24] : memref<8x32xf32, #tpu.memory_space<vmem>>, vector<8x32xf32>
    %cst = arith.constant 0.176776692 : f32
    %c0_i32 = arith.constant 0 : i32
    %18 = arith.index_cast %c0_i32 : i32 to index
    %c0_25 = arith.constant 0 : index
    %c0_26 = arith.constant 0 : index
    %19 = vector.load %arg0[%18, %c0_25, %c0_26] : memref<6x8x16xf32, #tpu.memory_space<vmem>>, vector<1x8x16xf32>
    %20 = vector.shape_cast %19 : vector<1x8x16xf32> to vector<8x16xf32>
    %21 = tpu.concatenate %20, %17, %15 in 1 : vector<8x16xf32>, vector<8x32xf32>, vector<8x32xf32> -> vector<8x80xf32>
    %cst_27 = arith.constant dense<0.000000e+00> : vector<8x128xf32>
    %22 = tpu.matmul %21, %3, %cst_27 {dimension_numbers = #tpu.dot_dimension_numbers<[1], [0], [0], [1], [0, 0, 1, 1], [], []>} : vector<8x80xf32>, vector<80x128xf32>, vector<8x128xf32> -> vector<8x128xf32>
    %23 = arith.addf %22, %8 : vector<8x128xf32>
    %24 = vector.extract_strided_slice %23 {offsets = [0, 0], sizes = [8, 32], strides = [1, 1]} : vector<8x128xf32> to vector<8x32xf32>
    %25 = arith.negf %24 : vector<8x32xf32>
    %26 = math.exp %25 : vector<8x32xf32>
    %cst_28 = arith.constant 1.000000e+00 : f32
    %27 = vector.broadcast %cst_28 : f32 to vector<8x32xf32>
    %28 = arith.addf %27, %26 : vector<8x32xf32>
    %29 = arith.divf %27, %28 : vector<8x32xf32>
    %30 = vector.extract_strided_slice %23 {offsets = [0, 32], sizes = [8, 32], strides = [1, 1]} : vector<8x128xf32> to vector<8x32xf32>
    %31 = arith.negf %30 : vector<8x32xf32>
    %32 = math.exp %31 : vector<8x32xf32>
    %cst_29 = arith.constant 1.000000e+00 : f32
    %33 = vector.broadcast %cst_29 : f32 to vector<8x32xf32>
    %34 = arith.addf %33, %32 : vector<8x32xf32>
    %35 = arith.divf %33, %34 : vector<8x32xf32>
    %36 = vector.extract_strided_slice %23 {offsets = [0, 64], sizes = [8, 32], strides = [1, 1]} : vector<8x128xf32> to vector<8x32xf32>
    %37 = math.tanh %36 : vector<8x32xf32>
    %38 = vector.extract_strided_slice %23 {offsets = [0, 96], sizes = [8, 32], strides = [1, 1]} : vector<8x128xf32> to vector<8x32xf32>
    %39 = arith.negf %38 : vector<8x32xf32>
    %40 = math.exp %39 : vector<8x32xf32>
    %cst_30 = arith.constant 1.000000e+00 : f32
    %41 = vector.broadcast %cst_30 : f32 to vector<8x32xf32>
    %42 = arith.addf %41, %40 : vector<8x32xf32>
    %43 = arith.divf %41, %42 : vector<8x32xf32>
    %44 = arith.mulf %35, %16 : vector<8x32xf32>
    %45 = arith.mulf %29, %37 : vector<8x32xf32>
    %46 = arith.addf %44, %45 : vector<8x32xf32>
    %47 = math.tanh %46 : vector<8x32xf32>
    %48 = arith.mulf %43, %47 : vector<8x32xf32>
    %49 = vector.shape_cast %48 : vector<8x32xf32> to vector<8x1x32xf32>
    %50 = vector.broadcast %49 : vector<8x1x32xf32> to vector<8x8x32xf32>
    %51 = arith.mulf %50, %1 : vector<8x8x32xf32>
    %cst_31 = arith.constant dense<0.000000e+00> : vector<8x8xf32>
    %52 = vector.multi_reduction <add>, %51, %cst_31 [2] : vector<8x8x32xf32> to vector<8x8xf32>
    %53 = arith.addf %52, %2 : vector<8x8xf32>
    %54 = vector.broadcast %cst : f32 to vector<8x8xf32>
    %55 = arith.mulf %53, %54 : vector<8x8xf32>
    %cst_32 = arith.constant dense<0xFF800000> : vector<8xf32>
    %56 = vector.multi_reduction <maximumf>, %55, %cst_32 [1] : vector<8x8xf32> to vector<8xf32>
    %57 = vector.shape_cast %56 : vector<8xf32> to vector<8x1xf32>
    %58 = vector.broadcast %57 : vector<8x1xf32> to vector<8x8xf32>
    %59 = arith.subf %55, %58 : vector<8x8xf32>
    %60 = math.exp %59 : vector<8x8xf32>
    %cst_33 = arith.constant dense<0.000000e+00> : vector<8xf32>
    %61 = vector.multi_reduction <add>, %60, %cst_33 [1] : vector<8x8xf32> to vector<8xf32>
    %62 = vector.shape_cast %61 : vector<8xf32> to vector<8x1xf32>
    %63 = tpu.reciprocal %62 {approx = true} : vector<8x1xf32> -> vector<8x1xf32>
    %64 = vector.broadcast %63 : vector<8x1xf32> to vector<8x8xf32>
    %65 = arith.mulf %60, %64 : vector<8x8xf32>
    %66 = vector.shape_cast %65 : vector<8x8xf32> to vector<8x8x1xf32>
    %67 = vector.broadcast %66 : vector<8x8x1xf32> to vector<8x8x32xf32>
    %68 = arith.mulf %67, %0 : vector<8x8x32xf32>
    %cst_34 = arith.constant dense<0.000000e+00> : vector<8x32xf32>
    %69 = vector.multi_reduction <add>, %68, %cst_34 [1] : vector<8x8x32xf32> to vector<8x32xf32>
    %70 = tpu.concatenate %48, %69 in 1 : vector<8x32xf32>, vector<8x32xf32> -> vector<8x64xf32>
    %cst_35 = arith.constant dense<0.000000e+00> : vector<8x32xf32>
    %71 = tpu.matmul %70, %4, %cst_35 {dimension_numbers = #tpu.dot_dimension_numbers<[1], [0], [0], [1], [0, 0, 1, 1], [], []>} : vector<8x64xf32>, vector<64x32xf32>, vector<8x32xf32> -> vector<8x32xf32>
    %72 = arith.addf %71, %11 : vector<8x32xf32>
    %73 = math.tanh %72 : vector<8x32xf32>
    %cst_36 = arith.constant dense<0.000000e+00> : vector<8x128xf32>
    %74 = tpu.matmul %73, %5, %cst_36 {dimension_numbers = #tpu.dot_dimension_numbers<[1], [0], [0], [1], [0, 0, 1, 1], [], []>} : vector<8x32xf32>, vector<32x128xf32>, vector<8x128xf32> -> vector<8x128xf32>
    %75 = arith.addf %74, %14 : vector<8x128xf32>
    %76 = arith.index_cast %c0_i32 : i32 to index
    %c0_37 = arith.constant 0 : index
    %c0_38 = arith.constant 0 : index
    %77 = vector.load %arg13[%76, %c0_37, %c0_38] : memref<6x8x128xf32, #tpu.memory_space<vmem>>, vector<1x8x128xf32>
    %78 = vector.shape_cast %77 : vector<1x8x128xf32> to vector<8x128xf32>
    %79 = vector.shape_cast %75 : vector<8x128xf32> to vector<1x8x128xf32>
    tpu.vector_store %arg13[%76, %c0_37, %c0_38], %79 {strides = array<i32>} : memref<6x8x128xf32, #tpu.memory_space<vmem>>, vector<1x8x128xf32>,
    %c1_i32 = arith.constant 1 : i32
    %80 = arith.index_cast %c1_i32 : i32 to index
    %c0_39 = arith.constant 0 : index
    %c0_40 = arith.constant 0 : index
    %81 = vector.load %arg0[%80, %c0_39, %c0_40] : memref<6x8x16xf32, #tpu.memory_space<vmem>>, vector<1x8x16xf32>
    %82 = vector.shape_cast %81 : vector<1x8x16xf32> to vector<8x16xf32>
    %83 = tpu.concatenate %82, %73, %48 in 1 : vector<8x16xf32>, vector<8x32xf32>, vector<8x32xf32> -> vector<8x80xf32>
    %cst_41 = arith.constant dense<0.000000e+00> : vector<8x128xf32>
    %84 = tpu.matmul %83, %3, %cst_41 {dimension_numbers = #tpu.dot_dimension_numbers<[1], [0], [0], [1], [0, 0, 1, 1], [], []>} : vector<8x80xf32>, vector<80x128xf32>, vector<8x128xf32> -> vector<8x128xf32>
    %85 = arith.addf %84, %8 : vector<8x128xf32>
    %86 = vector.extract_strided_slice %85 {offsets = [0, 0], sizes = [8, 32], strides = [1, 1]} : vector<8x128xf32> to vector<8x32xf32>
    %87 = arith.negf %86 : vector<8x32xf32>
    %88 = math.exp %87 : vector<8x32xf32>
    %cst_42 = arith.constant 1.000000e+00 : f32
    %89 = vector.broadcast %cst_42 : f32 to vector<8x32xf32>
    %90 = arith.addf %89, %88 : vector<8x32xf32>
    %91 = arith.divf %89, %90 : vector<8x32xf32>
    %92 = vector.extract_strided_slice %85 {offsets = [0, 32], sizes = [8, 32], strides = [1, 1]} : vector<8x128xf32> to vector<8x32xf32>
    %93 = arith.negf %92 : vector<8x32xf32>
    %94 = math.exp %93 : vector<8x32xf32>
    %cst_43 = arith.constant 1.000000e+00 : f32
    %95 = vector.broadcast %cst_43 : f32 to vector<8x32xf32>
    %96 = arith.addf %95, %94 : vector<8x32xf32>
    %97 = arith.divf %95, %96 : vector<8x32xf32>
    %98 = vector.extract_strided_slice %85 {offsets = [0, 64], sizes = [8, 32], strides = [1, 1]} : vector<8x128xf32> to vector<8x32xf32>
    %99 = math.tanh %98 : vector<8x32xf32>
    %100 = vector.extract_strided_slice %85 {offsets = [0, 96], sizes = [8, 32], strides = [1, 1]} : vector<8x128xf32> to vector<8x32xf32>
    %101 = arith.negf %100 : vector<8x32xf32>
    %102 = math.exp %101 : vector<8x32xf32>
    %cst_44 = arith.constant 1.000000e+00 : f32
    %103 = vector.broadcast %cst_44 : f32 to vector<8x32xf32>
    %104 = arith.addf %103, %102 : vector<8x32xf32>
    %105 = arith.divf %103, %104 : vector<8x32xf32>
    %106 = arith.mulf %97, %46 : vector<8x32xf32>
    %107 = arith.mulf %91, %99 : vector<8x32xf32>
    %108 = arith.addf %106, %107 : vector<8x32xf32>
    %109 = math.tanh %108 : vector<8x32xf32>
    %110 = arith.mulf %105, %109 : vector<8x32xf32>
    %111 = vector.shape_cast %110 : vector<8x32xf32> to vector<8x1x32xf32>
    %112 = vector.broadcast %111 : vector<8x1x32xf32> to vector<8x8x32xf32>
    %113 = arith.mulf %112, %1 : vector<8x8x32xf32>
    %cst_45 = arith.constant dense<0.000000e+00> : vector<8x8xf32>
    %114 = vector.multi_reduction <add>, %113, %cst_45 [2] : vector<8x8x32xf32> to vector<8x8xf32>
    %115 = arith.addf %114, %2 : vector<8x8xf32>
    %116 = vector.broadcast %cst : f32 to vector<8x8xf32>
    %117 = arith.mulf %115, %116 : vector<8x8xf32>
    %cst_46 = arith.constant dense<0xFF800000> : vector<8xf32>
    %118 = vector.multi_reduction <maximumf>, %117, %cst_46 [1] : vector<8x8xf32> to vector<8xf32>
    %119 = vector.shape_cast %118 : vector<8xf32> to vector<8x1xf32>
    %120 = vector.broadcast %119 : vector<8x1xf32> to vector<8x8xf32>
    %121 = arith.subf %117, %120 : vector<8x8xf32>
    %122 = math.exp %121 : vector<8x8xf32>
    %cst_47 = arith.constant dense<0.000000e+00> : vector<8xf32>
    %123 = vector.multi_reduction <add>, %122, %cst_47 [1] : vector<8x8xf32> to vector<8xf32>
    %124 = vector.shape_cast %123 : vector<8xf32> to vector<8x1xf32>
    %125 = tpu.reciprocal %124 {approx = true} : vector<8x1xf32> -> vector<8x1xf32>
    %126 = vector.broadcast %125 : vector<8x1xf32> to vector<8x8xf32>
    %127 = arith.mulf %122, %126 : vector<8x8xf32>
    %128 = vector.shape_cast %127 : vector<8x8xf32> to vector<8x8x1xf32>
    %129 = vector.broadcast %128 : vector<8x8x1xf32> to vector<8x8x32xf32>
    %130 = arith.mulf %129, %0 : vector<8x8x32xf32>
    %cst_48 = arith.constant dense<0.000000e+00> : vector<8x32xf32>
    %131 = vector.multi_reduction <add>, %130, %cst_48 [1] : vector<8x8x32xf32> to vector<8x32xf32>
    %132 = tpu.concatenate %110, %131 in 1 : vector<8x32xf32>, vector<8x32xf32> -> vector<8x64xf32>
    %cst_49 = arith.constant dense<0.000000e+00> : vector<8x32xf32>
    %133 = tpu.matmul %132, %4, %cst_49 {dimension_numbers = #tpu.dot_dimension_numbers<[1], [0], [0], [1], [0, 0, 1, 1], [], []>} : vector<8x64xf32>, vector<64x32xf32>, vector<8x32xf32> -> vector<8x32xf32>
    %134 = arith.addf %133, %11 : vector<8x32xf32>
    %135 = math.tanh %134 : vector<8x32xf32>
    %cst_50 = arith.constant dense<0.000000e+00> : vector<8x128xf32>
    %136 = tpu.matmul %135, %5, %cst_50 {dimension_numbers = #tpu.dot_dimension_numbers<[1], [0], [0], [1], [0, 0, 1, 1], [], []>} : vector<8x32xf32>, vector<32x128xf32>, vector<8x128xf32> -> vector<8x128xf32>
    %137 = arith.addf %136, %14 : vector<8x128xf32>
    %138 = arith.index_cast %c1_i32 : i32 to index
    %c0_51 = arith.constant 0 : index
    %c0_52 = arith.constant 0 : index
    %139 = vector.load %arg13[%138, %c0_51, %c0_52] : memref<6x8x128xf32, #tpu.memory_space<vmem>>, vector<1x8x128xf32>
    %140 = vector.shape_cast %139 : vector<1x8x128xf32> to vector<8x128xf32>
    %141 = vector.shape_cast %137 : vector<8x128xf32> to vector<1x8x128xf32>
    tpu.vector_store %arg13[%138, %c0_51, %c0_52], %141 {strides = array<i32>} : memref<6x8x128xf32, #tpu.memory_space<vmem>>, vector<1x8x128xf32>,
    %c2_i32 = arith.constant 2 : i32
    %142 = arith.index_cast %c2_i32 : i32 to index
    %c0_53 = arith.constant 0 : index
    %c0_54 = arith.constant 0 : index
    %143 = vector.load %arg0[%142, %c0_53, %c0_54] : memref<6x8x16xf32, #tpu.memory_space<vmem>>, vector<1x8x16xf32>
    %144 = vector.shape_cast %143 : vector<1x8x16xf32> to vector<8x16xf32>
    %145 = tpu.concatenate %144, %135, %110 in 1 : vector<8x16xf32>, vector<8x32xf32>, vector<8x32xf32> -> vector<8x80xf32>
    %cst_55 = arith.constant dense<0.000000e+00> : vector<8x128xf32>
    %146 = tpu.matmul %145, %3, %cst_55 {dimension_numbers = #tpu.dot_dimension_numbers<[1], [0], [0], [1], [0, 0, 1, 1], [], []>} : vector<8x80xf32>, vector<80x128xf32>, vector<8x128xf32> -> vector<8x128xf32>
    %147 = arith.addf %146, %8 : vector<8x128xf32>
    %148 = vector.extract_strided_slice %147 {offsets = [0, 0], sizes = [8, 32], strides = [1, 1]} : vector<8x128xf32> to vector<8x32xf32>
    %149 = arith.negf %148 : vector<8x32xf32>
    %150 = math.exp %149 : vector<8x32xf32>
    %cst_56 = arith.constant 1.000000e+00 : f32
    %151 = vector.broadcast %cst_56 : f32 to vector<8x32xf32>
    %152 = arith.addf %151, %150 : vector<8x32xf32>
    %153 = arith.divf %151, %152 : vector<8x32xf32>
    %154 = vector.extract_strided_slice %147 {offsets = [0, 32], sizes = [8, 32], strides = [1, 1]} : vector<8x128xf32> to vector<8x32xf32>
    %155 = arith.negf %154 : vector<8x32xf32>
    %156 = math.exp %155 : vector<8x32xf32>
    %cst_57 = arith.constant 1.000000e+00 : f32
    %157 = vector.broadcast %cst_57 : f32 to vector<8x32xf32>
    %158 = arith.addf %157, %156 : vector<8x32xf32>
    %159 = arith.divf %157, %158 : vector<8x32xf32>
    %160 = vector.extract_strided_slice %147 {offsets = [0, 64], sizes = [8, 32], strides = [1, 1]} : vector<8x128xf32> to vector<8x32xf32>
    %161 = math.tanh %160 : vector<8x32xf32>
    %162 = vector.extract_strided_slice %147 {offsets = [0, 96], sizes = [8, 32], strides = [1, 1]} : vector<8x128xf32> to vector<8x32xf32>
    %163 = arith.negf %162 : vector<8x32xf32>
    %164 = math.exp %163 : vector<8x32xf32>
    %cst_58 = arith.constant 1.000000e+00 : f32
    %165 = vector.broadcast %cst_58 : f32 to vector<8x32xf32>
    %166 = arith.addf %165, %164 : vector<8x32xf32>
    %167 = arith.divf %165, %166 : vector<8x32xf32>
    %168 = arith.mulf %159, %108 : vector<8x32xf32>
    %169 = arith.mulf %153, %161 : vector<8x32xf32>
    %170 = arith.addf %168, %169 : vector<8x32xf32>
    %171 = math.tanh %170 : vector<8x32xf32>
    %172 = arith.mulf %167, %171 : vector<8x32xf32>
    %173 = vector.shape_cast %172 : vector<8x32xf32> to vector<8x1x32xf32>
    %174 = vector.broadcast %173 : vector<8x1x32xf32> to vector<8x8x32xf32>
    %175 = arith.mulf %174, %1 : vector<8x8x32xf32>
    %cst_59 = arith.constant dense<0.000000e+00> : vector<8x8xf32>
    %176 = vector.multi_reduction <add>, %175, %cst_59 [2] : vector<8x8x32xf32> to vector<8x8xf32>
    %177 = arith.addf %176, %2 : vector<8x8xf32>
    %178 = vector.broadcast %cst : f32 to vector<8x8xf32>
    %179 = arith.mulf %177, %178 : vector<8x8xf32>
    %cst_60 = arith.constant dense<0xFF800000> : vector<8xf32>
    %180 = vector.multi_reduction <maximumf>, %179, %cst_60 [1] : vector<8x8xf32> to vector<8xf32>
    %181 = vector.shape_cast %180 : vector<8xf32> to vector<8x1xf32>
    %182 = vector.broadcast %181 : vector<8x1xf32> to vector<8x8xf32>
    %183 = arith.subf %179, %182 : vector<8x8xf32>
    %184 = math.exp %183 : vector<8x8xf32>
    %cst_61 = arith.constant dense<0.000000e+00> : vector<8xf32>
    %185 = vector.multi_reduction <add>, %184, %cst_61 [1] : vector<8x8xf32> to vector<8xf32>
    %186 = vector.shape_cast %185 : vector<8xf32> to vector<8x1xf32>
    %187 = tpu.reciprocal %186 {approx = true} : vector<8x1xf32> -> vector<8x1xf32>
    %188 = vector.broadcast %187 : vector<8x1xf32> to vector<8x8xf32>
    %189 = arith.mulf %184, %188 : vector<8x8xf32>
    %190 = vector.shape_cast %189 : vector<8x8xf32> to vector<8x8x1xf32>
    %191 = vector.broadcast %190 : vector<8x8x1xf32> to vector<8x8x32xf32>
    %192 = arith.mulf %191, %0 : vector<8x8x32xf32>
    %cst_62 = arith.constant dense<0.000000e+00> : vector<8x32xf32>
    %193 = vector.multi_reduction <add>, %192, %cst_62 [1] : vector<8x8x32xf32> to vector<8x32xf32>
    %194 = tpu.concatenate %172, %193 in 1 : vector<8x32xf32>, vector<8x32xf32> -> vector<8x64xf32>
    %cst_63 = arith.constant dense<0.000000e+00> : vector<8x32xf32>
    %195 = tpu.matmul %194, %4, %cst_63 {dimension_numbers = #tpu.dot_dimension_numbers<[1], [0], [0], [1], [0, 0, 1, 1], [], []>} : vector<8x64xf32>, vector<64x32xf32>, vector<8x32xf32> -> vector<8x32xf32>
    %196 = arith.addf %195, %11 : vector<8x32xf32>
    %197 = math.tanh %196 : vector<8x32xf32>
    %cst_64 = arith.constant dense<0.000000e+00> : vector<8x128xf32>
    %198 = tpu.matmul %197, %5, %cst_64 {dimension_numbers = #tpu.dot_dimension_numbers<[1], [0], [0], [1], [0, 0, 1, 1], [], []>} : vector<8x32xf32>, vector<32x128xf32>, vector<8x128xf32> -> vector<8x128xf32>
    %199 = arith.addf %198, %14 : vector<8x128xf32>
    %200 = arith.index_cast %c2_i32 : i32 to index
    %c0_65 = arith.constant 0 : index
    %c0_66 = arith.constant 0 : index
    %201 = vector.load %arg13[%200, %c0_65, %c0_66] : memref<6x8x128xf32, #tpu.memory_space<vmem>>, vector<1x8x128xf32>
    %202 = vector.shape_cast %201 : vector<1x8x128xf32> to vector<8x128xf32>
    %203 = vector.shape_cast %199 : vector<8x128xf32> to vector<1x8x128xf32>
    tpu.vector_store %arg13[%200, %c0_65, %c0_66], %203 {strides = array<i32>} : memref<6x8x128xf32, #tpu.memory_space<vmem>>, vector<1x8x128xf32>,
    %c3_i32 = arith.constant 3 : i32
    %204 = arith.index_cast %c3_i32 : i32 to index
    %c0_67 = arith.constant 0 : index
    %c0_68 = arith.constant 0 : index
    %205 = vector.load %arg0[%204, %c0_67, %c0_68] : memref<6x8x16xf32, #tpu.memory_space<vmem>>, vector<1x8x16xf32>
    %206 = vector.shape_cast %205 : vector<1x8x16xf32> to vector<8x16xf32>
    %207 = tpu.concatenate %206, %197, %172 in 1 : vector<8x16xf32>, vector<8x32xf32>, vector<8x32xf32> -> vector<8x80xf32>
    %cst_69 = arith.constant dense<0.000000e+00> : vector<8x128xf32>
    %208 = tpu.matmul %207, %3, %cst_69 {dimension_numbers = #tpu.dot_dimension_numbers<[1], [0], [0], [1], [0, 0, 1, 1], [], []>} : vector<8x80xf32>, vector<80x128xf32>, vector<8x128xf32> -> vector<8x128xf32>
    %209 = arith.addf %208, %8 : vector<8x128xf32>
    %210 = vector.extract_strided_slice %209 {offsets = [0, 0], sizes = [8, 32], strides = [1, 1]} : vector<8x128xf32> to vector<8x32xf32>
    %211 = arith.negf %210 : vector<8x32xf32>
    %212 = math.exp %211 : vector<8x32xf32>
    %cst_70 = arith.constant 1.000000e+00 : f32
    %213 = vector.broadcast %cst_70 : f32 to vector<8x32xf32>
    %214 = arith.addf %213, %212 : vector<8x32xf32>
    %215 = arith.divf %213, %214 : vector<8x32xf32>
    %216 = vector.extract_strided_slice %209 {offsets = [0, 32], sizes = [8, 32], strides = [1, 1]} : vector<8x128xf32> to vector<8x32xf32>
    %217 = arith.negf %216 : vector<8x32xf32>
    %218 = math.exp %217 : vector<8x32xf32>
    %cst_71 = arith.constant 1.000000e+00 : f32
    %219 = vector.broadcast %cst_71 : f32 to vector<8x32xf32>
    %220 = arith.addf %219, %218 : vector<8x32xf32>
    %221 = arith.divf %219, %220 : vector<8x32xf32>
    %222 = vector.extract_strided_slice %209 {offsets = [0, 64], sizes = [8, 32], strides = [1, 1]} : vector<8x128xf32> to vector<8x32xf32>
    %223 = math.tanh %222 : vector<8x32xf32>
    %224 = vector.extract_strided_slice %209 {offsets = [0, 96], sizes = [8, 32], strides = [1, 1]} : vector<8x128xf32> to vector<8x32xf32>
    %225 = arith.negf %224 : vector<8x32xf32>
    %226 = math.exp %225 : vector<8x32xf32>
    %cst_72 = arith.constant 1.000000e+00 : f32
    %227 = vector.broadcast %cst_72 : f32 to vector<8x32xf32>
    %228 = arith.addf %227, %226 : vector<8x32xf32>
    %229 = arith.divf %227, %228 : vector<8x32xf32>
    %230 = arith.mulf %221, %170 : vector<8x32xf32>
    %231 = arith.mulf %215, %223 : vector<8x32xf32>
    %232 = arith.addf %230, %231 : vector<8x32xf32>
    %233 = math.tanh %232 : vector<8x32xf32>
    %234 = arith.mulf %229, %233 : vector<8x32xf32>
    %235 = vector.shape_cast %234 : vector<8x32xf32> to vector<8x1x32xf32>
    %236 = vector.broadcast %235 : vector<8x1x32xf32> to vector<8x8x32xf32>
    %237 = arith.mulf %236, %1 : vector<8x8x32xf32>
    %cst_73 = arith.constant dense<0.000000e+00> : vector<8x8xf32>
    %238 = vector.multi_reduction <add>, %237, %cst_73 [2] : vector<8x8x32xf32> to vector<8x8xf32>
    %239 = arith.addf %238, %2 : vector<8x8xf32>
    %240 = vector.broadcast %cst : f32 to vector<8x8xf32>
    %241 = arith.mulf %239, %240 : vector<8x8xf32>
    %cst_74 = arith.constant dense<0xFF800000> : vector<8xf32>
    %242 = vector.multi_reduction <maximumf>, %241, %cst_74 [1] : vector<8x8xf32> to vector<8xf32>
    %243 = vector.shape_cast %242 : vector<8xf32> to vector<8x1xf32>
    %244 = vector.broadcast %243 : vector<8x1xf32> to vector<8x8xf32>
    %245 = arith.subf %241, %244 : vector<8x8xf32>
    %246 = math.exp %245 : vector<8x8xf32>
    %cst_75 = arith.constant dense<0.000000e+00> : vector<8xf32>
    %247 = vector.multi_reduction <add>, %246, %cst_75 [1] : vector<8x8xf32> to vector<8xf32>
    %248 = vector.shape_cast %247 : vector<8xf32> to vector<8x1xf32>
    %249 = tpu.reciprocal %248 {approx = true} : vector<8x1xf32> -> vector<8x1xf32>
    %250 = vector.broadcast %249 : vector<8x1xf32> to vector<8x8xf32>
    %251 = arith.mulf %246, %250 : vector<8x8xf32>
    %252 = vector.shape_cast %251 : vector<8x8xf32> to vector<8x8x1xf32>
    %253 = vector.broadcast %252 : vector<8x8x1xf32> to vector<8x8x32xf32>
    %254 = arith.mulf %253, %0 : vector<8x8x32xf32>
    %cst_76 = arith.constant dense<0.000000e+00> : vector<8x32xf32>
    %255 = vector.multi_reduction <add>, %254, %cst_76 [1] : vector<8x8x32xf32> to vector<8x32xf32>
    %256 = tpu.concatenate %234, %255 in 1 : vector<8x32xf32>, vector<8x32xf32> -> vector<8x64xf32>
    %cst_77 = arith.constant dense<0.000000e+00> : vector<8x32xf32>
    %257 = tpu.matmul %256, %4, %cst_77 {dimension_numbers = #tpu.dot_dimension_numbers<[1], [0], [0], [1], [0, 0, 1, 1], [], []>} : vector<8x64xf32>, vector<64x32xf32>, vector<8x32xf32> -> vector<8x32xf32>
    %258 = arith.addf %257, %11 : vector<8x32xf32>
    %259 = math.tanh %258 : vector<8x32xf32>
    %cst_78 = arith.constant dense<0.000000e+00> : vector<8x128xf32>
    %260 = tpu.matmul %259, %5, %cst_78 {dimension_numbers = #tpu.dot_dimension_numbers<[1], [0], [0], [1], [0, 0, 1, 1], [], []>} : vector<8x32xf32>, vector<32x128xf32>, vector<8x128xf32> -> vector<8x128xf32>
    %261 = arith.addf %260, %14 : vector<8x128xf32>
    %262 = arith.index_cast %c3_i32 : i32 to index
    %c0_79 = arith.constant 0 : index
    %c0_80 = arith.constant 0 : index
    %263 = vector.load %arg13[%262, %c0_79, %c0_80] : memref<6x8x128xf32, #tpu.memory_space<vmem>>, vector<1x8x128xf32>
    %264 = vector.shape_cast %263 : vector<1x8x128xf32> to vector<8x128xf32>
    %265 = vector.shape_cast %261 : vector<8x128xf32> to vector<1x8x128xf32>
    tpu.vector_store %arg13[%262, %c0_79, %c0_80], %265 {strides = array<i32>} : memref<6x8x128xf32, #tpu.memory_space<vmem>>, vector<1x8x128xf32>,
    %c4_i32 = arith.constant 4 : i32
    %266 = arith.index_cast %c4_i32 : i32 to index
    %c0_81 = arith.constant 0 : index
    %c0_82 = arith.constant 0 : index
    %267 = vector.load %arg0[%266, %c0_81, %c0_82] : memref<6x8x16xf32, #tpu.memory_space<vmem>>, vector<1x8x16xf32>
    %268 = vector.shape_cast %267 : vector<1x8x16xf32> to vector<8x16xf32>
    %269 = tpu.concatenate %268, %259, %234 in 1 : vector<8x16xf32>, vector<8x32xf32>, vector<8x32xf32> -> vector<8x80xf32>
    %cst_83 = arith.constant dense<0.000000e+00> : vector<8x128xf32>
    %270 = tpu.matmul %269, %3, %cst_83 {dimension_numbers = #tpu.dot_dimension_numbers<[1], [0], [0], [1], [0, 0, 1, 1], [], []>} : vector<8x80xf32>, vector<80x128xf32>, vector<8x128xf32> -> vector<8x128xf32>
    %271 = arith.addf %270, %8 : vector<8x128xf32>
    %272 = vector.extract_strided_slice %271 {offsets = [0, 0], sizes = [8, 32], strides = [1, 1]} : vector<8x128xf32> to vector<8x32xf32>
    %273 = arith.negf %272 : vector<8x32xf32>
    %274 = math.exp %273 : vector<8x32xf32>
    %cst_84 = arith.constant 1.000000e+00 : f32
    %275 = vector.broadcast %cst_84 : f32 to vector<8x32xf32>
    %276 = arith.addf %275, %274 : vector<8x32xf32>
    %277 = arith.divf %275, %276 : vector<8x32xf32>
    %278 = vector.extract_strided_slice %271 {offsets = [0, 32], sizes = [8, 32], strides = [1, 1]} : vector<8x128xf32> to vector<8x32xf32>
    %279 = arith.negf %278 : vector<8x32xf32>
    %280 = math.exp %279 : vector<8x32xf32>
    %cst_85 = arith.constant 1.000000e+00 : f32
    %281 = vector.broadcast %cst_85 : f32 to vector<8x32xf32>
    %282 = arith.addf %281, %280 : vector<8x32xf32>
    %283 = arith.divf %281, %282 : vector<8x32xf32>
    %284 = vector.extract_strided_slice %271 {offsets = [0, 64], sizes = [8, 32], strides = [1, 1]} : vector<8x128xf32> to vector<8x32xf32>
    %285 = math.tanh %284 : vector<8x32xf32>
    %286 = vector.extract_strided_slice %271 {offsets = [0, 96], sizes = [8, 32], strides = [1, 1]} : vector<8x128xf32> to vector<8x32xf32>
    %287 = arith.negf %286 : vector<8x32xf32>
    %288 = math.exp %287 : vector<8x32xf32>
    %cst_86 = arith.constant 1.000000e+00 : f32
    %289 = vector.broadcast %cst_86 : f32 to vector<8x32xf32>
    %290 = arith.addf %289, %288 : vector<8x32xf32>
    %291 = arith.divf %289, %290 : vector<8x32xf32>
    %292 = arith.mulf %283, %232 : vector<8x32xf32>
    %293 = arith.mulf %277, %285 : vector<8x32xf32>
    %294 = arith.addf %292, %293 : vector<8x32xf32>
    %295 = math.tanh %294 : vector<8x32xf32>
    %296 = arith.mulf %291, %295 : vector<8x32xf32>
    %297 = vector.shape_cast %296 : vector<8x32xf32> to vector<8x1x32xf32>
    %298 = vector.broadcast %297 : vector<8x1x32xf32> to vector<8x8x32xf32>
    %299 = arith.mulf %298, %1 : vector<8x8x32xf32>
    %cst_87 = arith.constant dense<0.000000e+00> : vector<8x8xf32>
    %300 = vector.multi_reduction <add>, %299, %cst_87 [2] : vector<8x8x32xf32> to vector<8x8xf32>
    %301 = arith.addf %300, %2 : vector<8x8xf32>
    %302 = vector.broadcast %cst : f32 to vector<8x8xf32>
    %303 = arith.mulf %301, %302 : vector<8x8xf32>
    %cst_88 = arith.constant dense<0xFF800000> : vector<8xf32>
    %304 = vector.multi_reduction <maximumf>, %303, %cst_88 [1] : vector<8x8xf32> to vector<8xf32>
    %305 = vector.shape_cast %304 : vector<8xf32> to vector<8x1xf32>
    %306 = vector.broadcast %305 : vector<8x1xf32> to vector<8x8xf32>
    %307 = arith.subf %303, %306 : vector<8x8xf32>
    %308 = math.exp %307 : vector<8x8xf32>
    %cst_89 = arith.constant dense<0.000000e+00> : vector<8xf32>
    %309 = vector.multi_reduction <add>, %308, %cst_89 [1] : vector<8x8xf32> to vector<8xf32>
    %310 = vector.shape_cast %309 : vector<8xf32> to vector<8x1xf32>
    %311 = tpu.reciprocal %310 {approx = true} : vector<8x1xf32> -> vector<8x1xf32>
    %312 = vector.broadcast %311 : vector<8x1xf32> to vector<8x8xf32>
    %313 = arith.mulf %308, %312 : vector<8x8xf32>
    %314 = vector.shape_cast %313 : vector<8x8xf32> to vector<8x8x1xf32>
    %315 = vector.broadcast %314 : vector<8x8x1xf32> to vector<8x8x32xf32>
    %316 = arith.mulf %315, %0 : vector<8x8x32xf32>
    %cst_90 = arith.constant dense<0.000000e+00> : vector<8x32xf32>
    %317 = vector.multi_reduction <add>, %316, %cst_90 [1] : vector<8x8x32xf32> to vector<8x32xf32>
    %318 = tpu.concatenate %296, %317 in 1 : vector<8x32xf32>, vector<8x32xf32> -> vector<8x64xf32>
    %cst_91 = arith.constant dense<0.000000e+00> : vector<8x32xf32>
    %319 = tpu.matmul %318, %4, %cst_91 {dimension_numbers = #tpu.dot_dimension_numbers<[1], [0], [0], [1], [0, 0, 1, 1], [], []>} : vector<8x64xf32>, vector<64x32xf32>, vector<8x32xf32> -> vector<8x32xf32>
    %320 = arith.addf %319, %11 : vector<8x32xf32>
    %321 = math.tanh %320 : vector<8x32xf32>
    %cst_92 = arith.constant dense<0.000000e+00> : vector<8x128xf32>
    %322 = tpu.matmul %321, %5, %cst_92 {dimension_numbers = #tpu.dot_dimension_numbers<[1], [0], [0], [1], [0, 0, 1, 1], [], []>} : vector<8x32xf32>, vector<32x128xf32>, vector<8x128xf32> -> vector<8x128xf32>
    %323 = arith.addf %322, %14 : vector<8x128xf32>
    %324 = arith.index_cast %c4_i32 : i32 to index
    %c0_93 = arith.constant 0 : index
    %c0_94 = arith.constant 0 : index
    %325 = vector.load %arg13[%324, %c0_93, %c0_94] : memref<6x8x128xf32, #tpu.memory_space<vmem>>, vector<1x8x128xf32>
    %326 = vector.shape_cast %325 : vector<1x8x128xf32> to vector<8x128xf32>
    %327 = vector.shape_cast %323 : vector<8x128xf32> to vector<1x8x128xf32>
    tpu.vector_store %arg13[%324, %c0_93, %c0_94], %327 {strides = array<i32>} : memref<6x8x128xf32, #tpu.memory_space<vmem>>, vector<1x8x128xf32>,
    %c5_i32 = arith.constant 5 : i32
    %328 = arith.index_cast %c5_i32 : i32 to index
    %c0_95 = arith.constant 0 : index
    %c0_96 = arith.constant 0 : index
    %329 = vector.load %arg0[%328, %c0_95, %c0_96] : memref<6x8x16xf32, #tpu.memory_space<vmem>>, vector<1x8x16xf32>
    %330 = vector.shape_cast %329 : vector<1x8x16xf32> to vector<8x16xf32>
    %331 = tpu.concatenate %330, %321, %296 in 1 : vector<8x16xf32>, vector<8x32xf32>, vector<8x32xf32> -> vector<8x80xf32>
    %cst_97 = arith.constant dense<0.000000e+00> : vector<8x128xf32>
    %332 = tpu.matmul %331, %3, %cst_97 {dimension_numbers = #tpu.dot_dimension_numbers<[1], [0], [0], [1], [0, 0, 1, 1], [], []>} : vector<8x80xf32>, vector<80x128xf32>, vector<8x128xf32> -> vector<8x128xf32>
    %333 = arith.addf %332, %8 : vector<8x128xf32>
    %334 = vector.extract_strided_slice %333 {offsets = [0, 0], sizes = [8, 32], strides = [1, 1]} : vector<8x128xf32> to vector<8x32xf32>
    %335 = arith.negf %334 : vector<8x32xf32>
    %336 = math.exp %335 : vector<8x32xf32>
    %cst_98 = arith.constant 1.000000e+00 : f32
    %337 = vector.broadcast %cst_98 : f32 to vector<8x32xf32>
    %338 = arith.addf %337, %336 : vector<8x32xf32>
    %339 = arith.divf %337, %338 : vector<8x32xf32>
    %340 = vector.extract_strided_slice %333 {offsets = [0, 32], sizes = [8, 32], strides = [1, 1]} : vector<8x128xf32> to vector<8x32xf32>
    %341 = arith.negf %340 : vector<8x32xf32>
    %342 = math.exp %341 : vector<8x32xf32>
    %cst_99 = arith.constant 1.000000e+00 : f32
    %343 = vector.broadcast %cst_99 : f32 to vector<8x32xf32>
    %344 = arith.addf %343, %342 : vector<8x32xf32>
    %345 = arith.divf %343, %344 : vector<8x32xf32>
    %346 = vector.extract_strided_slice %333 {offsets = [0, 64], sizes = [8, 32], strides = [1, 1]} : vector<8x128xf32> to vector<8x32xf32>
    %347 = math.tanh %346 : vector<8x32xf32>
    %348 = vector.extract_strided_slice %333 {offsets = [0, 96], sizes = [8, 32], strides = [1, 1]} : vector<8x128xf32> to vector<8x32xf32>
    %349 = arith.negf %348 : vector<8x32xf32>
    %350 = math.exp %349 : vector<8x32xf32>
    %cst_100 = arith.constant 1.000000e+00 : f32
    %351 = vector.broadcast %cst_100 : f32 to vector<8x32xf32>
    %352 = arith.addf %351, %350 : vector<8x32xf32>
    %353 = arith.divf %351, %352 : vector<8x32xf32>
    %354 = arith.mulf %345, %294 : vector<8x32xf32>
    %355 = arith.mulf %339, %347 : vector<8x32xf32>
    %356 = arith.addf %354, %355 : vector<8x32xf32>
    %357 = math.tanh %356 : vector<8x32xf32>
    %358 = arith.mulf %353, %357 : vector<8x32xf32>
    %359 = vector.shape_cast %358 : vector<8x32xf32> to vector<8x1x32xf32>
    %360 = vector.broadcast %359 : vector<8x1x32xf32> to vector<8x8x32xf32>
    %361 = arith.mulf %360, %1 : vector<8x8x32xf32>
    %cst_101 = arith.constant dense<0.000000e+00> : vector<8x8xf32>
    %362 = vector.multi_reduction <add>, %361, %cst_101 [2] : vector<8x8x32xf32> to vector<8x8xf32>
    %363 = arith.addf %362, %2 : vector<8x8xf32>
    %364 = vector.broadcast %cst : f32 to vector<8x8xf32>
    %365 = arith.mulf %363, %364 : vector<8x8xf32>
    %cst_102 = arith.constant dense<0xFF800000> : vector<8xf32>
    %366 = vector.multi_reduction <maximumf>, %365, %cst_102 [1] : vector<8x8xf32> to vector<8xf32>
    %367 = vector.shape_cast %366 : vector<8xf32> to vector<8x1xf32>
    %368 = vector.broadcast %367 : vector<8x1xf32> to vector<8x8xf32>
    %369 = arith.subf %365, %368 : vector<8x8xf32>
    %370 = math.exp %369 : vector<8x8xf32>
    %cst_103 = arith.constant dense<0.000000e+00> : vector<8xf32>
    %371 = vector.multi_reduction <add>, %370, %cst_103 [1] : vector<8x8xf32> to vector<8xf32>
    %372 = vector.shape_cast %371 : vector<8xf32> to vector<8x1xf32>
    %373 = tpu.reciprocal %372 {approx = true} : vector<8x1xf32> -> vector<8x1xf32>
    %374 = vector.broadcast %373 : vector<8x1xf32> to vector<8x8xf32>
    %375 = arith.mulf %370, %374 : vector<8x8xf32>
    %376 = vector.shape_cast %375 : vector<8x8xf32> to vector<8x8x1xf32>
    %377 = vector.broadcast %376 : vector<8x8x1xf32> to vector<8x8x32xf32>
    %378 = arith.mulf %377, %0 : vector<8x8x32xf32>
    %cst_104 = arith.constant dense<0.000000e+00> : vector<8x32xf32>
    %379 = vector.multi_reduction <add>, %378, %cst_104 [1] : vector<8x8x32xf32> to vector<8x32xf32>
    %380 = tpu.concatenate %358, %379 in 1 : vector<8x32xf32>, vector<8x32xf32> -> vector<8x64xf32>
    %cst_105 = arith.constant dense<0.000000e+00> : vector<8x32xf32>
    %381 = tpu.matmul %380, %4, %cst_105 {dimension_numbers = #tpu.dot_dimension_numbers<[1], [0], [0], [1], [0, 0, 1, 1], [], []>} : vector<8x64xf32>, vector<64x32xf32>, vector<8x32xf32> -> vector<8x32xf32>
    %382 = arith.addf %381, %11 : vector<8x32xf32>
    %383 = math.tanh %382 : vector<8x32xf32>
    %cst_106 = arith.constant dense<0.000000e+00> : vector<8x128xf32>
    %384 = tpu.matmul %383, %5, %cst_106 {dimension_numbers = #tpu.dot_dimension_numbers<[1], [0], [0], [1], [0, 0, 1, 1], [], []>} : vector<8x32xf32>, vector<32x128xf32>, vector<8x128xf32> -> vector<8x128xf32>
    %385 = arith.addf %384, %14 : vector<8x128xf32>
    %386 = arith.index_cast %c5_i32 : i32 to index
    %c0_107 = arith.constant 0 : index
    %c0_108 = arith.constant 0 : index
    %387 = vector.load %arg13[%386, %c0_107, %c0_108] : memref<6x8x128xf32, #tpu.memory_space<vmem>>, vector<1x8x128xf32>
    %388 = vector.shape_cast %387 : vector<1x8x128xf32> to vector<8x128xf32>
    %389 = vector.shape_cast %385 : vector<8x128xf32> to vector<1x8x128xf32>
    tpu.vector_store %arg13[%386, %c0_107, %c0_108], %389 {strides = array<i32>} : memref<6x8x128xf32, #tpu.memory_space<vmem>>, vector<1x8x128xf32>,
    %c6_i32 = arith.constant 6 : i32
    %c0_109 = arith.constant 0 : index
    %c0_110 = arith.constant 0 : index
    %390 = vector.load %arg14[%c0_109, %c0_110] : memref<8x32xf32, #tpu.memory_space<vmem>>, vector<8x32xf32>
    tpu.vector_store %arg14[%c0_109, %c0_110], %358 {strides = array<i32>} : memref<8x32xf32, #tpu.memory_space<vmem>>, vector<8x32xf32>,
    %c0_111 = arith.constant 0 : index
    %c0_112 = arith.constant 0 : index
    %391 = vector.load %arg15[%c0_111, %c0_112] : memref<8x32xf32, #tpu.memory_space<vmem>>, vector<8x32xf32>
    tpu.vector_store %arg15[%c0_111, %c0_112], %356 {strides = array<i32>} : memref<8x32xf32, #tpu.memory_space<vmem>>, vector<8x32xf32>,
    %c0_113 = arith.constant 0 : index
    %c0_114 = arith.constant 0 : index
    %392 = vector.load %arg16[%c0_113, %c0_114] : memref<8x32xf32, #tpu.memory_space<vmem>>, vector<8x32xf32>
    tpu.vector_store %arg16[%c0_113, %c0_114], %383 {strides = array<i32>} : memref<8x32xf32, #tpu.memory_space<vmem>>, vector<8x32xf32>,
    return
  }
}

</mosaic_0001>

<bundles_post_ra>
// kernel: decoder_forward.1
= control target key start
LH: loop header
LB: loop body
LE: loop exit
PB: predicated region body
PF: predicated region fallthrough
CT: control target
= control target key end

     0   :  { %s3621_s26 = smov 16   ;;  %s3622_s22 = smov 48   ;;  %vm111_vm0 = vcmask 130048   ;;  %vm113_vm1 = vcmask 392192   ;;  %vm5105_vm2 = vcmask 654336   ;;  %v303_v28 = vlaneseq  ;;  %s5088_s4 = inlined_call_operand.vmem [shape: f32[8,32], index: 4, kind: input, shape index: {}]   ;;  %s5089_s7 = inlined_call_operand.vmem [shape: f32[80,128], index: 7, kind: input, shape index: {}]   ;;  %s5090_s8 = inlined_call_operand.vmem [shape: f32[1,128], index: 8, kind: input, shape index: {}]   ;;  %s5091_s5 = inlined_call_operand.vmem [shape: f32[8,32], index: 5, kind: input, shape index: {}]   ;;  %s5092_s0 = inlined_call_operand.vmem [shape: f32[6,8,16], index: 0, kind: input, shape index: {}]   ;;  %s5093_s6 = inlined_call_operand.vmem [shape: f32[8,32], index: 6, kind: input, shape index: {}]   ;;  %s5094_s2 = inlined_call_operand.vmem [shape: f32[8,8,32], index: 2, kind: input, shape index: {}]   ;;  %s5095_s3 = inlined_call_operand.vmem [shape: f32[8,8], index: 3, kind: input, shape index: {}]   ;;  %s5096_s1 = inlined_call_operand.vmem [shape: f32[8,8,32], index: 1, kind: input, shape index: {}]   ;;  %s5097_s10 = inlined_call_operand.vmem [shape: f32[1,32], index: 10, kind: input, shape index: {}]   ;;  %s5098_s9 = inlined_call_operand.vmem [shape: f32[64,32], index: 9, kind: input, shape index: {}]   ;;  %s5099_s11 = inlined_call_operand.vmem [shape: f32[32,128], index: 11, kind: input, shape index: {}]   ;;  %s5100_s12 = inlined_call_operand.vmem [shape: f32[1,128], index: 12, kind: input, shape index: {}]   ;;  %s5101_s13 = inlined_call_operand.vmem [shape: f32[6,8,128], index: 13, kind: output, shape index: {0}]   ;;  %s5102_s14 = inlined_call_operand.vmem [shape: f32[8,32], index: 14, kind: output, shape index: {1}]   ;;  %s5103_s15 = inlined_call_operand.vmem [shape: f32[8,32], index: 15, kind: output, shape index: {2}]   ;;  %s5104_s16 = inlined_call_operand.vmem [shape: f32[8,32], index: 16, kind: output, shape index: {3}]  }
   0x1   :  { %5112 = sst [smem:[#allocation5_spill]] %s5088_s4  ;;  %v74_v1 = vld [vmem:[%s5089_s7 + $0x48] sm:$0xff]  ;;  %v73_v2 = vld [vmem:[%s5089_s7 + $0x40] sm:$0xff]  ;;  %v72_v3 = vld [vmem:[%s5089_s7 + $0x38] sm:$0xff]  ;;  %s3624_s25 = smov 32   ;;  %vm276_vm7 = vcmask 261120  }
   0x2   :  { %s5113_s23 = sld [smem:[#allocation5_spill]]  ;;  %125 = vmatpush.msra.mxu0 %v74_v1  ;;  %755 = vmatpush.msra.mxu3 %v74_v1  ;;  %v71_v4 = vld [vmem:[%s5089_s7 + $0x30] sm:$0xff]  ;;  %v99_v5 = vld [vmem:[%s5091_s5] sm:$0xff]  ;;  %v70_v6 = vld [vmem:[%s5089_s7 + $0x28] sm:$0xff]  ;;  %s3625_s30 = smov 96   ;;  %v304_v30 = vshrl.u32 %v303_v28, 7 }
   0x3   :  { %v69_v7 = vld [vmem:[%s5089_s7 + $0x20] sm:$0xff]  ;;  %v68_v8 = vld [vmem:[%s5089_s7 + $0x18] sm:$0xff]  ;;  %v67_v9 = vld [vmem:[%s5089_s7 + $0x10] sm:$0xff]  ;;  %vm424_vm8 = vcmask 1041409   ;;  %vm426_vm9 = vcmask 1042434   ;;  %vm428_vm10 = vcmask 1043459  }
   0x4   :  { %126 = vmatpush.msra.mxu0 %v73_v2  ;;  %756 = vmatpush.msra.mxu3 %v73_v2  ;;  %v66_v10 = vld [vmem:[%s5089_s7 + $0x8] sm:$0xff]  ;;  %v65_v11 = vld [vmem:[%s5089_s7] sm:$0xff]  ;;  %v59_v31 = vld [vmem:[%s5094_s2 + $0x18] sm:$0xff]  ;;  %vm430_vm11 = vcmask 1044484   ;;  %vm432_vm12 = vcmask 1045509   ;;  %vm434_vm13 = vcmask 1046534  }
   0x5   :  { %v102_v13 = vld [vmem:[%s5092_s0] sm:$0xff]  ;;  %v57_v26 = vld [vmem:[%s5094_s2 + $0x8] sm:$0xff]  ;;  %3390 = vset.pattern.permute.xlu2 %v304_v30  ;;  %3391 = vset.pattern.permute.xlu1 %v304_v30  ;;  %v62_v35 = vld [vmem:[%s5094_s2 + $0x30] sm:$0xff]  ;;  %vm436_vm14 = vcmask 1047559   ;;  %vm439_vm15 = vcmask 64512  }
   0x6   :  { %127 = vmatpush.msra.mxu0 %v72_v3  ;;  %757 = vmatpush.msra.mxu3 %v72_v3  ;;  %v3759_v17 = vld [vmem:[%s5090_s8] ss:$0 sm:$0xff]  ;;  %v63_v36 = vld [vmem:[%s5094_s2 + $0x38] sm:$0xff]  ;;  %v58_v45 = vld [vmem:[%s5094_s2 + $0x10] sm:$0xff] }
   0x7   :  { %v100_v21 = vld [vmem:[%s5093_s6] sm:$0xff]  ;;  %3392 = vset.pattern.permute.xlu0 %v304_v30  ;;  %v61_v46 = vld [vmem:[%s5094_s2 + $0x28] sm:$0xff] }
   0x8   :  { %v101_v0 = vld [vmem:[%s5113_s23] sm:$0xff]  ;;  %128 = vmatpush.msra.mxu0 %v71_v4  ;;  %758 = vmatpush.msra.mxu3 %v71_v4 }
   0x9   :  { %104 = vrot.lane.b32.xlu0 %v101_v0, %s3621_s26  ;;  %v56_v25 = vld [vmem:[%s5094_s2] sm:$0xff] }
   0xa   :  { %129 = vmatpush.msra.mxu0 %v70_v6  ;;  %759 = vmatpush.msra.mxu3 %v70_v6  ;;  %v60_v32 = vld [vmem:[%s5094_s2 + $0x20] sm:$0xff]  ;;  %s3627_s2 = smov 80  }
   0xb   :  { %v3804_v47 = vld [vmem:[%s5095_s3] sm:$0xff] }
   0xc   :  { %130 = vmatpush.msra.mxu0 %v69_v7  ;;  %760 = vmatpush.msra.mxu3 %v69_v7  ;;  %v302_v48 = vperm.slane %v3804_v47, 0  ;;  %v309_v49 = vperm.slane %v3804_v47, 1  ;;  %v323_v55 = vperm.slane %v3804_v47, 3  ;;  %v316_v56 = vperm.slane %v3804_v47, 2 }
   0xd   :  { %v337_v30 = vperm.slane %v3804_v47, 5 }
   0xe   :  { %131 = vmatpush.msra.mxu0 %v68_v8  ;;  %761 = vmatpush.msra.mxu3 %v68_v8 }
  0x10   :  { %132 = vmatpush.msra.mxu0 %v67_v9  ;;  %762 = vmatpush.msra.mxu3 %v67_v9 }
  0x11   :  { %108 = vrot.lane.b32.xlu0 %v99_v5, %s3622_s22  ;;  %s3623_s22 = smov 64  }
  0x12   :  { %133 = vmatpush.msra.mxu0 %v66_v10  ;;  %763 = vmatpush.msra.mxu3 %v66_v10 }
  0x14   :  { %134 = vmatpush.msra.mxu0 %v65_v11  ;;  %764 = vmatpush.msra.mxu3 %v65_v11 }
  0x16   :  { %1273 = vmatpush.msrb.mxu0 %v74_v1 }
  0x18   :  { %1274 = vmatpush.msrb.mxu0 %v73_v2 }
  0x19   :  { %212 = vrot.lane.b32.xlu0 %v56_v25, %s3625_s30 }
  0x1a   :  { %1275 = vmatpush.msrb.mxu0 %v72_v3 }
  0x1c   :  { %1276 = vmatpush.msrb.mxu0 %v71_v4 }
  0x1e   :  { %1277 = vmatpush.msrb.mxu0 %v70_v6 }
  0x20   :  { %1278 = vmatpush.msrb.mxu0 %v69_v7 }
  0x21   :  { %218 = vrot.lane.b32.xlu0 %v59_v31, %s3625_s30  ;;  %v330_v31 = vperm.slane %v3804_v47, 4 }
  0x22   :  { %1279 = vmatpush.msrb.mxu0 %v68_v8 }
  0x24   :  { %1280 = vmatpush.msrb.mxu0 %v67_v9 }
  0x26   :  { %1281 = vmatpush.msrb.mxu0 %v66_v10 }
  0x28   :  { %1282 = vmatpush.msrb.mxu0 %v65_v11 }
  0x29   :  { %224 = vrot.lane.b32.xlu0 %v62_v35, %s3625_s30 }
  0x31   :  { %321 = vperm.xlu0 %3392, %v316_v56  }
  0x7b   :  { %v105_v12 = vpop.permute.xlu0 %104 }
  0x7c   :  { %v112_v14 = vsel %vm111_vm0, %v102_v13, %v105_v12 }
  0x83   :  { %v109_v15 = vpop.permute.xlu0 %108 }
  0x84   :  { %v114_v16 = vsel %vm113_vm1, %v112_v14, %v109_v15 }
  0x85   :  { %3349 = vmatmul.msk.f32.vlgmr.msra.gmra.mxu0 %vm5105_vm2, %v114_v16 }
  0x86   :  { %2309 = vmatpush.msra.mxu0 %v74_v1 }
  0x88   :  { %2310 = vmatpush.msra.mxu0 %v73_v2 }
  0x8a   :  { %2311 = vmatpush.msra.mxu0 %v72_v3 }
  0x8b   :  { %v3820_v60 = vpop.permute.xlu0 %212 }
  0x8c   :  { %2312 = vmatpush.msra.mxu0 %v71_v4 }
  0x8e   :  { %2313 = vmatpush.msra.mxu0 %v70_v6 }
  0x90   :  { %2314 = vmatpush.msra.mxu0 %v69_v7 }
  0x92   :  { %2315 = vmatpush.msra.mxu0 %v68_v8 }
  0x94   :  { %2316 = vmatpush.msra.mxu0 %v67_v9 }
  0x96   :  { %2317 = vmatpush.msra.mxu0 %v66_v10 }
  0x98   :  { %2318 = vmatpush.msra.mxu0 %v65_v11  ;;  %v3836_v11 = vpop.permute.xlu0 %218 }
 0x102   :  { %v136_v18 = vpop.f32.mrf.mxu0 }
 0x103   :  { %v137_v19 = vadd.f32 %v3759_v17, %v136_v18 }
 0x105   :  { %3399 = vtanh.f32 %v137_v19  ;;  %v3350_v22 = vmul.f32 -1.442695, %v137_v19 }
 0x107   :  { %3401 = vpow2.f32 %v3350_v22 }
 0x10b   :  { %v3400_v20 = vpop.eup %3399 }
 0x10c   :  { %165 = vrot.lane.b32.xlu1 %v3400_v20, %s3623_s22 }
 0x10d   :  { %v3402_v23 = vpop.eup %3401 }
 0x10e   :  { %v142_v24 = vadd.f32 1.0, %v3402_v23  ;;  %v3850_v23 = vpop.permute.xlu0 %224 }
 0x110   :  { %3403 = vrcp.f32 %v142_v24  ;;  %v154_v38 = vand.u32 2147483648, %v142_v24  ;;  %vm148_vm4 = vweird.f32 %v142_v24  ;;  %v152_v39 = vand.u32 2147483647, %v142_v24 }
 0x112   :  { %v155_v41 = vor.u32 1.1754944e-38, %v154_v38  ;;  %vm153_vm6 = vcmp.eq.f32.partialorder %v152_v39, 8.507059e+37 }
 0x114   :  { %160 = vrot.lane.b32.xlu1 %v100_v21, %s3624_s25 }
 0x116   :  { %v3404_v27 = vpop.eup %3403 }
 0x117   :  { %v144_v29 = vmul.f32 %v3404_v27, %v142_v24  ;;  %vm149_vm3 = vweird.f32 %v3404_v27 }
 0x118   :  { %vm150_vm5 = vmor %vm148_vm4, %vm149_vm3  ;;  %vm687_vm3 = vcmask 523264  }
 0x119   :  { %v145_v33 = vsub.f32 1.0, %v144_v29 }
 0x11b   :  { %v146_v34 = vmul.f32 %v3404_v27, %v145_v33 }
 0x11c   :  { %214 = vrot.lane.b32.xlu1 %v57_v26, %s3625_s30 }
 0x11d   :  { %v147_v37 = vadd.f32 %v3404_v27, %v146_v34 }
 0x11f   :  { %v151_v40 = vsel %vm150_vm5, %v3404_v27, %v147_v37  ;;  %v344_v27 = vperm.slane %v3804_v47, 6 }
 0x120   :  { %v156_v43 = vsel %vm153_vm6, %v155_v41, %v151_v40 }
 0x124   :  { %220 = vrot.lane.b32.xlu1 %v60_v32, %s3625_s30  ;;  %v351_v32 = vperm.slane %v3804_v47, 7 }
 0x12c   :  { %226 = vrot.lane.b32.xlu1 %v63_v36, %s3625_s30  ;;  %v3865_v36 = vpop.permute.xlu0 %321 }
 0x134   :  { %314 = vperm.xlu1 %3391, %v309_v49  }
 0x13c   :  { %328 = vperm.xlu1 %3391, %v323_v55  }
 0x17e   :  { %v166_v42 = vpop.permute.xlu1 %165 }
 0x17f   :  { %v168_v44 = vmul.f32 %v166_v42, %v156_v43 }
 0x181   :  { %170 = vrot.lane.b32.xlu2 %v168_v44, %s3624_s25 }
 0x186   :  { %v161_v50 = vpop.permute.xlu1 %160 }
 0x187   :  { %v163_v51 = vmul.f32 %v161_v50, %v156_v43 }
 0x189   :  { %216 = vrot.lane.b32.xlu2 %v58_v45, %s3625_s30 }
 0x18e   :  { %v3822_v61 = vpop.permute.xlu1 %214 }
 0x191   :  { %222 = vrot.lane.b32.xlu2 %v61_v46, %s3625_s30 }
 0x196   :  { %v3840_v13 = vpop.permute.xlu1 %220 }
 0x199   :  { %307 = vperm.xlu2 %3390, %v302_v48  }
 0x19e   :  { %v3852_v25 = vpop.permute.xlu1 %226 }
 0x1a6   :  { %v3863_v35 = vpop.permute.xlu1 %314 }
 0x1ae   :  { %v3867_v37 = vpop.permute.xlu1 %328 }
 0x1db   :  { %v171_v52 = vpop.permute.xlu2 %170 }
 0x1dc   :  { %v3808_v53 = vadd.f32 %v171_v52, %v163_v51  ;;  %v3626_v52 = vmov 0  }
 0x1de   :  { %3405 = vtanh.f32 %v3808_v53 }
 0x1e3   :  { %v3814_v57 = vpop.permute.xlu2 %216 }
 0x1e4   :  { %v3406_v54 = vpop.eup %3405 }
 0x1e5   :  { %176 = vrot.lane.b32.xlu2 %v3406_v54, %s3623_s22 }
 0x1eb   :  { %v3816_v58 = vpop.permute.xlu2 %222 }
 0x1f3   :  { %v3818_v59 = vpop.permute.xlu2 %307 }
 0x23f   :  { %v177_v62 = vpop.permute.xlu2 %176 }
 0x240   :  { %v3824_v63 = vmul.f32 %v177_v62, %v156_v43 }
 0x242   :  { %v188_v0 = vperm.slane %v3824_v63, 0  ;;  %v182_v1 = vrot.slane %v3824_v63, 2  ;;  %v181_v2 = vrot.slane %v3824_v63, 1  ;;  %v183_v6 = vrot.slane %v3824_v63, 3 }
 0x243   :  { %v185_v9 = vrot.slane %v3824_v63, 5  ;;  %v184_v10 = vrot.slane %v3824_v63, 4  ;;  %v186_v18 = vrot.slane %v3824_v63, 6  ;;  %v187_v21 = vrot.slane %v3824_v63, 7 }
 0x244   :  { %v236_v3 = vmul.f32 %v3820_v60, %v188_v0  ;;  %v190_v4 = vperm.slane %v182_v1, 0  ;;  %v189_v5 = vperm.slane %v181_v2, 0  ;;  %v191_v12 = vperm.slane %v183_v6, 0 }
 0x245   :  { %v193_v14 = vperm.slane %v185_v9, 0  ;;  %v192_v15 = vperm.slane %v184_v10, 0  ;;  %v194_v22 = vperm.slane %v186_v18, 0  ;;  %v195_v24 = vperm.slane %v187_v21, 0 }
 0x246   :  { %252 = vrot.lane.b32.xlu2 %v236_v3, %s3624_s25  ;;  %v238_v7 = vmul.f32 %v3814_v57, %v190_v4  ;;  %v237_v8 = vmul.f32 %v3822_v61, %v189_v5  ;;  %v239_v16 = vmul.f32 %v3836_v11, %v191_v12 }
 0x247   :  { %v241_v19 = vmul.f32 %v3816_v58, %v193_v14  ;;  %v240_v20 = vmul.f32 %v3840_v13, %v192_v15  ;;  %v242_v26 = vmul.f32 %v3850_v23, %v194_v22  ;;  %v243_v29 = vmul.f32 %v3852_v25, %v195_v24 }
 0x248   :  { %256 = vrot.lane.b32.xlu1 %v238_v7, %s3624_s25  ;;  %254 = vrot.lane.b32.xlu0 %v237_v8, %s3624_s25 }
 0x24e   :  { %258 = vrot.lane.b32.xlu2 %v239_v16, %s3624_s25 }
 0x250   :  { %262 = vrot.lane.b32.xlu1 %v241_v19, %s3624_s25  ;;  %260 = vrot.lane.b32.xlu0 %v240_v20, %s3624_s25 }
 0x256   :  { %264 = vrot.lane.b32.xlu2 %v242_v26, %s3624_s25 }
 0x258   :  { %349 = vperm.xlu1 %3391, %v344_v27   ;;  %266 = vrot.lane.b32.xlu0 %v243_v29, %s3624_s25 }
 0x25e   :  { %342 = vperm.xlu2 %3390, %v337_v30  }
 0x260   :  { %335 = vperm.xlu0 %3392, %v330_v31   ;;  %3395 = vset.pattern.permute.xlu1 %v3626_v52 }
 0x266   :  { %356 = vperm.xlu2 %3390, %v351_v32  }
 0x268   :  { %3394 = vset.pattern.permute.xlu0 %v3626_v52 }
 0x26e   :  { %3393 = vset.pattern.permute.xlu2 %v3626_v52 }
 0x2a0   :  { %v253_v33 = vpop.permute.xlu2 %252 }
 0x2a1   :  { %v277_v34 = vsel %vm276_vm7, %v253_v33, 0.0  ;;  %v3911_v33 = vand.u32 127, %v303_v28 }
 0x2a2   :  { %278 = vadd.xlane.f32.xlu1 %v277_v34 }
 0x2a8   :  { %v259_v42 = vpop.permute.xlu2 %258 }
 0x2a9   :  { %v286_v46 = vsel %vm276_vm7, %v259_v42, 0.0 }
 0x2b0   :  { %v265_v48 = vpop.permute.xlu2 %264 }
 0x2b1   :  { %v295_v50 = vsel %vm276_vm7, %v265_v48, 0.0 }
 0x2b8   :  { %v3882_v0 = vpop.permute.xlu2 %342 }
 0x2b9   :  { %5114 = vst [vmem:[#allocation2_spill] sm:$0xff] %v3882_v0 }
 0x2ba   :  { %v257_v38 = vpop.permute.xlu1 %256  ;;  %v255_v39 = vpop.permute.xlu0 %254 }
 0x2bb   :  { %v283_v40 = vsel %vm276_vm7, %v257_v38, 0.0  ;;  %v280_v41 = vsel %vm276_vm7, %v255_v39, 0.0 }
 0x2bc   :  { %284 = vadd.xlane.f32.xlu0 %v283_v40  ;;  %281 = vadd.xlane.f32.xlu2 %v280_v41 }
 0x2c0   :  { %v3884_v1 = vpop.permute.xlu2 %356 }
 0x2c1   :  { %5115 = vst [vmem:[#allocation3_spill] sm:$0xff] %v3884_v1 }
 0x2c2   :  { %v263_v43 = vpop.permute.xlu1 %262  ;;  %v261_v44 = vpop.permute.xlu0 %260 }
 0x2c3   :  { %v292_v45 = vsel %vm276_vm7, %v263_v43, 0.0  ;;  %v289_v47 = vsel %vm276_vm7, %v261_v44, 0.0 }
 0x2c4   :  { %293 = vadd.xlane.f32.xlu1 %v292_v45  ;;  %287 = vadd.xlane.f32.xlu0 %v286_v46 }
 0x2c5   :  { %290 = vadd.xlane.f32.xlu2 %v289_v47 }
 0x2ca   :  { %v267_v49 = vpop.permute.xlu0 %266  ;;  %v3876_v54 = vpop.permute.xlu1 %349 }
 0x2cb   :  { %v298_v51 = vsel %vm276_vm7, %v267_v49, 0.0 }
 0x2cc   :  { %296 = vadd.xlane.f32.xlu0 %v295_v50  ;;  %299 = vadd.xlane.f32.xlu1 %v298_v51 }
 0x2d2   :  { %v3886_v2 = vpop.permute.xlu0 %335 }
 0x2d3   :  { %5116 = vst [vmem:[#allocation4_spill] sm:$0xff] %v3886_v2 }
 0x315   :  { %v279_v55 = vpop.xlane.xlu1 %278 }
 0x316   :  { %v366_v56 = vadd.f32 %v3818_v59, %v279_v55 }
 0x318   :  { %v3879_v62 = vmul.f32 0.17677669, %v366_v56 }
 0x31a   :  { %391 = vperm.xlu2 %3393, %v3879_v62  }
 0x32f   :  { %v282_v3 = vpop.xlane.xlu2 %281  ;;  %v285_v4 = vpop.xlane.xlu0 %284 }
 0x330   :  { %v367_v5 = vadd.f32 %v3863_v35, %v282_v3  ;;  %v368_v6 = vadd.f32 %v3865_v36, %v285_v4 }
 0x332   :  { %v3890_v7 = vmul.f32 0.17677669, %v367_v5  ;;  %v376_v8 = vmul.f32 0.17677669, %v368_v6 }
 0x334   :  { %394 = vperm.xlu2 %3393, %v3890_v7   ;;  %397 = vperm.xlu0 %3394, %v376_v8  }
 0x337   :  { %v288_v9 = vpop.xlane.xlu0 %287  ;;  %v294_v14 = vpop.xlane.xlu1 %293 }
 0x338   :  { %v291_v10 = vpop.xlane.xlu2 %290  ;;  %v369_v12 = vadd.f32 %v3867_v37, %v288_v9  ;;  %v371_v19 = vadd.f32 %v3882_v0, %v294_v14 }
 0x339   :  { %v370_v15 = vadd.f32 %v3886_v2, %v291_v10 }
 0x33a   :  { %v3895_v16 = vmul.f32 0.17677669, %v369_v12  ;;  %v3900_v22 = vmul.f32 0.17677669, %v371_v19 }
 0x33b   :  { %v378_v18 = vmul.f32 0.17677669, %v370_v15 }
 0x33c   :  { %400 = vperm.xlu1 %3395, %v3895_v16  }
 0x33d   :  { %403 = vperm.xlu2 %3393, %v378_v18  }
 0x33f   :  { %v297_v20 = vpop.xlane.xlu0 %296  ;;  %v300_v26 = vpop.xlane.xlu1 %299 }
 0x340   :  { %v372_v21 = vadd.f32 %v3876_v54, %v297_v20  ;;  %v373_v27 = vadd.f32 %v3884_v1, %v300_v26 }
 0x342   :  { %v3902_v24 = vmul.f32 0.17677669, %v372_v21  ;;  %v3907_v29 = vmul.f32 0.17677669, %v373_v27 }
 0x344   :  { %406 = vperm.xlu1 %3395, %v3900_v22  }
 0x345   :  { %409 = vperm.xlu2 %3393, %v3902_v24  }
 0x34c   :  { %412 = vperm.xlu1 %3395, %v3907_v29  }
 0x374   :  { %v392_v30 = vpop.permute.xlu2 %391 }
 0x375   :  { %v416_v41 = vperm.slane %v392_v30, %v3911_v33 }
 0x38e   :  { %v395_v31 = vpop.permute.xlu2 %394 }
 0x38f   :  { %v417_v39 = vperm.slane %v395_v31, %v3911_v33 }
 0x391   :  { %v425_v44 = vsel %vm424_vm8, %v417_v39, %v416_v41 }
 0x397   :  { %v404_v34 = vpop.permute.xlu2 %403 }
 0x398   :  { %v420_v47 = vperm.slane %v404_v34, %v3911_v33 }
 0x39f   :  { %v410_v48 = vpop.permute.xlu2 %409 }
 0x3a0   :  { %v422_v51 = vperm.slane %v410_v48, %v3911_v33 }
 0x3a6   :  { %v398_v38 = vpop.permute.xlu0 %397 }
 0x3a7   :  { %v418_v40 = vperm.slane %v398_v38, %v3911_v33 }
 0x3a9   :  { %v427_v45 = vsel %vm426_vm9, %v418_v40, %v425_v44 }
 0x3ae   :  { %v401_v32 = vpop.permute.xlu1 %400 }
 0x3af   :  { %v419_v42 = vperm.slane %v401_v32, %v3911_v33 }
 0x3b1   :  { %v429_v28 = vsel %vm428_vm10, %v419_v42, %v427_v45 }
 0x3b2   :  { %v431_v49 = vsel %vm430_vm11, %v420_v47, %v429_v28 }
 0x3b6   :  { %v407_v43 = vpop.permute.xlu1 %406 }
 0x3b7   :  { %v421_v46 = vperm.slane %v407_v43, %v3911_v33 }
 0x3b9   :  { %v433_v50 = vsel %vm432_vm12, %v421_v46, %v431_v49 }
 0x3ba   :  { %v435_v56 = vsel %vm434_vm13, %v422_v51, %v433_v50 }
 0x3be   :  { %v413_v52 = vpop.permute.xlu1 %412 }
 0x3bf   :  { %v423_v55 = vperm.slane %v413_v52, %v3911_v33 }
 0x3c1   :  { %v437_v3 = vsel %vm436_vm14, %v423_v55, %v435_v56 }
 0x3c2   :  { %v440_v4 = vsel %vm439_vm15, %v437_v3, -inf }
 0x3c3   :  { %441 = vmax.xlane.f32.xlu2 %v440_v4 }
 0x436   :  { %v442_v5 = vpop.xlane.xlu2 %441 }
 0x437   :  { %v446_v6 = vperm.slane %v442_v5, 2  ;;  %v444_v9 = vperm.slane %v442_v5, 0  ;;  %v448_v14 = vperm.slane %v442_v5, 4  ;;  %v445_v15 = vperm.slane %v442_v5, 1 }
 0x438   :  { %v450_v30 = vperm.slane %v442_v5, 6  ;;  %v447_v32 = vperm.slane %v442_v5, 3  ;;  %v449_v39 = vperm.slane %v442_v5, 5  ;;  %v451_v44 = vperm.slane %v442_v5, 7 }
 0x439   :  { %v462_v10 = vsub.f32 %v376_v8, %v446_v6  ;;  %v460_v12 = vsub.f32 %v3879_v62, %v444_v9  ;;  %v464_v21 = vsub.f32 %v378_v18, %v448_v14  ;;  %v461_v26 = vsub.f32 %v3890_v7, %v445_v15 }
 0x43a   :  { %v466_v62 = vsub.f32 %v3902_v24, %v450_v30  ;;  %v463_v8 = vsub.f32 %v3895_v16, %v447_v32  ;;  %v465_v42 = vsub.f32 %v3900_v22, %v449_v39  ;;  %v467_v16 = vsub.f32 %v3907_v29, %v451_v44 }
 0x43b   :  { %v472_v19 = vmul.f32 1.442695, %v462_v10  ;;  %v468_v20 = vmul.f32 1.442695, %v460_v12  ;;  %v476_v27 = vmul.f32 1.442695, %v464_v21 }
 0x43c   :  { %v470_v31 = vmul.f32 1.442695, %v461_v26  ;;  %v480_v18 = vmul.f32 1.442695, %v466_v62  ;;  %v474_v7 = vmul.f32 1.442695, %v463_v8 }
 0x43d   :  { %3407 = vpow2.f32 %v472_v19  ;;  %v478_v43 = vmul.f32 1.442695, %v465_v42  ;;  %v482_v24 = vmul.f32 1.442695, %v467_v16 }
 0x43e   :  { %3409 = vpow2.f32 %v468_v20 }
 0x43f   :  { %3411 = vpow2.f32 %v476_v27 }
 0x440   :  { %3413 = vpow2.f32 %v470_v31 }
 0x441   :  { %3415 = vpow2.f32 %v480_v18 }
 0x442   :  { %3417 = vpow2.f32 %v474_v7 }
 0x443   :  { %v3931_v34 = vpop.eup %3407  ;;  %3419 = vpow2.f32 %v478_v43 }
 0x444   :  { %v3933_v38 = vpop.eup %3409  ;;  %499 = vperm.xlu0 %3394, %v3931_v34   ;;  %3421 = vpow2.f32 %v482_v24 }
 0x445   :  { %493 = vperm.xlu1 %3395, %v3933_v38   ;;  %v3412_v40 = vpop.eup %3411 }
 0x446   :  { %v3414_v41 = vpop.eup %3413 }
 0x447   :  { %v3416_v45 = vpop.eup %3415 }
 0x448   :  { %v3418_v28 = vpop.eup %3417 }
 0x449   :  { %v3420_v46 = vpop.eup %3419 }
 0x44a   :  { %v3422_v47 = vpop.eup %3421 }
 0x44c   :  { %505 = vperm.xlu0 %3394, %v3412_v40  }
 0x44d   :  { %496 = vperm.xlu1 %3395, %v3414_v41  }
 0x454   :  { %511 = vperm.xlu0 %3394, %v3416_v45  }
 0x455   :  { %502 = vperm.xlu1 %3395, %v3418_v28  }
 0x45d   :  { %508 = vperm.xlu1 %3395, %v3420_v46  }
 0x465   :  { %514 = vperm.xlu1 %3395, %v3422_v47  }
 0x4b6   :  { %v500_v50 = vpop.permute.xlu0 %499 }
 0x4b7   :  { %v494_v48 = vpop.permute.xlu1 %493  ;;  %v518_v29 = vperm.slane %v500_v50, %v3911_v33 }
 0x4b8   :  { %v516_v55 = vperm.slane %v494_v48, %v3911_v33 }
 0x4be   :  { %v506_v22 = vpop.permute.xlu0 %505 }
 0x4bf   :  { %v497_v49 = vpop.permute.xlu1 %496  ;;  %v520_v10 = vperm.slane %v506_v22, %v3911_v33 }
 0x4c0   :  { %v517_v52 = vperm.slane %v497_v49, %v3911_v33 }
 0x4c2   :  { %v524_v56 = vsel %vm424_vm8, %v517_v52, %v516_v55 }
 0x4c3   :  { %v525_v5 = vsel %vm426_vm9, %v518_v29, %v524_v56 }
 0x4c6   :  { %v512_v12 = vpop.permute.xlu0 %511 }
 0x4c7   :  { %v503_v51 = vpop.permute.xlu1 %502  ;;  %v522_v19 = vperm.slane %v512_v12, %v3911_v33 }
 0x4c8   :  { %v519_v3 = vperm.slane %v503_v51, %v3911_v33 }
 0x4ca   :  { %v526_v6 = vsel %vm428_vm10, %v519_v3, %v525_v5 }
 0x4cb   :  { %v527_v14 = vsel %vm430_vm11, %v520_v10, %v526_v6  ;;  %v3992_v6 = vld [vmem:[%s5096_s1 + $0x18] sm:$0xff] }
 0x4cf   :  { %v509_v4 = vpop.permute.xlu1 %508 }
 0x4d0   :  { %v521_v9 = vperm.slane %v509_v4, %v3911_v33  ;;  %v3986_v4 = vld [vmem:[%s5096_s1 + $0x20] sm:$0xff] }
 0x4d2   :  { %v528_v15 = vsel %vm432_vm12, %v521_v9, %v527_v14 }
 0x4d3   :  { %v529_v26 = vsel %vm434_vm13, %v522_v19, %v528_v15 }
 0x4d7   :  { %v515_v20 = vpop.permute.xlu1 %514 }
 0x4d8   :  { %v523_v21 = vperm.slane %v515_v20, %v3911_v33 }
 0x4da   :  { %v530_v27 = vsel %vm436_vm14, %v523_v21, %v529_v26  ;;  %v3999_v21 = vld [vmem:[%s5098_s9 + $0x38] sm:$0xff]  ;;  %v4004_v26 = vld [vmem:[%s5098_s9 + $0x30] sm:$0xff] }
 0x4db   :  { %v532_v30 = vsel %vm439_vm15, %v530_v27, 0.0  ;;  %699 = vmatpush.msra.mxu1 %v3999_v21  ;;  %1734 = vmatpush.msrb.mxu3 %v3999_v21 }
 0x4dc   :  { %533 = vadd.xlane.f32.xlu2 %v532_v30 }
 0x4dd   :  { %700 = vmatpush.msra.mxu1 %v4004_v26  ;;  %1735 = vmatpush.msrb.mxu3 %v4004_v26 }
 0x54f   :  { %v534_v31 = vpop.xlane.xlu2 %533 }
 0x550   :  { %3423 = vrcp.f32 %v534_v31 }
 0x556   :  { %v3424_v32 = vpop.eup %3423 }
 0x557   :  { %v539_v62 = vperm.slane %v3424_v32, 2  ;;  %v538_v8 = vperm.slane %v3424_v32, 1  ;;  %v537_v18 = vperm.slane %v3424_v32, 0  ;;  %v541_v43 = vperm.slane %v3424_v32, 4 }
 0x558   :  { %v540_v44 = vperm.slane %v3424_v32, 3  ;;  %v543_v48 = vperm.slane %v3424_v32, 6  ;;  %v542_v49 = vperm.slane %v3424_v32, 5  ;;  %v544_v22 = vperm.slane %v3424_v32, 7  ;;  %v4013_v32 = vld [vmem:[%s5098_s9 + $0x28] sm:$0xff] }
 0x559   :  { %v555_v7 = vmul.f32 %v3931_v34, %v539_v62  ;;  %v554_v39 = vmul.f32 %v3414_v41, %v538_v8  ;;  %v553_v42 = vmul.f32 %v3933_v38, %v537_v18  ;;  %v557_v16 = vmul.f32 %v3412_v40, %v541_v43  ;;  %v3966_v38 = vld [vmem:[%s5096_s1 + $0x8] sm:$0xff]  ;;  %v3971_v40 = vld [vmem:[%s5096_s1] sm:$0xff]  ;;  %v3976_v41 = vld [vmem:[%s5096_s1 + $0x10] sm:$0xff]  ;;  %701 = vmatpush.msra.mxu1 %v4013_v32 }
 0x55a   :  { %v556_v24 = vmul.f32 %v3418_v28, %v540_v44  ;;  %v559_v50 = vmul.f32 %v3416_v45, %v543_v48  ;;  %v558_v51 = vmul.f32 %v3420_v46, %v542_v49  ;;  %v560_v34 = vmul.f32 %v3422_v47, %v544_v22  ;;  %v4030_v44 = vld [vmem:[%s5096_s1 + $0x28] sm:$0xff]  ;;  %1736 = vmatpush.msrb.mxu3 %v4013_v32  ;;  %v4037_v48 = vld [vmem:[%s5098_s9 + $0x18] sm:$0xff] }
 0x55b   :  { %573 = vperm.xlu2 %3393, %v555_v7   ;;  %568 = vperm.xlu1 %3395, %v554_v39   ;;  %v4020_v39 = vld [vmem:[%s5096_s1 + $0x30] sm:$0xff] }
 0x55c   :  { %563 = vperm.xlu0 %3394, %v553_v42   ;;  %v4025_v42 = vld [vmem:[%s5098_s9 + $0x20] sm:$0xff] }
 0x55d   :  { %702 = vmatpush.msra.mxu1 %v4025_v42  ;;  %1737 = vmatpush.msrb.mxu3 %v4025_v42 }
 0x55f   :  { %703 = vmatpush.msra.mxu1 %v4037_v48  ;;  %1738 = vmatpush.msrb.mxu3 %v4037_v48 }
 0x563   :  { %583 = vperm.xlu1 %3395, %v557_v16  }
 0x564   :  { %578 = vperm.xlu0 %3394, %v556_v24  }
 0x56b   :  { %593 = vperm.xlu1 %3395, %v559_v50  }
 0x56c   :  { %588 = vperm.xlu0 %3394, %v558_v51  }
 0x573   :  { %665 = vrot.lane.b32.xlu1 %v3824_v63, %s3624_s25 }
 0x574   :  { %598 = vperm.xlu0 %3394, %v560_v34  }
 0x57b   :  { %741 = vrot.lane.b32.xlu1 %v3824_v63, %s3627_s2 }
 0x5b5   :  { %v574_v45 = vpop.permute.xlu2 %573 }
 0x5b6   :  { %v603_v52 = vmul.f32 %v574_v45, %v3976_v41 }
 0x5b8   :  { %v623_v5 = vsel %vm276_vm7, %v603_v52, 0.0 }
 0x5b9   :  { %v624_v19 = vrot.slane %v623_v5, 4 }
 0x5bb   :  { %v625_v7 = vadd.f32 %v624_v19, %v623_v5 }
 0x5bd   :  { %v626_v45 = vrot.slane %v625_v7, 2 }
 0x5cd   :  { %v569_v28 = vpop.permute.xlu1 %568 }
 0x5ce   :  { %v602_v46 = vmul.f32 %v569_v28, %v3966_v38  ;;  %v564_v63 = vpop.permute.xlu0 %563 }
 0x5cf   :  { %v601_v47 = vmul.f32 %v564_v63, %v3971_v40 }
 0x5d0   :  { %v616_v55 = vsel %vm276_vm7, %v602_v46, 0.0  ;;  %v4046_v46 = vld [vmem:[%s5098_s9 + $0x10] sm:$0xff] }
 0x5d1   :  { %v609_v56 = vsel %vm276_vm7, %v601_v47, 0.0  ;;  %v617_v3 = vrot.slane %v616_v55, 4  ;;  %704 = vmatpush.msra.mxu1 %v4046_v46  ;;  %1739 = vmatpush.msrb.mxu3 %v4046_v46 }
 0x5d2   :  { %v610_v29 = vrot.slane %v609_v56, 4 }
 0x5d3   :  { %v618_v10 = vadd.f32 %v617_v3, %v616_v55 }
 0x5d4   :  { %v611_v12 = vadd.f32 %v610_v29, %v609_v56  ;;  %v4055_v56 = vld [vmem:[%s5098_s9 + $0x8] sm:$0xff] }
 0x5d5   :  { %v584_v9 = vpop.permute.xlu1 %583  ;;  %v619_v62 = vrot.slane %v618_v10, 2  ;;  %705 = vmatpush.msra.mxu1 %v4055_v56  ;;  %1740 = vmatpush.msrb.mxu3 %v4055_v56 }
 0x5d6   :  { %v605_v14 = vmul.f32 %v584_v9, %v3986_v4  ;;  %v579_v15 = vpop.permute.xlu0 %578  ;;  %v612_v8 = vrot.slane %v611_v12, 2 }
 0x5d7   :  { %v604_v20 = vmul.f32 %v579_v15, %v3992_v6  ;;  %v620_v49 = vadd.f32 %v619_v62, %v618_v10  ;;  %v627_v10 = vadd.f32 %v626_v45, %v625_v7  ;;  %v4062_v15 = vld [vmem:[%s5096_s1 + $0x38] sm:$0xff] }
 0x5d8   :  { %v637_v27 = vsel %vm276_vm7, %v605_v14, 0.0  ;;  %v613_v50 = vadd.f32 %v612_v8, %v611_v12 }
 0x5d9   :  { %v638_v30 = vrot.slane %v637_v27, 4  ;;  %v630_v31 = vsel %vm276_vm7, %v604_v20, 0.0  ;;  %v621_v3 = vrot.slane %v620_v49, 1 }
 0x5da   :  { %v631_v18 = vrot.slane %v630_v31, 4  ;;  %v614_v29 = vrot.slane %v613_v50, 1 }
 0x5db   :  { %v639_v16 = vadd.f32 %v638_v30, %v637_v27  ;;  %v622_v27 = vadd.f32 %v621_v3, %v620_v49 }
 0x5dc   :  { %v632_v43 = vadd.f32 %v631_v18, %v630_v31  ;;  %v615_v30 = vadd.f32 %v614_v29, %v613_v50  ;;  %v628_v18 = vrot.slane %v627_v10, 1 }
 0x5dd   :  { %v594_v24 = vpop.permute.xlu1 %593  ;;  %v640_v47 = vrot.slane %v639_v16, 2 }
 0x5de   :  { %v633_v51 = vrot.slane %v632_v43, 2  ;;  %v607_v22 = vmul.f32 %v594_v24, %v4020_v39  ;;  %v589_v34 = vpop.permute.xlu0 %588 }
 0x5df   :  { %v606_v28 = vmul.f32 %v589_v34, %v4030_v44  ;;  %v641_v19 = vadd.f32 %v640_v47, %v639_v16  ;;  %v676_v34 = vsel %vm424_vm8, %v622_v27, %v615_v30  ;;  %v629_v16 = vadd.f32 %v628_v18, %v627_v10  ;;  %v4088_v18 = vld [vmem:[%s5099_s11 + $0x18] sm:$0xff] }
 0x5e0   :  { %v651_v63 = vsel %vm276_vm7, %v607_v22, 0.0  ;;  %v634_v5 = vadd.f32 %v633_v51, %v632_v43  ;;  %727 = vmatpush.msra.mxu2 %v4088_v18 }
 0x5e1   :  { %v652_v52 = vrot.slane %v651_v63, 4  ;;  %v644_v55 = vsel %vm276_vm7, %v606_v28, 0.0  ;;  %v642_v24 = vrot.slane %v641_v19, 1 }
 0x5e2   :  { %v645_v9 = vrot.slane %v644_v55, 4  ;;  %v635_v31 = vrot.slane %v634_v5, 1 }
 0x5e3   :  { %v653_v12 = vadd.f32 %v652_v52, %v651_v63  ;;  %v643_v49 = vadd.f32 %v642_v24, %v641_v19  ;;  %v677_v52 = vsel %vm426_vm9, %v629_v16, %v676_v34  ;;  %v4079_v19 = vld [vmem:[%s5098_s9] sm:$0xff]  ;;  %v3569_v16 = vld [vmem:[%s5089_s7 + $0x38] sm:$0xff] }
 0x5e4   :  { %v646_v14 = vadd.f32 %v645_v9, %v644_v55  ;;  %v636_v45 = vadd.f32 %v635_v31, %v634_v5  ;;  %706 = vmatpush.msra.mxu1 %v4079_v19  ;;  %1741 = vmatpush.msrb.mxu3 %v4079_v19  ;;  %v4107_v24 = vld [vmem:[%s5099_s11] sm:$0xff] }
 0x5e5   :  { %v654_v20 = vrot.slane %v653_v12, 2  ;;  %v666_v31 = vpop.permute.xlu1 %665 }
 0x5e6   :  { %v647_v62 = vrot.slane %v646_v14, 2  ;;  %v599_v8 = vpop.permute.xlu0 %598  ;;  %v678_v29 = vsel %vm428_vm10, %v636_v45, %v677_v52  ;;  %1244 = vmatpush.msrb.mxu1 %v4088_v18  ;;  %v3573_v52 = vld [vmem:[%s5089_s7 + $0x18] sm:$0xff] }
 0x5e7   :  { %v608_v7 = vmul.f32 %v599_v8, %v4062_v15  ;;  %v655_v51 = vadd.f32 %v654_v20, %v653_v12  ;;  %v679_v12 = vsel %vm430_vm11, %v643_v49, %v678_v29  ;;  %v3571_v49 = vld [vmem:[%s5089_s7 + $0x28] sm:$0xff]  ;;  %v3576_v29 = vld [vmem:[%s5089_s7] sm:$0xff] }
 0x5e8   :  { %v648_v43 = vadd.f32 %v647_v62, %v646_v14 }
 0x5e9   :  { %v658_v22 = vsel %vm276_vm7, %v608_v7, 0.0  ;;  %v656_v50 = vrot.slane %v655_v51, 1  ;;  %v4093_v7 = vld [vmem:[%s5099_s11 + $0x10] sm:$0xff] }
 0x5ea   :  { %v649_v28 = vrot.slane %v648_v43, 1  ;;  %v659_v63 = vrot.slane %v658_v22, 4  ;;  %728 = vmatpush.msra.mxu2 %v4093_v7  ;;  %1245 = vmatpush.msrb.mxu1 %v4093_v7 }
 0x5eb   :  { %v657_v14 = vadd.f32 %v656_v50, %v655_v51  ;;  %v4128_v51 = vld [vmem:[%s5097_s10] ss:$0 sm:$0xff] }
 0x5ec   :  { %v660_v47 = vadd.f32 %v659_v63, %v658_v22  ;;  %v650_v55 = vadd.f32 %v649_v28, %v648_v43  ;;  %v4100_v43 = vld [vmem:[%s5099_s11 + $0x8] sm:$0xff]  ;;  %v3568_v63 = vld [vmem:[%s5089_s7 + $0x40] sm:$0xff] }
 0x5ed   :  { %729 = vmatpush.msra.mxu2 %v4100_v43  ;;  %1246 = vmatpush.msrb.mxu1 %v4100_v43  ;;  %v3567_v28 = vld [vmem:[%s5089_s7 + $0x48] sm:$0xff]  ;;  %v3572_v50 = vld [vmem:[%s5089_s7 + $0x20] sm:$0xff] }
 0x5ee   :  { %v661_v3 = vrot.slane %v660_v47, 2  ;;  %v680_v27 = vsel %vm432_vm12, %v650_v55, %v679_v12  ;;  %v3574_v55 = vld [vmem:[%s5089_s7 + $0x10] sm:$0xff]  ;;  %v742_v12 = vpop.permute.xlu1 %741 }
 0x5ef   :  { %v681_v30 = vsel %vm434_vm13, %v657_v14, %v680_v27  ;;  %730 = vmatpush.msra.mxu2 %v4107_v24  ;;  %1247 = vmatpush.msrb.mxu1 %v4107_v24 }
 0x5f0   :  { %v662_v9 = vadd.f32 %v661_v3, %v660_v47  ;;  %v3570_v47 = vld [vmem:[%s5089_s7 + $0x30] sm:$0xff]  ;;  %v3575_v3 = vld [vmem:[%s5089_s7 + $0x8] sm:$0xff] }
 0x5f1   :  { %1216 = vmatpush.msrb.mxu2 %v3999_v21 }
 0x5f2   :  { %v663_v20 = vrot.slane %v662_v9, 1 }
 0x5f3   :  { %1217 = vmatpush.msrb.mxu2 %v4004_v26 }
 0x5f4   :  { %v664_v5 = vadd.f32 %v663_v20, %v662_v9  ;;  %v3353_v9 = vld [vmem:[%s5092_s0 + $0x8] sm:$0xff] }
 0x5f5   :  { %1218 = vmatpush.msrb.mxu2 %v4013_v32 }
 0x5f6   :  { %v682_v10 = vsel %vm436_vm14, %v664_v5, %v681_v30  ;;  %v4176_v5 = vld [vmem:[%s5100_s12] ss:$0 sm:$0xff] }
 0x5f7   :  { %683 = vrot.lane.b32.xlu2 %v682_v10, %s3624_s25  ;;  %1219 = vmatpush.msrb.mxu2 %v4025_v42 }
 0x5f9   :  { %1220 = vmatpush.msrb.mxu2 %v4037_v48 }
 0x5fb   :  { %1221 = vmatpush.msrb.mxu2 %v4046_v46 }
 0x5fd   :  { %1222 = vmatpush.msrb.mxu2 %v4055_v56 }
 0x5ff   :  { %1223 = vmatpush.msrb.mxu2 %v4079_v19 }
 0x651   :  { %v684_v62 = vpop.permute.xlu2 %683 }
 0x652   :  { %v686_v8 = vsel %vm276_vm7, %v666_v31, %v684_v62 }
 0x653   :  { %3351 = vmatmul.msk.f32.vlgmr.msra.gmra.mxu1 %vm687_vm3, %v686_v8 }
 0x654   :  { %1762 = vmatpush.msra.mxu1 %v4088_v18 }
 0x656   :  { %1763 = vmatpush.msra.mxu1 %v4093_v7 }
 0x658   :  { %1764 = vmatpush.msra.mxu1 %v4100_v43 }
 0x65a   :  { %1765 = vmatpush.msra.mxu1 %v4107_v24 }
 0x6d0   :  { %v708_v22 = vpop.f32.mrf.mxu1 }
 0x6d1   :  { %v709_v34 = vadd.f32 %v4128_v51, %v708_v22 }
 0x6d3   :  { %3425 = vtanh.f32 %v709_v34 }
 0x6d9   :  { %v3426_v45 = vpop.eup %3425 }
 0x6da   :  { %738 = vrot.lane.b32.xlu0 %v3426_v45, %s3621_s26  ;;  %3352 = vmatmul.msk.f32.vlgmr.msra.gmra.mxu2 %vm276_vm7, %v3426_v45 }
 0x6db   :  { %1791 = vmatpush.msra.mxu2 %v3567_v28 }
 0x6dd   :  { %1792 = vmatpush.msra.mxu2 %v3568_v63 }
 0x6df   :  { %1793 = vmatpush.msra.mxu2 %v3569_v16 }
 0x6e1   :  { %1794 = vmatpush.msra.mxu2 %v3570_v47 }
 0x6e3   :  { %1795 = vmatpush.msra.mxu2 %v3571_v49 }
 0x6e5   :  { %1796 = vmatpush.msra.mxu2 %v3572_v50 }
 0x6e7   :  { %1797 = vmatpush.msra.mxu2 %v3573_v52 }
 0x6e9   :  { %1798 = vmatpush.msra.mxu2 %v3574_v55 }
 0x6eb   :  { %1799 = vmatpush.msra.mxu2 %v3575_v3 }
 0x6ed   :  { %1800 = vmatpush.msra.mxu2 %v3576_v29 }
 0x74c   :  { %v739_v14 = vpop.permute.xlu0 %738 }
 0x74d   :  { %v744_v20 = vsel %vm111_vm0, %v3353_v9, %v739_v14 }
 0x74e   :  { %v745_v27 = vsel %vm113_vm1, %v744_v20, %v742_v12 }
 0x74f   :  { %3354 = vmatmul.msk.f32.vlgmr.msra.gmra.mxu3 %vm5105_vm2, %v745_v27 }
 0x750   :  { %2280 = vmatpush.msra.mxu3 %v4088_v18 }
 0x752   :  { %2281 = vmatpush.msra.mxu3 %v4093_v7 }
 0x754   :  { %2282 = vmatpush.msra.mxu3 %v4100_v43 }
 0x756   :  { %2283 = vmatpush.msra.mxu3 %v4107_v24 }
 0x75d   :  { %v732_v30 = vpop.f32.mrf.mxu2 }
 0x75e   :  { %v733_v10 = vadd.f32 %v4176_v5, %v732_v30 }
 0x760   :  { %735 = vst [vmem:[%s5101_s13] sm:$0xff] %v733_v10 }
 0x7d2   :  { %v766_v31 = vpop.f32.mrf.mxu3 }
 0x7d3   :  { %v767_v62 = vadd.f32 %v3759_v17, %v766_v31 }
 0x7d5   :  { %3427 = vtanh.f32 %v767_v62  ;;  %v3355_v22 = vmul.f32 -1.442695, %v767_v62 }
 0x7d7   :  { %3429 = vpow2.f32 %v3355_v22 }
 0x7db   :  { %v3428_v8 = vpop.eup %3427 }
 0x7dc   :  { %791 = vrot.lane.b32.xlu2 %v3428_v8, %s3623_s22 }
 0x7dd   :  { %v3430_v34 = vpop.eup %3429 }
 0x7de   :  { %v772_v45 = vadd.f32 1.0, %v3430_v34 }
 0x7e0   :  { %3431 = vrcp.f32 %v772_v45  ;;  %v784_v50 = vand.u32 2147483648, %v772_v45  ;;  %vm778_vm5 = vweird.f32 %v772_v45  ;;  %v782_v52 = vand.u32 2147483647, %v772_v45 }
 0x7e2   :  { %v785_v55 = vor.u32 1.1754944e-38, %v784_v50  ;;  %vm783_vm2 = vcmp.eq.f32.partialorder %v782_v52, 8.507059e+37 }
 0x7e6   :  { %v3432_v28 = vpop.eup %3431 }
 0x7e7   :  { %v774_v63 = vmul.f32 %v3432_v28, %v772_v45  ;;  %vm779_vm4 = vweird.f32 %v3432_v28 }
 0x7e8   :  { %vm780_vm6 = vmor %vm778_vm5, %vm779_vm4 }
 0x7e9   :  { %v775_v16 = vsub.f32 1.0, %v774_v63 }
 0x7eb   :  { %v776_v47 = vmul.f32 %v3432_v28, %v775_v16 }
 0x7ed   :  { %v777_v49 = vadd.f32 %v3432_v28, %v776_v47 }
 0x7ef   :  { %v781_v17 = vsel %vm780_vm6, %v3432_v28, %v777_v49 }
 0x7f0   :  { %v786_v29 = vsel %vm783_vm2, %v785_v55, %v781_v17  ;;  %vm5117_vm2 = vcmask 654336  }
 0x7f1   :  { %v789_v14 = vmul.f32 %v786_v29, %v3808_v53 }
 0x836   :  { %v792_v3 = vpop.permute.xlu2 %791 }
 0x837   :  { %v794_v9 = vmul.f32 %v792_v3, %v786_v29 }
 0x839   :  { %796 = vrot.lane.b32.xlu0 %v794_v9, %s3624_s25 }
 0x8ab   :  { %v797_v12 = vpop.permute.xlu0 %796 }
 0x8ac   :  { %v4186_v20 = vadd.f32 %v797_v12, %v789_v14 }
 0x8ae   :  { %3433 = vtanh.f32 %v4186_v20 }
 0x8b4   :  { %v3434_v27 = vpop.eup %3433 }
 0x8b5   :  { %802 = vrot.lane.b32.xlu1 %v3434_v27, %s3623_s22 }
 0x927   :  { %v803_v30 = vpop.permute.xlu1 %802 }
 0x928   :  { %v4190_v10 = vmul.f32 %v803_v30, %v786_v29 }
 0x92a   :  { %v814_v31 = vperm.slane %v4190_v10, 0  ;;  %v808_v62 = vrot.slane %v4190_v10, 2  ;;  %v807_v8 = vrot.slane %v4190_v10, 1  ;;  %v809_v45 = vrot.slane %v4190_v10, 3 }
 0x92b   :  { %v811_v16 = vrot.slane %v4190_v10, 5  ;;  %v810_v47 = vrot.slane %v4190_v10, 4  ;;  %v812_v55 = vrot.slane %v4190_v10, 6  ;;  %v813_v9 = vrot.slane %v4190_v10, 7 }
 0x92c   :  { %v830_v22 = vmul.f32 %v814_v31, %v3820_v60  ;;  %v816_v53 = vperm.slane %v808_v62, 0  ;;  %v815_v34 = vperm.slane %v807_v8, 0  ;;  %v817_v49 = vperm.slane %v809_v45, 0 }
 0x92d   :  { %v819_v50 = vperm.slane %v811_v16, 0  ;;  %v818_v52 = vperm.slane %v810_v47, 0  ;;  %v820_v14 = vperm.slane %v812_v55, 0  ;;  %v821_v12 = vperm.slane %v813_v9, 0 }
 0x92e   :  { %846 = vrot.lane.b32.xlu2 %v830_v22, %s3624_s25  ;;  %v832_v28 = vmul.f32 %v816_v53, %v3814_v57  ;;  %v831_v63 = vmul.f32 %v815_v34, %v3822_v61  ;;  %v833_v17 = vmul.f32 %v817_v49, %v3836_v11 }
 0x92f   :  { %v835_v3 = vmul.f32 %v819_v50, %v3816_v58  ;;  %v834_v29 = vmul.f32 %v818_v52, %v3840_v13  ;;  %v836_v27 = vmul.f32 %v820_v14, %v3850_v23  ;;  %v837_v30 = vmul.f32 %v821_v12, %v3852_v25 }
 0x930   :  { %850 = vrot.lane.b32.xlu1 %v832_v28, %s3624_s25  ;;  %848 = vrot.lane.b32.xlu0 %v831_v63, %s3624_s25 }
 0x936   :  { %852 = vrot.lane.b32.xlu2 %v833_v17, %s3624_s25 }
 0x938   :  { %856 = vrot.lane.b32.xlu1 %v835_v3, %s3624_s25  ;;  %854 = vrot.lane.b32.xlu0 %v834_v29, %s3624_s25 }
 0x93e   :  { %858 = vrot.lane.b32.xlu2 %v836_v27, %s3624_s25 }
 0x940   :  { %860 = vrot.lane.b32.xlu0 %v837_v30, %s3624_s25 }
 0x988   :  { %v847_v31 = vpop.permute.xlu2 %846 }
 0x989   :  { %v870_v62 = vsel %vm276_vm7, %v847_v31, 0.0 }
 0x98a   :  { %871 = vadd.xlane.f32.xlu1 %v870_v62 }
 0x990   :  { %v853_v8 = vpop.permute.xlu2 %852 }
 0x991   :  { %v879_v22 = vsel %vm276_vm7, %v853_v8, 0.0 }
 0x992   :  { %880 = vadd.xlane.f32.xlu1 %v879_v22 }
 0x998   :  { %v859_v53 = vpop.permute.xlu2 %858 }
 0x999   :  { %v888_v34 = vsel %vm276_vm7, %v859_v53, 0.0 }
 0x99a   :  { %889 = vadd.xlane.f32.xlu1 %v888_v34 }
 0x9a2   :  { %v851_v45 = vpop.permute.xlu1 %850  ;;  %v849_v28 = vpop.permute.xlu0 %848 }
 0x9a3   :  { %v876_v63 = vsel %vm276_vm7, %v851_v45, 0.0  ;;  %v873_v16 = vsel %vm276_vm7, %v849_v28, 0.0 }
 0x9a4   :  { %877 = vadd.xlane.f32.xlu0 %v876_v63  ;;  %874 = vadd.xlane.f32.xlu2 %v873_v16 }
 0x9aa   :  { %v857_v47 = vpop.permute.xlu1 %856  ;;  %v855_v49 = vpop.permute.xlu0 %854 }
 0x9ab   :  { %v885_v50 = vsel %vm276_vm7, %v857_v47, 0.0  ;;  %v882_v52 = vsel %vm276_vm7, %v855_v49, 0.0 }
 0x9ac   :  { %886 = vadd.xlane.f32.xlu0 %v885_v50  ;;  %883 = vadd.xlane.f32.xlu2 %v882_v52 }
 0x9b2   :  { %v861_v17 = vpop.permute.xlu0 %860 }
 0x9b3   :  { %v891_v55 = vsel %vm276_vm7, %v861_v17, 0.0 }
 0x9b4   :  { %892 = vadd.xlane.f32.xlu2 %v891_v55 }
 0x9fd   :  { %v872_v3 = vpop.xlane.xlu1 %871 }
 0x9fe   :  { %v894_v29 = vadd.f32 %v872_v3, %v3818_v59 }
 0xa00   :  { %v902_v9 = vmul.f32 0.17677669, %v894_v29 }
 0xa02   :  { %919 = vperm.xlu0 %3394, %v902_v9  }
 0xa05   :  { %v881_v14 = vpop.xlane.xlu1 %880 }
 0xa06   :  { %v897_v12 = vadd.f32 %v881_v14, %v3867_v37 }
 0xa08   :  { %v905_v27 = vmul.f32 0.17677669, %v897_v12 }
 0xa0a   :  { %928 = vperm.xlu0 %3394, %v905_v27  }
 0xa0d   :  { %v890_v34 = vpop.xlane.xlu1 %889 }
 0xa0e   :  { %v900_v45 = vadd.f32 %v890_v34, %v3876_v54 }
 0xa10   :  { %v4231_v49 = vmul.f32 0.17677669, %v900_v45 }
 0xa17   :  { %v875_v30 = vpop.xlane.xlu2 %874  ;;  %v878_v31 = vpop.xlane.xlu0 %877 }
 0xa18   :  { %v895_v62 = vadd.f32 %v875_v30, %v3863_v35  ;;  %v896_v8 = vadd.f32 %v878_v31, %v3865_v36 }
 0xa1a   :  { %v903_v22 = vmul.f32 0.17677669, %v895_v62  ;;  %v904_v53 = vmul.f32 0.17677669, %v896_v8 }
 0xa1c   :  { %922 = vperm.xlu1 %3395, %v903_v22   ;;  %925 = vperm.xlu2 %3393, %v904_v53  }
 0xa1f   :  { %v884_v28 = vpop.xlane.xlu2 %883  ;;  %v887_v63 = vpop.xlane.xlu0 %886 }
 0xa20   :  { %v898_v16 = vadd.f32 %v884_v28, %v3886_v2  ;;  %v899_v47 = vadd.f32 %v887_v63, %v3882_v0 }
 0xa22   :  { %v906_v50 = vmul.f32 0.17677669, %v898_v16  ;;  %v907_v52 = vmul.f32 0.17677669, %v899_v47 }
 0xa24   :  { %931 = vperm.xlu1 %3395, %v906_v50   ;;  %937 = vperm.xlu2 %3393, %v4231_v49  }
 0xa25   :  { %934 = vperm.xlu0 %3394, %v907_v52  }
 0xa27   :  { %v893_v17 = vpop.xlane.xlu2 %892 }
 0xa28   :  { %v901_v55 = vadd.f32 %v893_v17, %v3884_v1 }
 0xa2a   :  { %v909_v3 = vmul.f32 0.17677669, %v901_v55 }
 0xa2c   :  { %940 = vperm.xlu1 %3395, %v909_v3  }
 0xa74   :  { %v920_v29 = vpop.permute.xlu0 %919 }
 0xa75   :  { %v942_v31 = vperm.slane %v920_v29, %v3911_v33 }
 0xa76   :  { %v926_v62 = vpop.permute.xlu2 %925 }
 0xa77   :  { %v944_v34 = vperm.slane %v926_v62, %v3911_v33 }
 0xa7c   :  { %v929_v12 = vpop.permute.xlu0 %928 }
 0xa7d   :  { %v945_v63 = vperm.slane %v929_v12, %v3911_v33 }
 0xa7e   :  { %v938_v29 = vpop.permute.xlu2 %937 }
 0xa8e   :  { %v923_v14 = vpop.permute.xlu1 %922 }
 0xa8f   :  { %v943_v30 = vperm.slane %v923_v14, %v3911_v33 }
 0xa91   :  { %v950_v8 = vsel %vm424_vm8, %v943_v30, %v942_v31  ;;  %v948_v30 = vperm.slane %v938_v29, %v3911_v33 }
 0xa92   :  { %v951_v45 = vsel %vm426_vm9, %v944_v34, %v950_v8 }
 0xa93   :  { %v952_v17 = vsel %vm428_vm10, %v945_v63, %v951_v45 }
 0xa96   :  { %v932_v28 = vpop.permute.xlu1 %931 }
 0xa97   :  { %v946_v16 = vperm.slane %v932_v28, %v3911_v33  ;;  %v935_v47 = vpop.permute.xlu0 %934 }
 0xa98   :  { %v947_v55 = vperm.slane %v935_v47, %v3911_v33 }
 0xa99   :  { %v953_v14 = vsel %vm430_vm11, %v946_v16, %v952_v17 }
 0xa9a   :  { %v954_v1 = vsel %vm432_vm12, %v947_v55, %v953_v14 }
 0xa9b   :  { %v955_v8 = vsel %vm434_vm13, %v948_v30, %v954_v1 }
 0xa9e   :  { %v941_v31 = vpop.permute.xlu1 %940 }
 0xa9f   :  { %v949_v62 = vperm.slane %v941_v31, %v3911_v33 }
 0xaa1   :  { %v956_v12 = vsel %vm436_vm14, %v949_v62, %v955_v8 }
 0xaa2   :  { %v958_v34 = vsel %vm439_vm15, %v956_v12, -inf }
 0xaa3   :  { %959 = vmax.xlane.f32.xlu0 %v958_v34 }
 0xb16   :  { %v960_v45 = vpop.xlane.xlu0 %959 }
 0xb17   :  { %v963_v28 = vperm.slane %v960_v45, 1  ;;  %v962_v63 = vperm.slane %v960_v45, 0  ;;  %v965_v17 = vperm.slane %v960_v45, 3  ;;  %v964_v0 = vperm.slane %v960_v45, 2 }
 0xb18   :  { %v967_v1 = vperm.slane %v960_v45, 5  ;;  %v966_v62 = vperm.slane %v960_v45, 4 }
 0xb19   :  { %v979_v47 = vsub.f32 %v903_v22, %v963_v28  ;;  %v978_v16 = vsub.f32 %v902_v9, %v962_v63  ;;  %v981_v29 = vsub.f32 %v905_v27, %v965_v17  ;;  %v980_v31 = vsub.f32 %v904_v53, %v964_v0 }
 0xb1a   :  { %v983_v9 = vsub.f32 %v907_v52, %v967_v1  ;;  %v982_v22 = vsub.f32 %v906_v50, %v966_v62  ;;  %v969_v27 = vperm.slane %v960_v45, 7  ;;  %v968_v0 = vperm.slane %v960_v45, 6 }
 0xb1b   :  { %v988_v55 = vmul.f32 1.442695, %v979_v47  ;;  %v986_v14 = vmul.f32 1.442695, %v978_v16  ;;  %v992_v2 = vmul.f32 1.442695, %v981_v29 }
 0xb1c   :  { %v990_v30 = vmul.f32 1.442695, %v980_v31  ;;  %v996_v34 = vmul.f32 1.442695, %v983_v9  ;;  %v994_v28 = vmul.f32 1.442695, %v982_v22  ;;  %v985_v47 = vsub.f32 %v909_v3, %v969_v27 }
 0xb1d   :  { %3435 = vpow2.f32 %v988_v55  ;;  %v984_v16 = vsub.f32 %v4231_v49, %v968_v0 }
 0xb1e   :  { %3437 = vpow2.f32 %v986_v14  ;;  %v1000_v17 = vmul.f32 1.442695, %v985_v47 }
 0xb1f   :  { %3439 = vpow2.f32 %v992_v2  ;;  %v998_v2 = vmul.f32 1.442695, %v984_v16 }
 0xb20   :  { %3441 = vpow2.f32 %v990_v30 }
 0xb21   :  { %3443 = vpow2.f32 %v996_v34 }
 0xb22   :  { %3445 = vpow2.f32 %v994_v28 }
 0xb23   :  { %v4251_v8 = vpop.eup %3435  ;;  %3447 = vpow2.f32 %v1000_v17 }
 0xb24   :  { %v4253_v12 = vpop.eup %3437  ;;  %1014 = vperm.xlu1 %3395, %v4251_v8   ;;  %3449 = vpow2.f32 %v998_v2 }
 0xb25   :  { %1011 = vperm.xlu2 %3393, %v4253_v12   ;;  %v4257_v53 = vpop.eup %3439 }
 0xb26   :  { %v3442_v63 = vpop.eup %3441 }
 0xb27   :  { %v3444_v52 = vpop.eup %3443 }
 0xb28   :  { %v3446_v55 = vpop.eup %3445 }
 0xb29   :  { %v3448_v50 = vpop.eup %3447 }
 0xb2a   :  { %v3450_v45 = vpop.eup %3449 }
 0xb2c   :  { %1020 = vperm.xlu1 %3395, %v4257_v53  }
 0xb2d   :  { %1017 = vperm.xlu2 %3393, %v3442_v63  }
 0xb34   :  { %1026 = vperm.xlu1 %3395, %v3444_v52  }
 0xb35   :  { %1023 = vperm.xlu2 %3393, %v3446_v55  }
 0xb3c   :  { %1032 = vperm.xlu1 %3395, %v3448_v50  }
 0xb3d   :  { %1029 = vperm.xlu2 %3393, %v3450_v45  }
 0xb7f   :  { %v1012_v14 = vpop.permute.xlu2 %1011 }
 0xb80   :  { %v1034_v49 = vperm.slane %v1012_v14, %v3911_v33 }
 0xb87   :  { %v1018_v31 = vpop.permute.xlu2 %1017 }
 0xb88   :  { %v1036_v22 = vperm.slane %v1018_v31, %v3911_v33 }
 0xb8f   :  { %v1024_v3 = vpop.permute.xlu2 %1023 }
 0xb90   :  { %v1038_v47 = vperm.slane %v1024_v3, %v3911_v33 }
 0xb96   :  { %v1015_v29 = vpop.permute.xlu1 %1014 }
 0xb97   :  { %v1035_v30 = vperm.slane %v1015_v29, %v3911_v33  ;;  %v1030_v16 = vpop.permute.xlu2 %1029 }
 0xb98   :  { %v1040_v14 = vperm.slane %v1030_v16, %v3911_v33 }
 0xb99   :  { %v1042_v62 = vsel %vm424_vm8, %v1035_v30, %v1034_v49 }
 0xb9a   :  { %v1043_v27 = vsel %vm426_vm9, %v1036_v22, %v1042_v62 }
 0xb9e   :  { %v1021_v1 = vpop.permute.xlu1 %1020 }
 0xb9f   :  { %v1037_v9 = vperm.slane %v1021_v1, %v3911_v33 }
 0xba1   :  { %v1044_v28 = vsel %vm428_vm10, %v1037_v9, %v1043_v27 }
 0xba2   :  { %v1045_v17 = vsel %vm430_vm11, %v1038_v47, %v1044_v28 }
 0xba6   :  { %v1027_v34 = vpop.permute.xlu1 %1026 }
 0xba7   :  { %v1039_v0 = vperm.slane %v1027_v34, %v3911_v33 }
 0xba9   :  { %v1046_v2 = vsel %vm432_vm12, %v1039_v0, %v1045_v17 }
 0xbaa   :  { %v1047_v31 = vsel %vm434_vm13, %v1040_v14, %v1046_v2 }
 0xbae   :  { %v1033_v29 = vpop.permute.xlu1 %1032 }
 0xbaf   :  { %v1041_v1 = vperm.slane %v1033_v29, %v3911_v33 }
 0xbb1   :  { %v1048_v30 = vsel %vm436_vm14, %v1041_v1, %v1047_v31 }
 0xbb2   :  { %v1050_v49 = vsel %vm439_vm15, %v1048_v30, 0.0 }
 0xbb3   :  { %1051 = vadd.xlane.f32.xlu2 %v1050_v49 }
 0xbcb   :  { %1183 = vrot.lane.b32.xlu2 %v4190_v10, %s3624_s25 }
 0xc26   :  { %v1052_v3 = vpop.xlane.xlu2 %1051 }
 0xc27   :  { %3451 = vrcp.f32 %v1052_v3 }
 0xc2d   :  { %v3452_v62 = vpop.eup %3451 }
 0xc2e   :  { %v1056_v9 = vperm.slane %v3452_v62, 1  ;;  %v1055_v22 = vperm.slane %v3452_v62, 0  ;;  %v1059_v28 = vperm.slane %v3452_v62, 4  ;;  %v1057_v0 = vperm.slane %v3452_v62, 2 }
 0xc2f   :  { %v1061_v17 = vperm.slane %v3452_v62, 6  ;;  %v1058_v2 = vperm.slane %v3452_v62, 3  ;;  %v1060_v1 = vperm.slane %v3452_v62, 5 }
 0xc30   :  { %v1072_v34 = vmul.f32 %v4251_v8, %v1056_v9  ;;  %v1071_v27 = vmul.f32 %v4253_v12, %v1055_v22  ;;  %v1075_v47 = vmul.f32 %v3446_v55, %v1059_v28  ;;  %v1073_v16 = vmul.f32 %v3442_v63, %v1057_v0 }
 0xc31   :  { %v1077_v14 = vmul.f32 %v3450_v45, %v1061_v17  ;;  %v1074_v29 = vmul.f32 %v4257_v53, %v1058_v2  ;;  %v1076_v31 = vmul.f32 %v3444_v52, %v1060_v1  ;;  %v1062_v8 = vperm.slane %v3452_v62, 7 }
 0xc32   :  { %1086 = vperm.xlu0 %3394, %v1072_v34   ;;  %1081 = vperm.xlu1 %3395, %v1071_v27  }
 0xc33   :  { %v1078_v12 = vmul.f32 %v3448_v50, %v1062_v8 }
 0xc3a   :  { %1101 = vperm.xlu0 %3394, %v1075_v47   ;;  %1091 = vperm.xlu1 %3395, %v1073_v16  }
 0xc42   :  { %1111 = vperm.xlu0 %3394, %v1077_v14   ;;  %1096 = vperm.xlu1 %3395, %v1074_v29  }
 0xc4a   :  { %1106 = vperm.xlu1 %3395, %v1076_v31  }
 0xc52   :  { %1116 = vperm.xlu1 %3395, %v1078_v12  }
 0xca4   :  { %v1087_v30 = vpop.permute.xlu0 %1086  ;;  %v1082_v49 = vpop.permute.xlu1 %1081 }
 0xca5   :  { %v1120_v55 = vmul.f32 %v1087_v30, %v3966_v38  ;;  %v1119_v63 = vmul.f32 %v1082_v49, %v3971_v40 }
 0xca7   :  { %v1134_v53 = vsel %vm276_vm7, %v1120_v55, 0.0  ;;  %v1127_v22 = vsel %vm276_vm7, %v1119_v63, 0.0 }
 0xca8   :  { %v1135_v34 = vrot.slane %v1134_v53, 4  ;;  %v1128_v62 = vrot.slane %v1127_v22, 4 }
 0xcaa   :  { %v1136_v40 = vadd.f32 %v1135_v34, %v1134_v53  ;;  %v1129_v47 = vadd.f32 %v1128_v62, %v1127_v22 }
 0xcac   :  { %v1102_v3 = vpop.permute.xlu0 %1101  ;;  %v1092_v9 = vpop.permute.xlu1 %1091  ;;  %v1137_v1 = vrot.slane %v1136_v40, 2  ;;  %v1130_v31 = vrot.slane %v1129_v47, 2 }
 0xcad   :  { %v1121_v45 = vmul.f32 %v1092_v9, %v3976_v41  ;;  %v1123_v50 = vmul.f32 %v1102_v3, %v3986_v4 }
 0xcae   :  { %v1138_v3 = vadd.f32 %v1137_v1, %v1136_v40  ;;  %v1131_v9 = vadd.f32 %v1130_v31, %v1129_v47 }
 0xcaf   :  { %v1141_v52 = vsel %vm276_vm7, %v1121_v45, 0.0  ;;  %v1155_v16 = vsel %vm276_vm7, %v1123_v50, 0.0 }
 0xcb0   :  { %v1142_v27 = vrot.slane %v1141_v52, 4  ;;  %v1156_v29 = vrot.slane %v1155_v16, 4  ;;  %v1139_v62 = vrot.slane %v1138_v3, 1  ;;  %v1132_v50 = vrot.slane %v1131_v9, 1 }
 0xcb2   :  { %v1143_v17 = vadd.f32 %v1142_v27, %v1141_v52  ;;  %v1140_v40 = vadd.f32 %v1139_v62, %v1138_v3  ;;  %v1133_v47 = vadd.f32 %v1132_v50, %v1131_v9 }
 0xcb4   :  { %v1112_v28 = vpop.permute.xlu0 %1111  ;;  %v1097_v0 = vpop.permute.xlu1 %1096  ;;  %v1144_v12 = vrot.slane %v1143_v17, 2 }
 0xcb5   :  { %v1122_v38 = vmul.f32 %v1097_v0, %v3992_v6  ;;  %v1125_v41 = vmul.f32 %v1112_v28, %v4020_v39  ;;  %v1157_v6 = vadd.f32 %v1156_v29, %v1155_v16 }
 0xcb6   :  { %v1145_v39 = vadd.f32 %v1144_v12, %v1143_v17 }
 0xcb7   :  { %v1148_v2 = vsel %vm276_vm7, %v1122_v38, 0.0  ;;  %v1169_v4 = vsel %vm276_vm7, %v1125_v41, 0.0  ;;  %v1158_v52 = vrot.slane %v1157_v6, 2 }
 0xcb8   :  { %v1149_v14 = vrot.slane %v1148_v2, 4  ;;  %v1170_v55 = vrot.slane %v1169_v4, 4  ;;  %v1146_v28 = vrot.slane %v1145_v39, 1 }
 0xcb9   :  { %v1159_v16 = vadd.f32 %v1158_v52, %v1157_v6 }
 0xcba   :  { %v1150_v8 = vadd.f32 %v1149_v14, %v1148_v2  ;;  %v1171_v34 = vadd.f32 %v1170_v55, %v1169_v4  ;;  %v1147_v14 = vadd.f32 %v1146_v28, %v1145_v39 }
 0xcbc   :  { %v1151_v30 = vrot.slane %v1150_v8, 2  ;;  %v1107_v49 = vpop.permute.xlu1 %1106  ;;  %v1172_v2 = vrot.slane %v1171_v34, 2 }
 0xcbd   :  { %v1124_v63 = vmul.f32 %v1107_v49, %v4030_v44 }
 0xcbe   :  { %v1152_v53 = vadd.f32 %v1151_v30, %v1150_v8  ;;  %v1160_v8 = vrot.slane %v1159_v16, 1  ;;  %v1173_v12 = vadd.f32 %v1172_v2, %v1171_v34  ;;  %v1194_v30 = vsel %vm424_vm8, %v1140_v40, %v1133_v47 }
 0xcbf   :  { %v1162_v45 = vsel %vm276_vm7, %v1124_v63, 0.0  ;;  %v1195_v55 = vsel %vm426_vm9, %v1147_v14, %v1194_v30 }
 0xcc0   :  { %v1163_v22 = vrot.slane %v1162_v45, 4  ;;  %v1153_v0 = vrot.slane %v1152_v53, 1  ;;  %v1161_v3 = vadd.f32 %v1160_v8, %v1159_v16  ;;  %v1174_v9 = vrot.slane %v1173_v12, 1 }
 0xcc2   :  { %v1164_v27 = vadd.f32 %v1163_v22, %v1162_v45  ;;  %v1154_v1 = vadd.f32 %v1153_v0, %v1152_v53  ;;  %v1175_v52 = vadd.f32 %v1174_v9, %v1173_v12 }
 0xcc4   :  { %v1165_v38 = vrot.slane %v1164_v27, 2  ;;  %v1117_v41 = vpop.permute.xlu1 %1116 }
 0xcc5   :  { %v1126_v44 = vmul.f32 %v1117_v41, %v4062_v15  ;;  %v1196_v15 = vsel %vm428_vm10, %v1154_v1, %v1195_v55 }
 0xcc6   :  { %v1166_v17 = vadd.f32 %v1165_v38, %v1164_v27  ;;  %v1197_v39 = vsel %vm430_vm11, %v1161_v3, %v1196_v15  ;;  %v1184_v27 = vpop.permute.xlu2 %1183 }
 0xcc7   :  { %v1176_v29 = vsel %vm276_vm7, %v1126_v44, 0.0 }
 0xcc8   :  { %v1167_v31 = vrot.slane %v1166_v17, 1  ;;  %v1177_v4 = vrot.slane %v1176_v29, 4 }
 0xcca   :  { %v1178_v49 = vadd.f32 %v1177_v4, %v1176_v29  ;;  %v1168_v6 = vadd.f32 %v1167_v31, %v1166_v17 }
 0xccc   :  { %v1179_v63 = vrot.slane %v1178_v49, 2  ;;  %v1198_v53 = vsel %vm432_vm12, %v1168_v6, %v1197_v39 }
 0xccd   :  { %v1199_v34 = vsel %vm434_vm13, %v1175_v52, %v1198_v53 }
 0xcce   :  { %v1180_v45 = vadd.f32 %v1179_v63, %v1178_v49 }
 0xcd0   :  { %v1181_v22 = vrot.slane %v1180_v45, 1 }
 0xcd2   :  { %v1182_v62 = vadd.f32 %v1181_v22, %v1180_v45 }
 0xcd4   :  { %v1200_v50 = vsel %vm436_vm14, %v1182_v62, %v1199_v34 }
 0xcd5   :  { %1201 = vrot.lane.b32.xlu0 %v1200_v50, %s3624_s25 }
 0xcdd   :  { %1259 = vrot.lane.b32.xlu0 %v4190_v10, %s3627_s2 }
 0xd47   :  { %v1202_v28 = vpop.permute.xlu0 %1201 }
 0xd48   :  { %v1204_v0 = vsel %vm276_vm7, %v1184_v27, %v1202_v28 }
 0xd49   :  { %3356 = vmatmul.msk.f32.vlgmr.msrb.gmra.mxu2 %vm687_vm3, %v1204_v0 }
 0xd4a   :  { %2770 = vmatpush.msrb.mxu2 %v3999_v21 }
 0xd4c   :  { %2771 = vmatpush.msrb.mxu2 %v4004_v26 }
 0xd4e   :  { %2772 = vmatpush.msrb.mxu2 %v4013_v32 }
 0xd50   :  { %2773 = vmatpush.msrb.mxu2 %v4025_v42 }
 0xd52   :  { %2774 = vmatpush.msrb.mxu2 %v4037_v48 }
 0xd54   :  { %2775 = vmatpush.msrb.mxu2 %v4046_v46 }
 0xd56   :  { %2776 = vmatpush.msrb.mxu2 %v4055_v56 }
 0xd58   :  { %2777 = vmatpush.msrb.mxu2 %v4079_v19 }
 0xdcc   :  { %v1225_v10 = vpop.f32.mrf.mxu2 }
 0xdcd   :  { %v1226_v38 = vadd.f32 %v4128_v51, %v1225_v10  ;;  %v3359_v51 = vld [vmem:[%s5092_s0 + $0x10] sm:$0xff] }
 0xdcf   :  { %3453 = vtanh.f32 %v1226_v38 }
 0xdd5   :  { %v3454_v41 = vpop.eup %3453 }
 0xdd6   :  { %1256 = vrot.lane.b32.xlu1 %v3454_v41, %s3621_s26  ;;  %3357 = vmatmul.msk.f32.vlgmr.msrb.gmra.mxu1 %vm276_vm7, %v3454_v41 }
 0xdd7   :  { %2252 = vmatpush.msrb.mxu1 %v3999_v21  ;;  %v1260_v21 = vpop.permute.xlu0 %1259 }
 0xdd9   :  { %2253 = vmatpush.msrb.mxu1 %v4004_v26 }
 0xddb   :  { %2254 = vmatpush.msrb.mxu1 %v4013_v32 }
 0xddd   :  { %2255 = vmatpush.msrb.mxu1 %v4025_v42 }
 0xddf   :  { %2256 = vmatpush.msrb.mxu1 %v4037_v48 }
 0xde1   :  { %2257 = vmatpush.msrb.mxu1 %v4046_v46 }
 0xde3   :  { %2258 = vmatpush.msrb.mxu1 %v4055_v56  ;;  %v4346_v56 = vld [vmem:[%s5090_s8] ss:$0 sm:$0xff] }
 0xde5   :  { %2259 = vmatpush.msrb.mxu1 %v4079_v19 }
 0xe48   :  { %v1257_v16 = vpop.permute.xlu1 %1256 }
 0xe49   :  { %v1262_v26 = vsel %vm111_vm0, %v3359_v51, %v1257_v16 }
 0xe4a   :  { %v1263_v32 = vsel %vm113_vm1, %v1262_v26, %v1260_v21 }
 0xe4b   :  { %3360 = vmatmul.msk.f32.vlgmr.msrb.gmra.mxu0 %vm5117_vm2, %v1263_v32 }
 0xe4c   :  { %3316 = vmatpush.msrb.mxu0 %v4088_v18 }
 0xe4e   :  { %3317 = vmatpush.msrb.mxu0 %v4093_v7 }
 0xe50   :  { %3318 = vmatpush.msrb.mxu0 %v4100_v43 }
 0xe52   :  { %3319 = vmatpush.msrb.mxu0 %v4107_v24 }
 0xe53   :  { %v1249_v42 = vpop.f32.mrf.mxu1 }
 0xe54   :  { %v1250_v48 = vadd.f32 %v4176_v5, %v1249_v42 }
 0xe56   :  { %3358 = vst [vmem:[%s5101_s13 + $0x8] sm:$0xff] %v1250_v48 }
 0xec8   :  { %v1284_v46 = vpop.f32.mrf.mxu0 }
 0xec9   :  { %v1285_v19 = vadd.f32 %v4346_v56, %v1284_v46 }
 0xecb   :  { %3455 = vtanh.f32 %v1285_v19  ;;  %v3361_v7 = vmul.f32 -1.442695, %v1285_v19 }
 0xecd   :  { %3457 = vpow2.f32 %v3361_v7 }
 0xed1   :  { %v3456_v18 = vpop.eup %3455 }
 0xed2   :  { %1309 = vrot.lane.b32.xlu1 %v3456_v18, %s3623_s22 }
 0xed3   :  { %v3458_v43 = vpop.eup %3457 }
 0xed4   :  { %v1290_v24 = vadd.f32 1.0, %v3458_v43 }
 0xed6   :  { %3459 = vrcp.f32 %v1290_v24  ;;  %v1302_v17 = vand.u32 2147483648, %v1290_v24  ;;  %vm1296_vm5 = vweird.f32 %v1290_v24  ;;  %v1300_v14 = vand.u32 2147483647, %v1290_v24 }
 0xed8   :  { %v1303_v1 = vor.u32 1.1754944e-38, %v1302_v17  ;;  %vm1301_vm2 = vcmp.eq.f32.partialorder %v1300_v14, 8.507059e+37 }
 0xedc   :  { %v3460_v5 = vpop.eup %3459 }
 0xedd   :  { %v1292_v2 = vmul.f32 %v3460_v5, %v1290_v24  ;;  %vm1297_vm4 = vweird.f32 %v3460_v5 }
 0xede   :  { %vm1298_vm6 = vmor %vm1296_vm5, %vm1297_vm4  ;;  %vm5121_vm4 = vcmask 654336  }
 0xedf   :  { %v1293_v44 = vsub.f32 1.0, %v1292_v2 }
 0xee1   :  { %v1294_v40 = vmul.f32 %v3460_v5, %v1293_v44 }
 0xee3   :  { %v1295_v47 = vadd.f32 %v3460_v5, %v1294_v40 }
 0xee5   :  { %v1299_v29 = vsel %vm1298_vm6, %v3460_v5, %v1295_v47 }
 0xee6   :  { %v1304_v4 = vsel %vm1301_vm2, %v1303_v1, %v1299_v29 }
 0xee7   :  { %v1307_v12 = vmul.f32 %v1304_v4, %v4186_v20 }
 0xf44   :  { %v1310_v31 = vpop.permute.xlu1 %1309 }
 0xf45   :  { %v1312_v8 = vmul.f32 %v1310_v31, %v1304_v4 }
 0xf47   :  { %1314 = vrot.lane.b32.xlu0 %v1312_v8, %s3624_s25 }
 0xfb9   :  { %v1315_v30 = vpop.permute.xlu0 %1314 }
 0xfba   :  { %v4352_v49 = vadd.f32 %v1315_v30, %v1307_v12 }
 0xfbc   :  { %3461 = vtanh.f32 %v4352_v49 }
 0xfc2   :  { %v3462_v55 = vpop.eup %3461 }
 0xfc3   :  { %1320 = vrot.lane.b32.xlu1 %v3462_v55, %s3623_s22 }
0x1035   :  { %v1321_v6 = vpop.permute.xlu1 %1320 }
0x1036   :  { %v4356_v63 = vmul.f32 %v1321_v6, %v1304_v4 }
0x1038   :  { %v1332_v15 = vperm.slane %v4356_v63, 0  ;;  %v1326_v3 = vrot.slane %v4356_v63, 2  ;;  %v1325_v9 = vrot.slane %v4356_v63, 1  ;;  %v1327_v22 = vrot.slane %v4356_v63, 3 }
0x1039   :  { %v1329_v62 = vrot.slane %v4356_v63, 5  ;;  %v1328_v34 = vrot.slane %v4356_v63, 4  ;;  %v1330_v10 = vrot.slane %v4356_v63, 6  ;;  %v1331_v51 = vrot.slane %v4356_v63, 7 }
0x103a   :  { %v1348_v45 = vmul.f32 %v1332_v15, %v3820_v60  ;;  %v1334_v20 = vperm.slane %v1326_v3, 0  ;;  %v1333_v39 = vperm.slane %v1325_v9, 0  ;;  %v1335_v50 = vperm.slane %v1327_v22, 0 }
0x103b   :  { %v1337_v27 = vperm.slane %v1329_v62, 0  ;;  %v1336_v28 = vperm.slane %v1328_v34, 0  ;;  %v1338_v16 = vperm.slane %v1330_v10, 0  ;;  %v1339_v21 = vperm.slane %v1331_v51, 0  ;;  %v5119_v34 = vld [vmem:[#allocation2_spill] sm:$0xff] }
0x103c   :  { %1364 = vrot.lane.b32.xlu2 %v1348_v45, %s3624_s25  ;;  %v1350_v53 = vmul.f32 %v1334_v20, %v3814_v57  ;;  %v1349_v52 = vmul.f32 %v1333_v39, %v3822_v61  ;;  %v1351_v0 = vmul.f32 %v1335_v50, %v3836_v11 }
0x103d   :  { %v1353_v38 = vmul.f32 %v1337_v27, %v3816_v58  ;;  %v1352_v41 = vmul.f32 %v1336_v28, %v3840_v13  ;;  %v1354_v26 = vmul.f32 %v1338_v16, %v3850_v23  ;;  %v1355_v32 = vmul.f32 %v1339_v21, %v3852_v25 }
0x103e   :  { %1368 = vrot.lane.b32.xlu1 %v1350_v53, %s3624_s25  ;;  %1366 = vrot.lane.b32.xlu0 %v1349_v52, %s3624_s25  ;;  %v5118_v52 = vld [vmem:[#allocation4_spill] sm:$0xff] }
0x1044   :  { %1370 = vrot.lane.b32.xlu2 %v1351_v0, %s3624_s25 }
0x1046   :  { %1374 = vrot.lane.b32.xlu1 %v1353_v38, %s3624_s25  ;;  %1372 = vrot.lane.b32.xlu0 %v1352_v41, %s3624_s25  ;;  %v5120_v38 = vld [vmem:[#allocation3_spill] sm:$0xff] }
0x104c   :  { %1376 = vrot.lane.b32.xlu2 %v1354_v26, %s3624_s25 }
0x104e   :  { %1378 = vrot.lane.b32.xlu0 %v1355_v32, %s3624_s25 }
0x1096   :  { %v1365_v42 = vpop.permute.xlu2 %1364 }
0x1097   :  { %v1388_v48 = vsel %vm276_vm7, %v1365_v42, 0.0 }
0x1098   :  { %1389 = vadd.xlane.f32.xlu1 %v1388_v48 }
0x109e   :  { %v1371_v46 = vpop.permute.xlu2 %1370 }
0x109f   :  { %v1397_v19 = vsel %vm276_vm7, %v1371_v46, 0.0 }
0x10a0   :  { %1398 = vadd.xlane.f32.xlu1 %v1397_v19 }
0x10a6   :  { %v1377_v18 = vpop.permute.xlu2 %1376 }
0x10a7   :  { %v1406_v7 = vsel %vm276_vm7, %v1377_v18, 0.0 }
0x10a8   :  { %1407 = vadd.xlane.f32.xlu1 %v1406_v7 }
0x10b0   :  { %v1369_v43 = vpop.permute.xlu1 %1368  ;;  %v1367_v24 = vpop.permute.xlu0 %1366 }
0x10b1   :  { %v1394_v5 = vsel %vm276_vm7, %v1369_v43, 0.0  ;;  %v1391_v2 = vsel %vm276_vm7, %v1367_v24, 0.0 }
0x10b2   :  { %1395 = vadd.xlane.f32.xlu0 %v1394_v5  ;;  %1392 = vadd.xlane.f32.xlu2 %v1391_v2 }
0x10b8   :  { %v1375_v44 = vpop.permute.xlu1 %1374  ;;  %v1373_v40 = vpop.permute.xlu0 %1372 }
0x10b9   :  { %v1403_v47 = vsel %vm276_vm7, %v1375_v44, 0.0  ;;  %v1400_v17 = vsel %vm276_vm7, %v1373_v40, 0.0 }
0x10ba   :  { %1404 = vadd.xlane.f32.xlu0 %v1403_v47  ;;  %1401 = vadd.xlane.f32.xlu2 %v1400_v17 }
0x10c0   :  { %v1379_v14 = vpop.permute.xlu0 %1378 }
0x10c1   :  { %v1409_v29 = vsel %vm276_vm7, %v1379_v14, 0.0 }
0x10c2   :  { %1410 = vadd.xlane.f32.xlu2 %v1409_v29 }
0x110b   :  { %v1390_v1 = vpop.xlane.xlu1 %1389 }
0x110c   :  { %v1412_v31 = vadd.f32 %v1390_v1, %v3818_v59 }
0x110e   :  { %v1420_v4 = vmul.f32 0.17677669, %v1412_v31 }
0x1110   :  { %1437 = vperm.xlu0 %3394, %v1420_v4  }
0x1113   :  { %v1399_v8 = vpop.xlane.xlu1 %1398 }
0x1114   :  { %v1415_v12 = vadd.f32 %v1399_v8, %v3867_v37 }
0x1116   :  { %v1423_v30 = vmul.f32 0.17677669, %v1415_v12 }
0x1118   :  { %1446 = vperm.xlu0 %3394, %v1423_v30  }
0x111b   :  { %v1408_v20 = vpop.xlane.xlu1 %1407 }
0x111c   :  { %v1418_v39 = vadd.f32 %v1408_v20, %v3876_v54 }
0x111e   :  { %v4397_v27 = vmul.f32 0.17677669, %v1418_v39 }
0x1125   :  { %v1393_v55 = vpop.xlane.xlu2 %1392  ;;  %v1396_v6 = vpop.xlane.xlu0 %1395 }
0x1126   :  { %v1413_v15 = vadd.f32 %v1393_v55, %v3863_v35  ;;  %v1414_v3 = vadd.f32 %v1396_v6, %v3865_v36 }
0x1128   :  { %v1421_v9 = vmul.f32 0.17677669, %v1413_v15  ;;  %v1422_v45 = vmul.f32 0.17677669, %v1414_v3 }
0x112a   :  { %1440 = vperm.xlu1 %3395, %v1421_v9   ;;  %1443 = vperm.xlu2 %3393, %v1422_v45  }
0x112d   :  { %v1402_v22 = vpop.xlane.xlu2 %1401  ;;  %v1405_v53 = vpop.xlane.xlu0 %1404 }
0x112e   :  { %v1416_v62 = vadd.f32 %v1402_v22, %v5118_v52  ;;  %v1417_v50 = vadd.f32 %v1405_v53, %v5119_v34 }
0x1130   :  { %v1424_v28 = vmul.f32 0.17677669, %v1416_v62  ;;  %v1425_v0 = vmul.f32 0.17677669, %v1417_v50 }
0x1132   :  { %1449 = vperm.xlu1 %3395, %v1424_v28   ;;  %1455 = vperm.xlu2 %3393, %v4397_v27  }
0x1133   :  { %1452 = vperm.xlu0 %3394, %v1425_v0  }
0x1135   :  { %v1411_v10 = vpop.xlane.xlu2 %1410 }
0x1136   :  { %v1419_v41 = vadd.f32 %v1411_v10, %v5120_v38 }
0x1138   :  { %v1427_v51 = vmul.f32 0.17677669, %v1419_v41 }
0x113a   :  { %1458 = vperm.xlu1 %3395, %v1427_v51  }
0x1182   :  { %v1438_v16 = vpop.permute.xlu0 %1437 }
0x1183   :  { %v1460_v42 = vperm.slane %v1438_v16, %v3911_v33 }
0x1184   :  { %v1444_v48 = vpop.permute.xlu2 %1443 }
0x1185   :  { %v1462_v19 = vperm.slane %v1444_v48, %v3911_v33 }
0x118a   :  { %v1447_v26 = vpop.permute.xlu0 %1446 }
0x118b   :  { %v1463_v43 = vperm.slane %v1447_v26, %v3911_v33 }
0x118c   :  { %v1456_v47 = vpop.permute.xlu2 %1455 }
0x118d   :  { %v1466_v14 = vperm.slane %v1456_v47, %v3911_v33 }
0x119c   :  { %v1441_v21 = vpop.permute.xlu1 %1440 }
0x119d   :  { %v1461_v32 = vperm.slane %v1441_v21, %v3911_v33 }
0x119f   :  { %v1468_v46 = vsel %vm424_vm8, %v1461_v32, %v1460_v42 }
0x11a0   :  { %v1469_v18 = vsel %vm426_vm9, %v1462_v19, %v1468_v46 }
0x11a1   :  { %v1470_v2 = vsel %vm428_vm10, %v1463_v43, %v1469_v18 }
0x11a4   :  { %v1450_v7 = vpop.permute.xlu1 %1449 }
0x11a5   :  { %v1464_v24 = vperm.slane %v1450_v7, %v3911_v33  ;;  %v1453_v5 = vpop.permute.xlu0 %1452 }
0x11a6   :  { %v1465_v44 = vperm.slane %v1453_v5, %v3911_v33 }
0x11a7   :  { %v1471_v40 = vsel %vm430_vm11, %v1464_v24, %v1470_v2 }
0x11a8   :  { %v1472_v17 = vsel %vm432_vm12, %v1465_v44, %v1471_v40 }
0x11a9   :  { %v1473_v31 = vsel %vm434_vm13, %v1466_v14, %v1472_v17 }
0x11ac   :  { %v1459_v29 = vpop.permute.xlu1 %1458 }
0x11ad   :  { %v1467_v1 = vperm.slane %v1459_v29, %v3911_v33 }
0x11af   :  { %v1474_v8 = vsel %vm436_vm14, %v1467_v1, %v1473_v31 }
0x11b0   :  { %v1476_v12 = vsel %vm439_vm15, %v1474_v8, -inf }
0x11b1   :  { %1477 = vmax.xlane.f32.xlu0 %v1476_v12 }
0x1224   :  { %v1478_v55 = vpop.xlane.xlu0 %1477 }
0x1225   :  { %v1481_v6 = vperm.slane %v1478_v55, 1  ;;  %v1480_v15 = vperm.slane %v1478_v55, 0  ;;  %v1483_v3 = vperm.slane %v1478_v55, 3  ;;  %v1482_v22 = vperm.slane %v1478_v55, 2 }
0x1226   :  { %v1485_v41 = vperm.slane %v1478_v55, 5  ;;  %v1484_v26 = vperm.slane %v1478_v55, 4 }
0x1227   :  { %v1497_v20 = vsub.f32 %v1421_v9, %v1481_v6  ;;  %v1496_v39 = vsub.f32 %v1420_v4, %v1480_v15  ;;  %v1499_v50 = vsub.f32 %v1423_v30, %v1483_v3  ;;  %v1498_v10 = vsub.f32 %v1422_v45, %v1482_v22 }
0x1228   :  { %v1501_v48 = vsub.f32 %v1425_v0, %v1485_v41  ;;  %v1500_v4 = vsub.f32 %v1424_v28, %v1484_v26  ;;  %v1487_v30 = vperm.slane %v1478_v55, 7  ;;  %v1486_v45 = vperm.slane %v1478_v55, 6 }
0x1229   :  { %v1506_v53 = vmul.f32 1.442695, %v1497_v20  ;;  %v1504_v62 = vmul.f32 1.442695, %v1496_v39  ;;  %v1510_v16 = vmul.f32 1.442695, %v1499_v50 }
0x122a   :  { %v1508_v21 = vmul.f32 1.442695, %v1498_v10  ;;  %v1514_v9 = vmul.f32 1.442695, %v1501_v48  ;;  %v1512_v46 = vmul.f32 1.442695, %v1500_v4  ;;  %v1503_v7 = vsub.f32 %v1427_v51, %v1487_v30 }
0x122b   :  { %3463 = vpow2.f32 %v1506_v53  ;;  %v1502_v0 = vsub.f32 %v4397_v27, %v1486_v45 }
0x122c   :  { %3465 = vpow2.f32 %v1504_v62  ;;  %v1518_v43 = vmul.f32 1.442695, %v1503_v7 }
0x122d   :  { %3467 = vpow2.f32 %v1510_v16  ;;  %v1516_v24 = vmul.f32 1.442695, %v1502_v0 }
0x122e   :  { %3469 = vpow2.f32 %v1508_v21 }
0x122f   :  { %3471 = vpow2.f32 %v1514_v9 }
0x1230   :  { %3473 = vpow2.f32 %v1512_v46 }
0x1231   :  { %v4417_v32 = vpop.eup %3463  ;;  %3475 = vpow2.f32 %v1518_v43 }
0x1232   :  { %v4419_v42 = vpop.eup %3465  ;;  %1532 = vperm.xlu1 %3395, %v4417_v32   ;;  %3477 = vpow2.f32 %v1516_v24 }
0x1233   :  { %1529 = vperm.xlu2 %3393, %v4419_v42   ;;  %v4423_v19 = vpop.eup %3467 }
0x1234   :  { %v3470_v18 = vpop.eup %3469 }
0x1235   :  { %v3472_v5 = vpop.eup %3471 }
0x1236   :  { %v3474_v2 = vpop.eup %3473 }
0x1237   :  { %v3476_v28 = vpop.eup %3475 }
0x1238   :  { %v3478_v44 = vpop.eup %3477 }
0x123a   :  { %1538 = vperm.xlu1 %3395, %v4423_v19  }
0x123b   :  { %1535 = vperm.xlu2 %3393, %v3470_v18  }
0x1242   :  { %1544 = vperm.xlu1 %3395, %v3472_v5  }
0x1243   :  { %1541 = vperm.xlu2 %3393, %v3474_v2  }
0x124a   :  { %1550 = vperm.xlu1 %3395, %v3476_v28  }
0x124b   :  { %1547 = vperm.xlu2 %3393, %v3478_v44  }
0x128d   :  { %v1530_v40 = vpop.permute.xlu2 %1529 }
0x128e   :  { %v1552_v27 = vperm.slane %v1530_v40, %v3911_v33 }
0x1295   :  { %v1536_v51 = vpop.permute.xlu2 %1535 }
0x1296   :  { %v1554_v8 = vperm.slane %v1536_v51, %v3911_v33 }
0x129d   :  { %v1542_v14 = vpop.permute.xlu2 %1541 }
0x129e   :  { %v1556_v3 = vperm.slane %v1542_v14, %v3911_v33 }
0x12a4   :  { %v1533_v47 = vpop.permute.xlu1 %1532 }
0x12a5   :  { %v1553_v29 = vperm.slane %v1533_v47, %v3911_v33  ;;  %v1548_v20 = vpop.permute.xlu2 %1547 }
0x12a6   :  { %v1558_v53 = vperm.slane %v1548_v20, %v3911_v33 }
0x12a7   :  { %v1560_v1 = vsel %vm424_vm8, %v1553_v29, %v1552_v27 }
0x12a8   :  { %v1561_v55 = vsel %vm426_vm9, %v1554_v8, %v1560_v1 }
0x12ac   :  { %v1539_v17 = vpop.permute.xlu1 %1538 }
0x12ad   :  { %v1555_v31 = vperm.slane %v1539_v17, %v3911_v33 }
0x12af   :  { %v1562_v6 = vsel %vm428_vm10, %v1555_v31, %v1561_v55 }
0x12b0   :  { %v1563_v39 = vsel %vm430_vm11, %v1556_v3, %v1562_v6 }
0x12b4   :  { %v1545_v12 = vpop.permute.xlu1 %1544 }
0x12b5   :  { %v1557_v15 = vperm.slane %v1545_v12, %v3911_v33 }
0x12b7   :  { %v1564_v22 = vsel %vm432_vm12, %v1557_v15, %v1563_v39  ;;  %v4472_v15 = vld [vmem:[%s5096_s1 + $0x20] sm:$0xff] }
0x12b8   :  { %v1565_v10 = vsel %vm434_vm13, %v1558_v53, %v1564_v22  ;;  %v4478_v53 = vld [vmem:[%s5096_s1 + $0x18] sm:$0xff] }
0x12bc   :  { %v1551_v62 = vpop.permute.xlu1 %1550 }
0x12bd   :  { %v1559_v50 = vperm.slane %v1551_v62, %v3911_v33 }
0x12bf   :  { %v1566_v41 = vsel %vm436_vm14, %v1559_v50, %v1565_v10 }
0x12c0   :  { %v1568_v16 = vsel %vm439_vm15, %v1566_v41, 0.0 }
0x12c1   :  { %1569 = vadd.xlane.f32.xlu2 %v1568_v16  ;;  %v4485_v16 = vld [vmem:[%s5096_s1 + $0x30] sm:$0xff] }
0x12d9   :  { %1701 = vrot.lane.b32.xlu2 %v4356_v63, %s3624_s25 }
0x1334   :  { %v1570_v21 = vpop.xlane.xlu2 %1569 }
0x1335   :  { %3479 = vrcp.f32 %v1570_v21 }
0x133b   :  { %v3480_v26 = vpop.eup %3479 }
0x133c   :  { %v1574_v48 = vperm.slane %v3480_v26, 1  ;;  %v1573_v4 = vperm.slane %v3480_v26, 0  ;;  %v1577_v46 = vperm.slane %v3480_v26, 4  ;;  %v1575_v45 = vperm.slane %v3480_v26, 2 }
0x133d   :  { %v1579_v43 = vperm.slane %v3480_v26, 6  ;;  %v1576_v24 = vperm.slane %v3480_v26, 3  ;;  %v1578_v51 = vperm.slane %v3480_v26, 5 }
0x133e   :  { %v1590_v30 = vmul.f32 %v4417_v32, %v1574_v48  ;;  %v1589_v9 = vmul.f32 %v4419_v42, %v1573_v4  ;;  %v1593_v7 = vmul.f32 %v3474_v2, %v1577_v46  ;;  %v1591_v0 = vmul.f32 %v3470_v18, %v1575_v45  ;;  %v4451_v18 = vld [vmem:[%s5096_s1 + $0x8] sm:$0xff] }
0x133f   :  { %v1595_v40 = vmul.f32 %v3478_v44, %v1579_v43  ;;  %v1592_v47 = vmul.f32 %v4423_v19, %v1576_v24  ;;  %v1594_v17 = vmul.f32 %v3472_v5, %v1578_v51  ;;  %v1580_v32 = vperm.slane %v3480_v26, 7  ;;  %v4457_v19 = vld [vmem:[%s5096_s1] sm:$0xff]  ;;  %v4493_v51 = vld [vmem:[%s5096_s1 + $0x28] sm:$0xff] }
0x1340   :  { %1604 = vperm.xlu0 %3394, %v1590_v30   ;;  %1599 = vperm.xlu1 %3395, %v1589_v9  }
0x1341   :  { %v1596_v42 = vmul.f32 %v3476_v28, %v1580_v32  ;;  %v4463_v28 = vld [vmem:[%s5096_s1 + $0x10] sm:$0xff] }
0x1348   :  { %1619 = vperm.xlu0 %3394, %v1593_v7   ;;  %1609 = vperm.xlu1 %3395, %v1591_v0  }
0x1350   :  { %1629 = vperm.xlu0 %3394, %v1595_v40   ;;  %1614 = vperm.xlu1 %3395, %v1592_v47  }
0x1358   :  { %1624 = vperm.xlu1 %3395, %v1594_v17  }
0x1360   :  { %1634 = vperm.xlu1 %3395, %v1596_v42  }
0x13b2   :  { %v1605_v14 = vpop.permute.xlu0 %1604  ;;  %v1600_v29 = vpop.permute.xlu1 %1599 }
0x13b3   :  { %v1638_v2 = vmul.f32 %v4451_v18, %v1605_v14  ;;  %v1637_v5 = vmul.f32 %v4457_v19, %v1600_v29 }
0x13b5   :  { %v1652_v31 = vsel %vm276_vm7, %v1638_v2, 0.0  ;;  %v1645_v8 = vsel %vm276_vm7, %v1637_v5, 0.0 }
0x13b6   :  { %v1653_v55 = vrot.slane %v1652_v31, 4  ;;  %v1646_v6 = vrot.slane %v1645_v8, 4 }
0x13b8   :  { %v1654_v50 = vadd.f32 %v1653_v55, %v1652_v31  ;;  %v1647_v10 = vadd.f32 %v1646_v6, %v1645_v8 }
0x13ba   :  { %v1620_v44 = vpop.permute.xlu0 %1619  ;;  %v1610_v27 = vpop.permute.xlu1 %1609  ;;  %v1655_v9 = vrot.slane %v1654_v50, 2  ;;  %v1648_v46 = vrot.slane %v1647_v10, 2 }
0x13bb   :  { %v1639_v1 = vmul.f32 %v4463_v28, %v1610_v27  ;;  %v1641_v3 = vmul.f32 %v4472_v15, %v1620_v44 }
0x13bc   :  { %v1656_v32 = vadd.f32 %v1655_v9, %v1654_v50  ;;  %v1649_v42 = vadd.f32 %v1648_v46, %v1647_v10 }
0x13bd   :  { %v1659_v12 = vsel %vm276_vm7, %v1639_v1, 0.0  ;;  %v1673_v41 = vsel %vm276_vm7, %v1641_v3, 0.0 }
0x13be   :  { %v1660_v20 = vrot.slane %v1659_v12, 4  ;;  %v1674_v30 = vrot.slane %v1673_v41, 4  ;;  %v1657_v1 = vrot.slane %v1656_v32, 1  ;;  %v1650_v31 = vrot.slane %v1649_v42, 1 }
0x13c0   :  { %v1661_v26 = vadd.f32 %v1660_v20, %v1659_v12  ;;  %v1675_v40 = vadd.f32 %v1674_v30, %v1673_v41  ;;  %v1658_v50 = vadd.f32 %v1657_v1, %v1656_v32  ;;  %v1651_v10 = vadd.f32 %v1650_v31, %v1649_v42  ;;  %v1702_v1 = vpop.permute.xlu2 %1701 }
0x13c2   :  { %v1630_v39 = vpop.permute.xlu0 %1629  ;;  %v1615_v22 = vpop.permute.xlu1 %1614  ;;  %v1662_v0 = vrot.slane %v1661_v26, 2  ;;  %v1676_v44 = vrot.slane %v1675_v40, 2 }
0x13c3   :  { %v1640_v62 = vmul.f32 %v4478_v53, %v1615_v22  ;;  %v1643_v21 = vmul.f32 %v4485_v16, %v1630_v39  ;;  %v4500_v22 = vld [vmem:[%s5096_s1 + $0x38] sm:$0xff] }
0x13c4   :  { %v1663_v14 = vadd.f32 %v1662_v0, %v1661_v26  ;;  %v1677_v20 = vadd.f32 %v1676_v44, %v1675_v40 }
0x13c5   :  { %v1666_v48 = vsel %vm276_vm7, %v1640_v62, 0.0  ;;  %v1687_v45 = vsel %vm276_vm7, %v1643_v21, 0.0 }
0x13c6   :  { %v1667_v4 = vrot.slane %v1666_v48, 4  ;;  %v1688_v47 = vrot.slane %v1687_v45, 4  ;;  %v1664_v12 = vrot.slane %v1663_v14, 1  ;;  %v1678_v9 = vrot.slane %v1677_v20, 1 }
0x13c8   :  { %v1668_v7 = vadd.f32 %v1667_v4, %v1666_v48  ;;  %v1689_v27 = vadd.f32 %v1688_v47, %v1687_v45  ;;  %v1665_v21 = vadd.f32 %v1664_v12, %v1663_v14  ;;  %v1712_v45 = vsel %vm424_vm8, %v1658_v50, %v1651_v10  ;;  %v3586_v12 = vld [vmem:[%s5099_s11 + $0x18] sm:$0xff]  ;;  %v3591_v50 = vld [vmem:[%s5089_s7 + $0x48] sm:$0xff]  ;;  %v3592_v10 = vld [vmem:[%s5089_s7 + $0x40] sm:$0xff] }
0x13c9   :  { %v1679_v47 = vadd.f32 %v1678_v9, %v1677_v20  ;;  %v4531_v20 = vld [vmem:[%s5097_s10] ss:$0 sm:$0xff]  ;;  %v3599_v9 = vld [vmem:[%s5089_s7 + $0x8] sm:$0xff] }
0x13ca   :  { %v1669_v43 = vrot.slane %v1668_v7, 2  ;;  %v1625_v24 = vpop.permute.xlu1 %1624  ;;  %v1690_v39 = vrot.slane %v1689_v27, 2  ;;  %v1713_v0 = vsel %vm426_vm9, %v1665_v21, %v1712_v45  ;;  %v3594_v21 = vld [vmem:[%s5089_s7 + $0x30] sm:$0xff]  ;;  %v3365_v45 = vld [vmem:[%s5092_s0 + $0x18] sm:$0xff] }
0x13cb   :  { %v1642_v17 = vmul.f32 %v4493_v51, %v1625_v24 }
0x13cc   :  { %v1670_v2 = vadd.f32 %v1669_v43, %v1668_v7  ;;  %v1691_v46 = vadd.f32 %v1690_v39, %v1689_v27 }
0x13cd   :  { %v1680_v29 = vsel %vm276_vm7, %v1642_v17, 0.0 }
0x13ce   :  { %v1681_v5 = vrot.slane %v1680_v29, 4  ;;  %v1671_v55 = vrot.slane %v1670_v2, 1  ;;  %v1692_v17 = vrot.slane %v1691_v46, 1 }
0x13d0   :  { %v1682_v8 = vadd.f32 %v1681_v5, %v1680_v29  ;;  %v1672_v48 = vadd.f32 %v1671_v55, %v1670_v2  ;;  %v1693_v2 = vadd.f32 %v1692_v17, %v1691_v46  ;;  %v3587_v55 = vld [vmem:[%s5099_s11 + $0x10] sm:$0xff]  ;;  %v3600_v46 = vld [vmem:[%s5089_s7] sm:$0xff] }
0x13d2   :  { %v1683_v6 = vrot.slane %v1682_v8, 2  ;;  %v1635_v3 = vpop.permute.xlu1 %1634  ;;  %v1714_v40 = vsel %vm428_vm10, %v1672_v48, %v1713_v0  ;;  %v3596_v48 = vld [vmem:[%s5089_s7 + $0x20] sm:$0xff] }
0x13d3   :  { %v1644_v62 = vmul.f32 %v4500_v22, %v1635_v3  ;;  %v1715_v42 = vsel %vm430_vm11, %v1679_v47, %v1714_v40  ;;  %v4575_v47 = vld [vmem:[%s5100_s12] ss:$0 sm:$0xff] }
0x13d4   :  { %v1684_v41 = vadd.f32 %v1683_v6, %v1682_v8  ;;  %v3589_v6 = vld [vmem:[%s5099_s11] sm:$0xff] }
0x13d5   :  { %v1694_v26 = vsel %vm276_vm7, %v1644_v62, 0.0 }
0x13d6   :  { %v1685_v4 = vrot.slane %v1684_v41, 1  ;;  %v1695_v30 = vrot.slane %v1694_v26, 4 }
0x13d8   :  { %v1696_v7 = vadd.f32 %v1695_v30, %v1694_v26  ;;  %v1686_v43 = vadd.f32 %v1685_v4, %v1684_v41  ;;  %v3593_v41 = vld [vmem:[%s5089_s7 + $0x38] sm:$0xff]  ;;  %v3595_v26 = vld [vmem:[%s5089_s7 + $0x28] sm:$0xff]  ;;  %v3598_v30 = vld [vmem:[%s5089_s7 + $0x10] sm:$0xff] }
0x13d9   :  { %v3597_v4 = vld [vmem:[%s5089_s7 + $0x18] sm:$0xff] }
0x13da   :  { %v1697_v24 = vrot.slane %v1696_v7, 2  ;;  %v1716_v29 = vsel %vm432_vm12, %v1686_v43, %v1715_v42 }
0x13db   :  { %v1717_v44 = vsel %vm434_vm13, %v1693_v2, %v1716_v29 }
0x13dc   :  { %v1698_v32 = vadd.f32 %v1697_v24, %v1696_v7 }
0x13de   :  { %v1699_v14 = vrot.slane %v1698_v32, 1 }
0x13e0   :  { %v1700_v5 = vadd.f32 %v1699_v14, %v1698_v32 }
0x13e2   :  { %v1718_v27 = vsel %vm436_vm14, %v1700_v5, %v1717_v44 }
0x13e3   :  { %1719 = vrot.lane.b32.xlu0 %v1718_v27, %s3624_s25 }
0x13eb   :  { %1777 = vrot.lane.b32.xlu0 %v4356_v63, %s3627_s2  ;;  %v3588_v63 = vld [vmem:[%s5099_s11 + $0x8] sm:$0xff] }
0x1455   :  { %v1720_v31 = vpop.permute.xlu0 %1719 }
0x1456   :  { %v1722_v8 = vsel %vm276_vm7, %v1702_v1, %v1720_v31 }
0x1457   :  { %3362 = vmatmul.msk.f32.vlgmr.msrb.gmra.mxu3 %vm687_vm3, %v1722_v8 }
0x1458   :  { %2798 = vmatpush.msrb.mxu3 %v3586_v12 }
0x145a   :  { %2799 = vmatpush.msrb.mxu3 %v3587_v55 }
0x145c   :  { %2800 = vmatpush.msrb.mxu3 %v3588_v63 }
0x145d   :  { %v1778_v0 = vpop.permute.xlu0 %1777 }
0x145e   :  { %2801 = vmatpush.msrb.mxu3 %v3589_v6 }
0x14da   :  { %v1743_v3 = vpop.f32.mrf.mxu3 }
0x14db   :  { %v1744_v39 = vadd.f32 %v4531_v20, %v1743_v3 }
0x14dd   :  { %3481 = vtanh.f32 %v1744_v39 }
0x14e3   :  { %v3482_v62 = vpop.eup %3481 }
0x14e4   :  { %1774 = vrot.lane.b32.xlu1 %v3482_v62, %s3621_s26  ;;  %3363 = vmatmul.msk.f32.vlgmr.msra.gmra.mxu1 %vm276_vm7, %v3482_v62 }
0x14e5   :  { %2827 = vmatpush.msra.mxu1 %v3591_v50 }
0x14e7   :  { %2828 = vmatpush.msra.mxu1 %v3592_v10 }
0x14e9   :  { %2829 = vmatpush.msra.mxu1 %v3593_v41 }
0x14eb   :  { %2830 = vmatpush.msra.mxu1 %v3594_v21 }
0x14ed   :  { %2831 = vmatpush.msra.mxu1 %v3595_v26 }
0x14ef   :  { %2832 = vmatpush.msra.mxu1 %v3596_v48 }
0x14f1   :  { %2833 = vmatpush.msra.mxu1 %v3597_v4 }
0x14f3   :  { %2834 = vmatpush.msra.mxu1 %v3598_v30 }
0x14f5   :  { %2835 = vmatpush.msra.mxu1 %v3599_v9 }
0x14f7   :  { %2836 = vmatpush.msra.mxu1 %v3600_v46 }
0x1556   :  { %v1775_v7 = vpop.permute.xlu1 %1774 }
0x1557   :  { %v1780_v43 = vsel %vm111_vm0, %v3365_v45, %v1775_v7 }
0x1558   :  { %v1781_v24 = vsel %vm113_vm1, %v1780_v43, %v1778_v0 }
0x1559   :  { %3366 = vmatmul.msk.f32.vlgmr.msra.gmra.mxu2 %vm5121_vm4, %v1781_v24 }
0x1561   :  { %v1767_v40 = vpop.f32.mrf.mxu1 }
0x1562   :  { %v1768_v17 = vadd.f32 %v4575_v47, %v1767_v40 }
0x1564   :  { %3364 = vst [vmem:[%s5101_s13 + $0x10] sm:$0xff] %v1768_v17 }
0x15dc   :  { %v1802_v32 = vpop.f32.mrf.mxu2 }
0x15dd   :  { %v1803_v42 = vadd.f32 %v4346_v56, %v1802_v32 }
0x15df   :  { %3483 = vtanh.f32 %v1803_v42  ;;  %v3367_v29 = vmul.f32 -1.442695, %v1803_v42 }
0x15e1   :  { %3485 = vpow2.f32 %v3367_v29 }
0x15e5   :  { %v3484_v14 = vpop.eup %3483 }
0x15e6   :  { %1827 = vrot.lane.b32.xlu1 %v3484_v14, %s3623_s22 }
0x15e7   :  { %v3486_v2 = vpop.eup %3485 }
0x15e8   :  { %v1808_v5 = vadd.f32 1.0, %v3486_v2 }
0x15ea   :  { %3487 = vrcp.f32 %v1808_v5  ;;  %v1820_v12 = vand.u32 2147483648, %v1808_v5  ;;  %vm1814_vm6 = vweird.f32 %v1808_v5  ;;  %v1818_v55 = vand.u32 2147483647, %v1808_v5 }
0x15ec   :  { %v1821_v63 = vor.u32 1.1754944e-38, %v1820_v12  ;;  %vm1819_vm4 = vcmp.eq.f32.partialorder %v1818_v55, 8.507059e+37 }
0x15f0   :  { %v3488_v44 = vpop.eup %3487 }
0x15f1   :  { %v1810_v27 = vmul.f32 %v3488_v44, %v1808_v5  ;;  %vm1815_vm5 = vweird.f32 %v3488_v44 }
0x15f2   :  { %vm1816_vm2 = vmor %vm1814_vm6, %vm1815_vm5  ;;  %vm5122_vm5 = vcmask 654336  }
0x15f3   :  { %v1811_v1 = vsub.f32 1.0, %v1810_v27 }
0x15f5   :  { %v1812_v31 = vmul.f32 %v3488_v44, %v1811_v1 }
0x15f7   :  { %v1813_v8 = vadd.f32 %v3488_v44, %v1812_v31 }
0x15f9   :  { %v1817_v56 = vsel %vm1816_vm2, %v3488_v44, %v1813_v8 }
0x15fa   :  { %v1822_v3 = vsel %vm1819_vm4, %v1821_v63, %v1817_v56 }
0x15fb   :  { %v1825_v62 = vmul.f32 %v1822_v3, %v4352_v49 }
0x1658   :  { %v1828_v6 = vpop.permute.xlu1 %1827 }
0x1659   :  { %v1830_v39 = vmul.f32 %v1828_v6, %v1822_v3 }
0x165b   :  { %1832 = vrot.lane.b32.xlu0 %v1830_v39, %s3624_s25 }
0x16cd   :  { %v1833_v50 = vpop.permute.xlu0 %1832 }
0x16ce   :  { %v4585_v10 = vadd.f32 %v1833_v50, %v1825_v62 }
0x16d0   :  { %3489 = vtanh.f32 %v4585_v10 }
0x16d6   :  { %v3490_v41 = vpop.eup %3489 }
0x16d7   :  { %1838 = vrot.lane.b32.xlu1 %v3490_v41, %s3623_s22 }
0x1749   :  { %v1839_v21 = vpop.permute.xlu1 %1838 }
0x174a   :  { %v4589_v26 = vmul.f32 %v1839_v21, %v1822_v3 }
0x174c   :  { %v1850_v48 = vperm.slane %v4589_v26, 0  ;;  %v1844_v4 = vrot.slane %v4589_v26, 2  ;;  %v1843_v30 = vrot.slane %v4589_v26, 1  ;;  %v1845_v45 = vrot.slane %v4589_v26, 3 }
0x174d   :  { %v1847_v43 = vrot.slane %v4589_v26, 5  ;;  %v1846_v24 = vrot.slane %v4589_v26, 4  ;;  %v1848_v14 = vrot.slane %v4589_v26, 6  ;;  %v1849_v5 = vrot.slane %v4589_v26, 7 }
0x174e   :  { %v1866_v9 = vmul.f32 %v1850_v48, %v3820_v60  ;;  %v1852_v49 = vperm.slane %v1844_v4, 0  ;;  %v1851_v46 = vperm.slane %v1843_v30, 0  ;;  %v1853_v40 = vperm.slane %v1845_v45, 0 }
0x174f   :  { %v1855_v17 = vperm.slane %v1847_v43, 0  ;;  %v1854_v32 = vperm.slane %v1846_v24, 0  ;;  %v1856_v44 = vperm.slane %v1848_v14, 0  ;;  %v1857_v27 = vperm.slane %v1849_v5, 0 }
0x1750   :  { %1882 = vrot.lane.b32.xlu2 %v1866_v9, %s3624_s25  ;;  %v1868_v7 = vmul.f32 %v1852_v49, %v3814_v57  ;;  %v1867_v0 = vmul.f32 %v1851_v46, %v3822_v61  ;;  %v1869_v42 = vmul.f32 %v1853_v40, %v3836_v11 }
0x1751   :  { %v1871_v29 = vmul.f32 %v1855_v17, %v3816_v58  ;;  %v1870_v2 = vmul.f32 %v1854_v32, %v3840_v13  ;;  %v1872_v1 = vmul.f32 %v1856_v44, %v3850_v23  ;;  %v1873_v31 = vmul.f32 %v1857_v27, %v3852_v25 }
0x1752   :  { %1886 = vrot.lane.b32.xlu1 %v1868_v7, %s3624_s25  ;;  %1884 = vrot.lane.b32.xlu0 %v1867_v0, %s3624_s25 }
0x1758   :  { %1888 = vrot.lane.b32.xlu2 %v1869_v42, %s3624_s25 }
0x175a   :  { %1892 = vrot.lane.b32.xlu1 %v1871_v29, %s3624_s25  ;;  %1890 = vrot.lane.b32.xlu0 %v1870_v2, %s3624_s25 }
0x1760   :  { %1894 = vrot.lane.b32.xlu2 %v1872_v1, %s3624_s25 }
0x1762   :  { %1896 = vrot.lane.b32.xlu0 %v1873_v31, %s3624_s25 }
0x17aa   :  { %v1883_v8 = vpop.permute.xlu2 %1882 }
0x17ab   :  { %v1906_v12 = vsel %vm276_vm7, %v1883_v8, 0.0 }
0x17ac   :  { %1907 = vadd.xlane.f32.xlu1 %v1906_v12 }
0x17b2   :  { %v1889_v55 = vpop.permute.xlu2 %1888 }
0x17b3   :  { %v1915_v56 = vsel %vm276_vm7, %v1889_v55, 0.0 }
0x17b4   :  { %1916 = vadd.xlane.f32.xlu1 %v1915_v56 }
0x17ba   :  { %v1895_v63 = vpop.permute.xlu2 %1894 }
0x17bb   :  { %v1924_v6 = vsel %vm276_vm7, %v1895_v63, 0.0 }
0x17bc   :  { %1925 = vadd.xlane.f32.xlu1 %v1924_v6 }
0x17c4   :  { %v1887_v3 = vpop.permute.xlu1 %1886  ;;  %v1885_v39 = vpop.permute.xlu0 %1884 }
0x17c5   :  { %v1909_v62 = vsel %vm276_vm7, %v1885_v39, 0.0  ;;  %v1912_v50 = vsel %vm276_vm7, %v1887_v3, 0.0 }
0x17c6   :  { %1913 = vadd.xlane.f32.xlu0 %v1912_v50  ;;  %1910 = vadd.xlane.f32.xlu2 %v1909_v62 }
0x17cc   :  { %v1893_v41 = vpop.permute.xlu1 %1892  ;;  %v1891_v21 = vpop.permute.xlu0 %1890 }
0x17cd   :  { %v1918_v48 = vsel %vm276_vm7, %v1891_v21, 0.0  ;;  %v1921_v4 = vsel %vm276_vm7, %v1893_v41, 0.0 }
0x17ce   :  { %1922 = vadd.xlane.f32.xlu0 %v1921_v4  ;;  %1919 = vadd.xlane.f32.xlu2 %v1918_v48 }
0x17d4   :  { %v1897_v30 = vpop.permute.xlu0 %1896 }
0x17d5   :  { %v1927_v9 = vsel %vm276_vm7, %v1897_v30, 0.0 }
0x17d6   :  { %1928 = vadd.xlane.f32.xlu2 %v1927_v9 }
0x181f   :  { %v1908_v49 = vpop.xlane.xlu1 %1907 }
0x1820   :  { %v1930_v46 = vadd.f32 %v1908_v49, %v3818_v59 }
0x1822   :  { %v1938_v45 = vmul.f32 0.17677669, %v1930_v46 }
0x1824   :  { %1955 = vperm.xlu0 %3394, %v1938_v45  }
0x1827   :  { %v1917_v7 = vpop.xlane.xlu1 %1916 }
0x1828   :  { %v1933_v0 = vadd.f32 %v1917_v7, %v3867_v37 }
0x182a   :  { %v1941_v43 = vmul.f32 0.17677669, %v1933_v0 }
0x182c   :  { %1964 = vperm.xlu0 %3394, %v1941_v43  }
0x182f   :  { %v1926_v24 = vpop.xlane.xlu1 %1925 }
0x1830   :  { %v1936_v40 = vadd.f32 %v1926_v24, %v3876_v54 }
0x1832   :  { %v4626_v17 = vmul.f32 0.17677669, %v1936_v40 }
0x1834   :  { %1973 = vperm.xlu0 %3394, %v4626_v17  }
0x1839   :  { %v1911_v32 = vpop.xlane.xlu2 %1910  ;;  %v1914_v42 = vpop.xlane.xlu0 %1913 }
0x183a   :  { %v1931_v14 = vadd.f32 %v1911_v32, %v3863_v35  ;;  %v1932_v29 = vadd.f32 %v1914_v42, %v3865_v36 }
0x183c   :  { %v1939_v2 = vmul.f32 0.17677669, %v1931_v14  ;;  %v1940_v5 = vmul.f32 0.17677669, %v1932_v29 }
0x183e   :  { %1958 = vperm.xlu1 %3395, %v1939_v2   ;;  %1961 = vperm.xlu2 %3393, %v1940_v5  }
0x1841   :  { %v1920_v44 = vpop.xlane.xlu2 %1919  ;;  %v1923_v27 = vpop.xlane.xlu0 %1922 }
0x1842   :  { %v1934_v1 = vadd.f32 %v1920_v44, %v5118_v52  ;;  %v1935_v31 = vadd.f32 %v1923_v27, %v5119_v34 }
0x1844   :  { %v1942_v8 = vmul.f32 0.17677669, %v1934_v1  ;;  %v1943_v12 = vmul.f32 0.17677669, %v1935_v31 }
0x1846   :  { %1967 = vperm.xlu1 %3395, %v1942_v8   ;;  %1970 = vperm.xlu2 %3393, %v1943_v12  }
0x1849   :  { %v1929_v55 = vpop.xlane.xlu2 %1928 }
0x184a   :  { %v1937_v56 = vadd.f32 %v1929_v55, %v5120_v38 }
0x184c   :  { %v1945_v63 = vmul.f32 0.17677669, %v1937_v56 }
0x184e   :  { %1976 = vperm.xlu1 %3395, %v1945_v63  }
0x1896   :  { %v1956_v6 = vpop.permute.xlu0 %1955 }
0x1897   :  { %v1978_v50 = vperm.slane %v1956_v6, %v3911_v33 }
0x1898   :  { %v1962_v3 = vpop.permute.xlu2 %1961 }
0x1899   :  { %v1980_v48 = vperm.slane %v1962_v3, %v3911_v33 }
0x189e   :  { %v1965_v41 = vpop.permute.xlu0 %1964 }
0x189f   :  { %v1981_v9 = vperm.slane %v1965_v41, %v3911_v33 }
0x18a0   :  { %v1971_v46 = vpop.permute.xlu2 %1970 }
0x18a1   :  { %v1983_v24 = vperm.slane %v1971_v46, %v3911_v33 }
0x18a6   :  { %v1974_v40 = vpop.permute.xlu0 %1973 }
0x18a7   :  { %v1984_v42 = vperm.slane %v1974_v40, %v3911_v33 }
0x18b0   :  { %v1959_v39 = vpop.permute.xlu1 %1958 }
0x18b1   :  { %v1979_v62 = vperm.slane %v1959_v39, %v3911_v33 }
0x18b3   :  { %v1986_v21 = vsel %vm424_vm8, %v1979_v62, %v1978_v50 }
0x18b4   :  { %v1987_v4 = vsel %vm426_vm9, %v1980_v48, %v1986_v21 }
0x18b5   :  { %v1988_v7 = vsel %vm428_vm10, %v1981_v9, %v1987_v4 }
0x18b8   :  { %v1968_v30 = vpop.permute.xlu1 %1967 }
0x18b9   :  { %v1982_v49 = vperm.slane %v1968_v30, %v3911_v33 }
0x18bb   :  { %v1989_v0 = vsel %vm430_vm11, %v1982_v49, %v1988_v7 }
0x18bc   :  { %v1990_v32 = vsel %vm432_vm12, %v1983_v24, %v1989_v0 }
0x18bd   :  { %v1991_v44 = vsel %vm434_vm13, %v1984_v42, %v1990_v32 }
0x18c0   :  { %v1977_v14 = vpop.permute.xlu1 %1976 }
0x18c1   :  { %v1985_v29 = vperm.slane %v1977_v14, %v3911_v33 }
0x18c3   :  { %v1992_v27 = vsel %vm436_vm14, %v1985_v29, %v1991_v44 }
0x18c4   :  { %v1994_v1 = vsel %vm439_vm15, %v1992_v27, -inf }
0x18c5   :  { %1995 = vmax.xlane.f32.xlu2 %v1994_v1 }
0x1938   :  { %v1996_v31 = vpop.xlane.xlu2 %1995 }
0x1939   :  { %v1998_v55 = vperm.slane %v1996_v31, 0  ;;  %v1999_v56 = vperm.slane %v1996_v31, 1  ;;  %v2000_v6 = vperm.slane %v1996_v31, 2  ;;  %v2001_v62 = vperm.slane %v1996_v31, 3 }
0x193a   :  { %v2002_v4 = vperm.slane %v1996_v31, 4  ;;  %v2003_v9 = vperm.slane %v1996_v31, 5 }
0x193b   :  { %v2014_v3 = vsub.f32 %v1938_v45, %v1998_v55  ;;  %v2015_v39 = vsub.f32 %v1939_v2, %v1999_v56  ;;  %v2016_v21 = vsub.f32 %v1940_v5, %v2000_v6  ;;  %v2017_v48 = vsub.f32 %v1941_v43, %v2001_v62 }
0x193c   :  { %v2018_v0 = vsub.f32 %v1942_v8, %v2002_v4  ;;  %v2019_v45 = vsub.f32 %v1943_v12, %v2003_v9  ;;  %v2004_v2 = vperm.slane %v1996_v31, 6  ;;  %v2005_v5 = vperm.slane %v1996_v31, 7 }
0x193d   :  { %v2022_v50 = vmul.f32 1.442695, %v2014_v3  ;;  %v2024_v41 = vmul.f32 1.442695, %v2015_v39  ;;  %v2026_v30 = vmul.f32 1.442695, %v2016_v21 }
0x193e   :  { %v2028_v49 = vmul.f32 1.442695, %v2017_v48  ;;  %v2030_v24 = vmul.f32 1.442695, %v2018_v0  ;;  %v2032_v40 = vmul.f32 1.442695, %v2019_v45  ;;  %v2020_v42 = vsub.f32 %v4626_v17, %v2004_v2 }
0x193f   :  { %3491 = vpow2.f32 %v2022_v50  ;;  %v2021_v14 = vsub.f32 %v1945_v63, %v2005_v5 }
0x1940   :  { %3493 = vpow2.f32 %v2024_v41  ;;  %v2034_v8 = vmul.f32 1.442695, %v2020_v42 }
0x1941   :  { %3495 = vpow2.f32 %v2026_v30  ;;  %v2036_v29 = vmul.f32 1.442695, %v2021_v14 }
0x1942   :  { %3497 = vpow2.f32 %v2028_v49 }
0x1943   :  { %3499 = vpow2.f32 %v2030_v24 }
0x1944   :  { %3501 = vpow2.f32 %v2032_v40 }
0x1945   :  { %v4650_v46 = vpop.eup %3491  ;;  %3503 = vpow2.f32 %v2034_v8 }
0x1946   :  { %v3494_v7 = vpop.eup %3493  ;;  %2047 = vperm.xlu0 %3394, %v4650_v46   ;;  %3505 = vpow2.f32 %v2036_v29 }
0x1947   :  { %2050 = vperm.xlu1 %3395, %v3494_v7   ;;  %v3496_v43 = vpop.eup %3495 }
0x1948   :  { %v4653_v32 = vpop.eup %3497 }
0x1949   :  { %v3500_v44 = vpop.eup %3499 }
0x194a   :  { %v3502_v12 = vpop.eup %3501 }
0x194b   :  { %v3504_v27 = vpop.eup %3503 }
0x194c   :  { %v3506_v1 = vpop.eup %3505 }
0x194e   :  { %2053 = vperm.xlu0 %3394, %v3496_v43  }
0x194f   :  { %2056 = vperm.xlu1 %3395, %v4653_v32  }
0x1956   :  { %2059 = vperm.xlu0 %3394, %v3500_v44  }
0x1957   :  { %2062 = vperm.xlu1 %3395, %v3502_v12  }
0x195e   :  { %2065 = vperm.xlu0 %3394, %v3504_v27  }
0x195f   :  { %2068 = vperm.xlu1 %3395, %v3506_v1  }
0x19b8   :  { %v2048_v31 = vpop.permute.xlu0 %2047 }
0x19b9   :  { %v2051_v55 = vpop.permute.xlu1 %2050  ;;  %v2070_v63 = vperm.slane %v2048_v31, %v3911_v33 }
0x19ba   :  { %v2071_v6 = vperm.slane %v2051_v55, %v3911_v33 }
0x19bc   :  { %v2078_v50 = vsel %vm424_vm8, %v2071_v6, %v2070_v63 }
0x19c0   :  { %v2054_v17 = vpop.permute.xlu0 %2053 }
0x19c1   :  { %v2057_v56 = vpop.permute.xlu1 %2056  ;;  %v2072_v3 = vperm.slane %v2054_v17, %v3911_v33 }
0x19c2   :  { %v2073_v41 = vperm.slane %v2057_v56, %v3911_v33 }
0x19c3   :  { %v2079_v21 = vsel %vm426_vm9, %v2072_v3, %v2078_v50 }
0x19c4   :  { %v2080_v30 = vsel %vm428_vm10, %v2073_v41, %v2079_v21 }
0x19c8   :  { %v2060_v39 = vpop.permute.xlu0 %2059 }
0x19c9   :  { %v2063_v62 = vpop.permute.xlu1 %2062  ;;  %v2074_v48 = vperm.slane %v2060_v39, %v3911_v33 }
0x19ca   :  { %v2075_v4 = vperm.slane %v2063_v62, %v3911_v33 }
0x19cb   :  { %v2081_v9 = vsel %vm430_vm11, %v2074_v48, %v2080_v30 }
0x19cc   :  { %v2082_v24 = vsel %vm432_vm12, %v2075_v4, %v2081_v9 }
0x19d0   :  { %v2066_v49 = vpop.permute.xlu0 %2065 }
0x19d1   :  { %v2069_v0 = vpop.permute.xlu1 %2068  ;;  %v2076_v45 = vperm.slane %v2066_v49, %v3911_v33 }
0x19d2   :  { %v2077_v2 = vperm.slane %v2069_v0, %v3911_v33 }
0x19d3   :  { %v2083_v5 = vsel %vm434_vm13, %v2076_v45, %v2082_v24 }
0x19d4   :  { %v2084_v40 = vsel %vm436_vm14, %v2077_v2, %v2083_v5 }
0x19d5   :  { %v2086_v42 = vsel %vm439_vm15, %v2084_v40, 0.0 }
0x19d6   :  { %2087 = vadd.xlane.f32.xlu0 %v2086_v42 }
0x19ea   :  { %2219 = vrot.lane.b32.xlu0 %v4589_v26, %s3624_s25 }
0x1a49   :  { %v2088_v14 = vpop.xlane.xlu0 %2087 }
0x1a4a   :  { %3507 = vrcp.f32 %v2088_v14 }
0x1a50   :  { %v3508_v8 = vpop.eup %3507 }
0x1a51   :  { %v2092_v29 = vperm.slane %v3508_v8, 1  ;;  %v2091_v31 = vperm.slane %v3508_v8, 0  ;;  %v2096_v56 = vperm.slane %v3508_v8, 5  ;;  %v2093_v6 = vperm.slane %v3508_v8, 2 }
0x1a52   :  { %v2098_v39 = vperm.slane %v3508_v8, 7  ;;  %v2094_v62 = vperm.slane %v3508_v8, 3  ;;  %v2095_v21 = vperm.slane %v3508_v8, 4 }
0x1a53   :  { %v2108_v55 = vmul.f32 %v3494_v7, %v2092_v29  ;;  %v2107_v17 = vmul.f32 %v4650_v46, %v2091_v31  ;;  %v2112_v63 = vmul.f32 %v3502_v12, %v2096_v56  ;;  %v2109_v3 = vmul.f32 %v3496_v43, %v2093_v6 }
0x1a54   :  { %v2114_v50 = vmul.f32 %v3506_v1, %v2098_v39  ;;  %v2110_v41 = vmul.f32 %v4653_v32, %v2094_v62  ;;  %v2111_v48 = vmul.f32 %v3500_v44, %v2095_v21  ;;  %v2097_v7 = vperm.slane %v3508_v8, 6 }
0x1a55   :  { %2122 = vperm.xlu2 %3393, %v2108_v55   ;;  %2117 = vperm.xlu1 %3395, %v2107_v17  }
0x1a56   :  { %v2113_v46 = vmul.f32 %v3504_v27, %v2097_v7 }
0x1a5d   :  { %2142 = vperm.xlu2 %3393, %v2112_v63   ;;  %2127 = vperm.xlu1 %3395, %v2109_v3  }
0x1a65   :  { %2152 = vperm.xlu2 %3393, %v2114_v50   ;;  %2132 = vperm.xlu1 %3395, %v2110_v41  }
0x1a6d   :  { %2137 = vperm.xlu1 %3395, %v2111_v48  }
0x1a75   :  { %2147 = vperm.xlu1 %3395, %v2113_v46  }
0x1aaf   :  { %v2123_v4 = vpop.permute.xlu2 %2122 }
0x1ab0   :  { %v2156_v1 = vmul.f32 %v4451_v18, %v2123_v4 }
0x1ab2   :  { %v2170_v44 = vsel %vm276_vm7, %v2156_v1, 0.0 }
0x1ab3   :  { %v2171_v42 = vrot.slane %v2170_v44, 4 }
0x1ab5   :  { %v2172_v31 = vadd.f32 %v2171_v42, %v2170_v44 }
0x1ab7   :  { %v2143_v9 = vpop.permute.xlu2 %2142  ;;  %v2173_v3 = vrot.slane %v2172_v31, 2 }
0x1ab8   :  { %v2160_v5 = vmul.f32 %v4493_v51, %v2143_v9 }
0x1ab9   :  { %v2174_v46 = vadd.f32 %v2173_v3, %v2172_v31 }
0x1aba   :  { %v2198_v8 = vsel %vm276_vm7, %v2160_v5, 0.0 }
0x1abb   :  { %v2199_v6 = vrot.slane %v2198_v8, 4 }
0x1abd   :  { %v2200_v41 = vadd.f32 %v2199_v6, %v2198_v8 }
0x1abf   :  { %v2153_v2 = vpop.permute.xlu2 %2152 }
0x1ac7   :  { %v2118_v30 = vpop.permute.xlu1 %2117 }
0x1ac8   :  { %v2155_v43 = vmul.f32 %v4457_v19, %v2118_v30 }
0x1aca   :  { %v2163_v32 = vsel %vm276_vm7, %v2155_v43, 0.0  ;;  %v2201_v43 = vrot.slane %v2200_v41, 2 }
0x1acb   :  { %v2164_v27 = vrot.slane %v2163_v32, 4 }
0x1acc   :  { %v2202_v5 = vadd.f32 %v2201_v43, %v2200_v41  ;;  %v2220_v41 = vpop.permute.xlu0 %2219  ;;  %v3607_v43 = vld [vmem:[%s5098_s9 + $0x10] sm:$0xff] }
0x1acd   :  { %v2165_v14 = vadd.f32 %v2164_v27, %v2163_v32 }
0x1ace   :  { %v2203_v31 = vrot.slane %v2202_v5, 1 }
0x1acf   :  { %v2128_v12 = vpop.permute.xlu1 %2127 }
0x1ad0   :  { %v2157_v49 = vmul.f32 %v4463_v28, %v2128_v12  ;;  %v2162_v28 = vmul.f32 %v4500_v22, %v2153_v2 }
0x1ad2   :  { %v2177_v0 = vsel %vm276_vm7, %v2157_v49, 0.0  ;;  %v2212_v17 = vsel %vm276_vm7, %v2162_v28, 0.0 }
0x1ad3   :  { %v2178_v40 = vrot.slane %v2177_v0, 4  ;;  %v2213_v39 = vrot.slane %v2212_v17, 4 }
0x1ad5   :  { %v2179_v29 = vadd.f32 %v2178_v40, %v2177_v0  ;;  %v2214_v4 = vadd.f32 %v2213_v39, %v2212_v17  ;;  %v2175_v0 = vrot.slane %v2174_v46, 1 }
0x1ad7   :  { %v2133_v45 = vpop.permute.xlu1 %2132  ;;  %v2180_v63 = vrot.slane %v2179_v29, 2  ;;  %v2215_v44 = vrot.slane %v2214_v4, 2  ;;  %v2176_v28 = vadd.f32 %v2175_v0, %v2174_v46 }
0x1ad8   :  { %v2158_v24 = vmul.f32 %v4478_v53, %v2133_v45  ;;  %v2166_v53 = vrot.slane %v2165_v14, 2 }
0x1ad9   :  { %v2181_v48 = vadd.f32 %v2180_v63, %v2179_v29  ;;  %v2204_v63 = vadd.f32 %v2203_v31, %v2202_v5  ;;  %v4745_v5 = vld [vmem:[%s5090_s8] ss:$0 sm:$0xff] }
0x1ada   :  { %v2184_v19 = vsel %vm276_vm7, %v2158_v24, 0.0  ;;  %v2167_v21 = vadd.f32 %v2166_v53, %v2165_v14 }
0x1adb   :  { %v2185_v18 = vrot.slane %v2184_v19, 4  ;;  %v2182_v1 = vrot.slane %v2181_v48, 1 }
0x1adc   :  { %v2168_v49 = vrot.slane %v2167_v21, 1 }
0x1add   :  { %v2186_v55 = vadd.f32 %v2185_v18, %v2184_v19  ;;  %v2183_v42 = vadd.f32 %v2182_v1, %v2181_v48  ;;  %v2216_v18 = vadd.f32 %v2215_v44, %v2214_v4  ;;  %v3371_v1 = vld [vmem:[%s5092_s0 + $0x20] sm:$0xff] }
0x1ade   :  { %v2169_v40 = vadd.f32 %v2168_v49, %v2167_v21  ;;  %v3608_v49 = vld [vmem:[%s5098_s9 + $0x8] sm:$0xff] }
0x1adf   :  { %v2138_v56 = vpop.permute.xlu1 %2137  ;;  %v2187_v62 = vrot.slane %v2186_v55, 2 }
0x1ae0   :  { %v2159_v51 = vmul.f32 %v4472_v15, %v2138_v56  ;;  %v2217_v56 = vrot.slane %v2216_v18, 1 }
0x1ae1   :  { %v2188_v30 = vadd.f32 %v2187_v62, %v2186_v55 }
0x1ae2   :  { %v2191_v22 = vsel %vm276_vm7, %v2159_v51, 0.0  ;;  %v2218_v39 = vadd.f32 %v2217_v56, %v2216_v18 }
0x1ae3   :  { %v2192_v50 = vrot.slane %v2191_v22, 4  ;;  %v2189_v45 = vrot.slane %v2188_v30, 1 }
0x1ae5   :  { %v2193_v7 = vadd.f32 %v2192_v50, %v2191_v22  ;;  %v2190_v14 = vadd.f32 %v2189_v45, %v2188_v30  ;;  %v3602_v30 = vld [vmem:[%s5098_s9 + $0x38] sm:$0xff] }
0x1ae7   :  { %v2194_v9 = vrot.slane %v2193_v7, 2  ;;  %v2148_v12 = vpop.permute.xlu1 %2147 }
0x1ae8   :  { %v2161_v15 = vmul.f32 %v4485_v16, %v2148_v12  ;;  %v2230_v16 = vsel %vm424_vm8, %v2176_v28, %v2169_v40  ;;  %v3606_v12 = vld [vmem:[%s5098_s9 + $0x18] sm:$0xff] }
0x1ae9   :  { %v2195_v32 = vadd.f32 %v2194_v9, %v2193_v7  ;;  %v2231_v55 = vsel %vm426_vm9, %v2183_v42, %v2230_v16  ;;  %v3605_v9 = vld [vmem:[%s5098_s9 + $0x20] sm:$0xff] }
0x1aea   :  { %v2205_v2 = vsel %vm276_vm7, %v2161_v15, 0.0  ;;  %v2232_v6 = vsel %vm428_vm10, %v2190_v14, %v2231_v55  ;;  %v3609_v15 = vld [vmem:[%s5098_s9] sm:$0xff] }
0x1aeb   :  { %v2196_v27 = vrot.slane %v2195_v32, 1  ;;  %v2206_v24 = vrot.slane %v2205_v2, 4 }
0x1aed   :  { %v2207_v19 = vadd.f32 %v2206_v24, %v2205_v2  ;;  %v2197_v8 = vadd.f32 %v2196_v27, %v2195_v32 }
0x1aef   :  { %v2208_v29 = vrot.slane %v2207_v19, 2  ;;  %v2233_v51 = vsel %vm430_vm11, %v2197_v8, %v2232_v6 }
0x1af0   :  { %v2234_v62 = vsel %vm432_vm12, %v2204_v63, %v2233_v51 }
0x1af1   :  { %v2209_v17 = vadd.f32 %v2208_v29, %v2207_v19 }
0x1af3   :  { %v2210_v53 = vrot.slane %v2209_v17, 1 }
0x1af5   :  { %v2211_v3 = vadd.f32 %v2210_v53, %v2209_v17 }
0x1af7   :  { %v2235_v22 = vsel %vm434_vm13, %v2211_v3, %v2234_v62 }
0x1af8   :  { %v2236_v50 = vsel %vm436_vm14, %v2218_v39, %v2235_v22 }
0x1af9   :  { %2237 = vrot.lane.b32.xlu1 %v2236_v50, %s3624_s25 }
0x1b01   :  { %2295 = vrot.lane.b32.xlu1 %v4589_v26, %s3627_s2  ;;  %v3603_v26 = vld [vmem:[%s5098_s9 + $0x30] sm:$0xff] }
0x1b6b   :  { %v2238_v21 = vpop.permute.xlu1 %2237 }
0x1b6c   :  { %v2240_v48 = vsel %vm276_vm7, %v2220_v41, %v2238_v21 }
0x1b6d   :  { %3368 = vmatmul.msk.f32.vlgmr.msrb.gmra.mxu1 %vm687_vm3, %v2240_v48 }
0x1b73   :  { %v2296_v0 = vpop.permute.xlu1 %2295 }
0x1bea   :  { %v2261_v7 = vpop.f32.mrf.mxu1 }
0x1beb   :  { %v2262_v46 = vadd.f32 %v4531_v20, %v2261_v7  ;;  %v3604_v20 = vld [vmem:[%s5098_s9 + $0x28] sm:$0xff] }
0x1bed   :  { %3509 = vtanh.f32 %v2262_v46 }
0x1bf3   :  { %v3510_v4 = vpop.eup %3509 }
0x1bf4   :  { %2292 = vrot.lane.b32.xlu2 %v3510_v4, %s3621_s26  ;;  %3369 = vmatmul.msk.f32.vlgmr.msra.gmra.mxu3 %vm276_vm7, %v3510_v4 }
0x1bf5   :  { %3288 = vmatpush.msra.mxu3 %v3602_v30 }
0x1bf7   :  { %3289 = vmatpush.msra.mxu3 %v3603_v26 }
0x1bf9   :  { %3290 = vmatpush.msra.mxu3 %v3604_v20 }
0x1bfb   :  { %3291 = vmatpush.msra.mxu3 %v3605_v9 }
0x1bfd   :  { %3292 = vmatpush.msra.mxu3 %v3606_v12 }
0x1bff   :  { %3293 = vmatpush.msra.mxu3 %v3607_v43 }
0x1c01   :  { %3294 = vmatpush.msra.mxu3 %v3608_v49 }
0x1c03   :  { %3295 = vmatpush.msra.mxu3 %v3609_v15 }
0x1c4e   :  { %v2293_v32 = vpop.permute.xlu2 %2292 }
0x1c4f   :  { %v2298_v44 = vsel %vm111_vm0, %v3371_v1, %v2293_v32 }
0x1c50   :  { %v2299_v45 = vsel %vm113_vm1, %v2298_v44, %v2296_v0 }
0x1c51   :  { %3372 = vmatmul.msk.f32.vlgmr.msra.gmra.mxu0 %vm5122_vm5, %v2299_v45 }
0x1c77   :  { %v2285_v2 = vpop.f32.mrf.mxu3 }
0x1c78   :  { %v2286_v27 = vadd.f32 %v4575_v47, %v2285_v2 }
0x1c7a   :  { %3370 = vst [vmem:[%s5101_s13 + $0x18] sm:$0xff] %v2286_v27 }
0x1cce   :  { %v2320_v24 = vpop.f32.mrf.mxu0 }
0x1ccf   :  { %v2321_v40 = vadd.f32 %v4745_v5, %v2320_v24 }
0x1cd1   :  { %3511 = vtanh.f32 %v2321_v40  ;;  %v3373_v19 = vmul.f32 -1.442695, %v2321_v40 }
0x1cd3   :  { %3513 = vpow2.f32 %v3373_v19 }
0x1cd7   :  { %v3512_v42 = vpop.eup %3511 }
0x1cd8   :  { %2345 = vrot.lane.b32.xlu2 %v3512_v42, %s3623_s22 }
0x1cd9   :  { %v3514_v28 = vpop.eup %3513 }
0x1cda   :  { %v2326_v47 = vadd.f32 1.0, %v3514_v28 }
0x1cdc   :  { %3515 = vrcp.f32 %v2326_v47  ;;  %v2338_v16 = vand.u32 2147483648, %v2326_v47  ;;  %vm2332_vm2 = vweird.f32 %v2326_v47  ;;  %v2336_v55 = vand.u32 2147483647, %v2326_v47 }
0x1cde   :  { %v2339_v56 = vor.u32 1.1754944e-38, %v2338_v16  ;;  %vm2337_vm5 = vcmp.eq.f32.partialorder %v2336_v55, 8.507059e+37 }
0x1ce2   :  { %v3516_v18 = vpop.eup %3515 }
0x1ce3   :  { %v2328_v14 = vmul.f32 %v3516_v18, %v2326_v47  ;;  %vm2333_vm6 = vweird.f32 %v3516_v18 }
0x1ce4   :  { %vm2334_vm4 = vmor %vm2332_vm2, %vm2333_vm6  ;;  %vm5123_vm6 = vcmask 654336  }
0x1ce5   :  { %v2329_v8 = vsub.f32 1.0, %v2328_v14 }
0x1ce7   :  { %v2330_v29 = vmul.f32 %v3516_v18, %v2329_v8 }
0x1ce9   :  { %v2331_v31 = vadd.f32 %v3516_v18, %v2330_v29 }
0x1ceb   :  { %v2335_v17 = vsel %vm2334_vm4, %v3516_v18, %v2331_v31 }
0x1cec   :  { %v2340_v53 = vsel %vm2337_vm5, %v2339_v56, %v2335_v17 }
0x1ced   :  { %v2343_v63 = vmul.f32 %v2340_v53, %v4585_v10 }
0x1d32   :  { %v2346_v6 = vpop.permute.xlu2 %2345 }
0x1d33   :  { %v2348_v51 = vmul.f32 %v2346_v6, %v2340_v53 }
0x1d35   :  { %2350 = vrot.lane.b32.xlu1 %v2348_v51, %s3624_s25 }
0x1da7   :  { %v2351_v3 = vpop.permute.xlu1 %2350 }
0x1da8   :  { %v4751_v39 = vadd.f32 %v2351_v3, %v2343_v63 }
0x1daa   :  { %3517 = vtanh.f32 %v4751_v39 }
0x1db0   :  { %v3518_v62 = vpop.eup %3517 }
0x1db1   :  { %2356 = vrot.lane.b32.xlu0 %v3518_v62, %s3623_s22 }
0x1e23   :  { %v2357_v22 = vpop.permute.xlu0 %2356 }
0x1e24   :  { %v4755_v50 = vmul.f32 %v2357_v22, %v2340_v53 }
0x1e26   :  { %v2368_v41 = vperm.slane %v4755_v50, 0  ;;  %v2362_v21 = vrot.slane %v4755_v50, 2  ;;  %v2361_v48 = vrot.slane %v4755_v50, 1  ;;  %v2363_v4 = vrot.slane %v4755_v50, 3 }
0x1e27   :  { %v2365_v20 = vrot.slane %v4755_v50, 5  ;;  %v2364_v9 = vrot.slane %v4755_v50, 4  ;;  %v2366_v1 = vrot.slane %v4755_v50, 6  ;;  %v2367_v44 = vrot.slane %v4755_v50, 7 }
0x1e28   :  { %v2384_v7 = vmul.f32 %v2368_v41, %v3820_v60  ;;  %v2370_v10 = vperm.slane %v2362_v21, 0  ;;  %v2369_v46 = vperm.slane %v2361_v48, 0  ;;  %v2371_v12 = vperm.slane %v2363_v4, 0 }
0x1e29   :  { %v2373_v43 = vperm.slane %v2365_v20, 0  ;;  %v2372_v49 = vperm.slane %v2364_v9, 0  ;;  %v2374_v45 = vperm.slane %v2366_v1, 0  ;;  %v2375_v2 = vperm.slane %v2367_v44, 0 }
0x1e2a   :  { %2400 = vrot.lane.b32.xlu2 %v2384_v7, %s3624_s25  ;;  %v2386_v30 = vmul.f32 %v2370_v10, %v3814_v57  ;;  %v2385_v26 = vmul.f32 %v2369_v46, %v3822_v61  ;;  %v2387_v15 = vmul.f32 %v2371_v12, %v3836_v11 }
0x1e2b   :  { %v2389_v32 = vmul.f32 %v2373_v43, %v3816_v58  ;;  %v2388_v0 = vmul.f32 %v2372_v49, %v3840_v13  ;;  %v2390_v27 = vmul.f32 %v2374_v45, %v3850_v23  ;;  %v2391_v24 = vmul.f32 %v2375_v2, %v3852_v25 }
0x1e2c   :  { %2404 = vrot.lane.b32.xlu0 %v2386_v30, %s3624_s25  ;;  %2402 = vrot.lane.b32.xlu1 %v2385_v26, %s3624_s25 }
0x1e32   :  { %2406 = vrot.lane.b32.xlu2 %v2387_v15, %s3624_s25 }
0x1e34   :  { %2410 = vrot.lane.b32.xlu0 %v2389_v32, %s3624_s25  ;;  %2408 = vrot.lane.b32.xlu1 %v2388_v0, %s3624_s25 }
0x1e3a   :  { %2412 = vrot.lane.b32.xlu2 %v2390_v27, %s3624_s25 }
0x1e3c   :  { %2414 = vrot.lane.b32.xlu1 %v2391_v24, %s3624_s25 }
0x1e84   :  { %v2401_v40 = vpop.permute.xlu2 %2400 }
0x1e85   :  { %v2424_v42 = vsel %vm276_vm7, %v2401_v40, 0.0 }
0x1e86   :  { %2425 = vadd.xlane.f32.xlu0 %v2424_v42 }
0x1e8c   :  { %v2407_v19 = vpop.permute.xlu2 %2406 }
0x1e8d   :  { %v2433_v28 = vsel %vm276_vm7, %v2407_v19, 0.0 }
0x1e8e   :  { %2434 = vadd.xlane.f32.xlu0 %v2433_v28 }
0x1e94   :  { %v2413_v47 = vpop.permute.xlu2 %2412 }
0x1e95   :  { %v2442_v18 = vsel %vm276_vm7, %v2413_v47, 0.0 }
0x1e96   :  { %2443 = vadd.xlane.f32.xlu0 %v2442_v18 }
0x1e9e   :  { %v2405_v14 = vpop.permute.xlu0 %2404  ;;  %v2403_v8 = vpop.permute.xlu1 %2402 }
0x1e9f   :  { %v2430_v29 = vsel %vm276_vm7, %v2405_v14, 0.0  ;;  %v2427_v31 = vsel %vm276_vm7, %v2403_v8, 0.0 }
0x1ea0   :  { %2431 = vadd.xlane.f32.xlu1 %v2430_v29  ;;  %2428 = vadd.xlane.f32.xlu2 %v2427_v31 }
0x1ea6   :  { %v2411_v16 = vpop.permute.xlu0 %2410  ;;  %v2409_v55 = vpop.permute.xlu1 %2408 }
0x1ea7   :  { %v2439_v17 = vsel %vm276_vm7, %v2411_v16, 0.0  ;;  %v2436_v56 = vsel %vm276_vm7, %v2409_v55, 0.0 }
0x1ea8   :  { %2440 = vadd.xlane.f32.xlu1 %v2439_v17  ;;  %2437 = vadd.xlane.f32.xlu2 %v2436_v56 }
0x1eae   :  { %v2415_v6 = vpop.permute.xlu1 %2414 }
0x1eaf   :  { %v2445_v53 = vsel %vm276_vm7, %v2415_v6, 0.0 }
0x1eb0   :  { %2446 = vadd.xlane.f32.xlu2 %v2445_v53 }
0x1ef9   :  { %v2426_v51 = vpop.xlane.xlu0 %2425 }
0x1efa   :  { %v2448_v63 = vadd.f32 %v2426_v51, %v3818_v59 }
0x1efc   :  { %v2456_v3 = vmul.f32 0.17677669, %v2448_v63 }
0x1efe   :  { %2473 = vperm.xlu1 %3395, %v2456_v3  }
0x1f01   :  { %v2435_v48 = vpop.xlane.xlu0 %2434 }
0x1f02   :  { %v2451_v46 = vadd.f32 %v2435_v48, %v3867_v37 }
0x1f04   :  { %v2459_v9 = vmul.f32 0.17677669, %v2451_v46 }
0x1f09   :  { %v2444_v49 = vpop.xlane.xlu0 %2443 }
0x1f0a   :  { %v2454_v15 = vadd.f32 %v2444_v49, %v3876_v54 }
0x1f0c   :  { %v2462_v0 = vmul.f32 0.17677669, %v2454_v15 }
0x1f13   :  { %v2429_v62 = vpop.xlane.xlu2 %2428  ;;  %v2432_v22 = vpop.xlane.xlu1 %2431 }
0x1f14   :  { %v2449_v41 = vadd.f32 %v2429_v62, %v3863_v35  ;;  %v2450_v21 = vadd.f32 %v2432_v22, %v3865_v36 }
0x1f16   :  { %v2457_v7 = vmul.f32 0.17677669, %v2449_v41  ;;  %v2458_v10 = vmul.f32 0.17677669, %v2450_v21 }
0x1f18   :  { %2476 = vperm.xlu0 %3394, %v2457_v7   ;;  %2479 = vperm.xlu2 %3393, %v2458_v10  }
0x1f1b   :  { %v2438_v4 = vpop.xlane.xlu2 %2437  ;;  %v2441_v30 = vpop.xlane.xlu1 %2440 }
0x1f1c   :  { %v2452_v26 = vadd.f32 %v2438_v4, %v5118_v52  ;;  %v2453_v20 = vadd.f32 %v2441_v30, %v5119_v34 }
0x1f1e   :  { %v2460_v12 = vmul.f32 0.17677669, %v2452_v26  ;;  %v2461_v43 = vmul.f32 0.17677669, %v2453_v20 }
0x1f20   :  { %2482 = vperm.xlu0 %3394, %v2459_v9   ;;  %2485 = vperm.xlu1 %3395, %v2460_v12  }
0x1f21   :  { %2488 = vperm.xlu2 %3393, %v2461_v43  }
0x1f23   :  { %v2447_v1 = vpop.xlane.xlu2 %2446 }
0x1f24   :  { %v2455_v32 = vadd.f32 %v2447_v1, %v5120_v38 }
0x1f26   :  { %v4797_v44 = vmul.f32 0.17677669, %v2455_v32 }
0x1f28   :  { %2491 = vperm.xlu0 %3394, %v2462_v0   ;;  %2494 = vperm.xlu1 %3395, %v4797_v44  }
0x1f70   :  { %v2474_v45 = vpop.permute.xlu1 %2473 }
0x1f71   :  { %v2496_v40 = vperm.slane %v2474_v45, %v3911_v33 }
0x1f72   :  { %v2480_v27 = vpop.permute.xlu2 %2479 }
0x1f73   :  { %v2498_v47 = vperm.slane %v2480_v27, %v3911_v33 }
0x1f7b   :  { %v2489_v31 = vpop.permute.xlu2 %2488 }
0x1f7c   :  { %v2501_v55 = vperm.slane %v2489_v31, %v3911_v33 }
0x1f8a   :  { %v2477_v2 = vpop.permute.xlu0 %2476 }
0x1f8b   :  { %v2497_v24 = vperm.slane %v2477_v2, %v3911_v33 }
0x1f8d   :  { %v2504_v42 = vsel %vm424_vm8, %v2497_v24, %v2496_v40 }
0x1f8e   :  { %v2505_v14 = vsel %vm426_vm9, %v2498_v47, %v2504_v42 }
0x1f92   :  { %v2483_v19 = vpop.permute.xlu0 %2482  ;;  %v2486_v28 = vpop.permute.xlu1 %2485 }
0x1f93   :  { %v2499_v18 = vperm.slane %v2483_v19, %v3911_v33  ;;  %v2500_v8 = vperm.slane %v2486_v28, %v3911_v33 }
0x1f95   :  { %v2506_v29 = vsel %vm428_vm10, %v2499_v18, %v2505_v14 }
0x1f96   :  { %v2507_v16 = vsel %vm430_vm11, %v2500_v8, %v2506_v29 }
0x1f97   :  { %v2508_v51 = vsel %vm432_vm12, %v2501_v55, %v2507_v16 }
0x1f9a   :  { %v2492_v17 = vpop.permute.xlu0 %2491  ;;  %v2495_v56 = vpop.permute.xlu1 %2494 }
0x1f9b   :  { %v2502_v6 = vperm.slane %v2492_v17, %v3911_v33  ;;  %v2503_v53 = vperm.slane %v2495_v56, %v3911_v33 }
0x1f9d   :  { %v2509_v63 = vsel %vm434_vm13, %v2502_v6, %v2508_v51 }
0x1f9e   :  { %v2510_v62 = vsel %vm436_vm14, %v2503_v53, %v2509_v63 }
0x1f9f   :  { %v2512_v22 = vsel %vm439_vm15, %v2510_v62, -inf }
0x1fa0   :  { %2513 = vmax.xlane.f32.xlu2 %v2512_v22 }
0x2013   :  { %v2514_v41 = vpop.xlane.xlu2 %2513 }
0x2014   :  { %v2516_v21 = vperm.slane %v2514_v41, 0  ;;  %v2517_v48 = vperm.slane %v2514_v41, 1  ;;  %v2518_v46 = vperm.slane %v2514_v41, 2  ;;  %v2519_v26 = vperm.slane %v2514_v41, 3 }
0x2015   :  { %v2520_v32 = vperm.slane %v2514_v41, 4  ;;  %v2521_v2 = vperm.slane %v2514_v41, 5 }
0x2016   :  { %v2532_v4 = vsub.f32 %v2456_v3, %v2516_v21  ;;  %v2533_v30 = vsub.f32 %v2457_v7, %v2517_v48  ;;  %v2534_v15 = vsub.f32 %v2458_v10, %v2518_v46  ;;  %v2535_v1 = vsub.f32 %v2459_v9, %v2519_v26 }
0x2017   :  { %v2536_v42 = vsub.f32 %v2460_v12, %v2520_v32  ;;  %v2537_v3 = vsub.f32 %v2461_v43, %v2521_v2  ;;  %v2522_v7 = vperm.slane %v2514_v41, 6  ;;  %v2523_v10 = vperm.slane %v2514_v41, 7 }
0x2018   :  { %v2540_v20 = vmul.f32 1.442695, %v2532_v4  ;;  %v2542_v49 = vmul.f32 1.442695, %v2533_v30  ;;  %v2544_v45 = vmul.f32 1.442695, %v2534_v15 }
0x2019   :  { %v2546_v27 = vmul.f32 1.442695, %v2535_v1  ;;  %v2548_v19 = vmul.f32 1.442695, %v2536_v42  ;;  %v2550_v28 = vmul.f32 1.442695, %v2537_v3  ;;  %v2538_v18 = vsub.f32 %v2462_v0, %v2522_v7 }
0x201a   :  { %3519 = vpow2.f32 %v2540_v20  ;;  %v2539_v14 = vsub.f32 %v4797_v44, %v2523_v10 }
0x201b   :  { %3521 = vpow2.f32 %v2542_v49  ;;  %v2552_v12 = vmul.f32 1.442695, %v2538_v18 }
0x201c   :  { %3523 = vpow2.f32 %v2544_v45  ;;  %v2554_v8 = vmul.f32 1.442695, %v2539_v14 }
0x201d   :  { %3525 = vpow2.f32 %v2546_v27 }
0x201e   :  { %3527 = vpow2.f32 %v2548_v19 }
0x201f   :  { %3529 = vpow2.f32 %v2550_v28 }
0x2020   :  { %v4816_v24 = vpop.eup %3519  ;;  %3531 = vpow2.f32 %v2552_v12 }
0x2021   :  { %v3522_v40 = vpop.eup %3521  ;;  %2565 = vperm.xlu0 %3394, %v4816_v24   ;;  %3533 = vpow2.f32 %v2554_v8 }
0x2022   :  { %2568 = vperm.xlu1 %3395, %v3522_v40   ;;  %v3524_v9 = vpop.eup %3523 }
0x2023   :  { %v4819_v47 = vpop.eup %3525 }
0x2024   :  { %v3528_v29 = vpop.eup %3527 }
0x2025   :  { %v3530_v43 = vpop.eup %3529 }
0x2026   :  { %v3532_v31 = vpop.eup %3531 }
0x2027   :  { %v3534_v16 = vpop.eup %3533 }
0x2029   :  { %2571 = vperm.xlu0 %3394, %v3524_v9  }
0x202a   :  { %2574 = vperm.xlu1 %3395, %v4819_v47  }
0x2031   :  { %2577 = vperm.xlu0 %3394, %v3528_v29  }
0x2032   :  { %2580 = vperm.xlu1 %3395, %v3530_v43  }
0x2039   :  { %2583 = vperm.xlu0 %3394, %v3532_v31  }
0x203a   :  { %2586 = vperm.xlu1 %3395, %v3534_v16  }
0x2093   :  { %v2566_v55 = vpop.permute.xlu0 %2565 }
0x2094   :  { %v2569_v0 = vpop.permute.xlu1 %2568  ;;  %v2588_v44 = vperm.slane %v2566_v55, %v3911_v33 }
0x2095   :  { %v2589_v6 = vperm.slane %v2569_v0, %v3911_v33 }
0x2097   :  { %v2596_v62 = vsel %vm424_vm8, %v2589_v6, %v2588_v44 }
0x209b   :  { %v2572_v17 = vpop.permute.xlu0 %2571 }
0x209c   :  { %v2575_v56 = vpop.permute.xlu1 %2574  ;;  %v2590_v53 = vperm.slane %v2572_v17, %v3911_v33 }
0x209d   :  { %v2591_v22 = vperm.slane %v2575_v56, %v3911_v33 }
0x209e   :  { %v2597_v41 = vsel %vm426_vm9, %v2590_v53, %v2596_v62 }
0x209f   :  { %v2598_v46 = vsel %vm428_vm10, %v2591_v22, %v2597_v41 }
0x20a3   :  { %v2578_v51 = vpop.permute.xlu0 %2577 }
0x20a4   :  { %v2581_v63 = vpop.permute.xlu1 %2580  ;;  %v2592_v21 = vperm.slane %v2578_v51, %v3911_v33 }
0x20a5   :  { %v2593_v48 = vperm.slane %v2581_v63, %v3911_v33 }
0x20a6   :  { %v2599_v4 = vsel %vm430_vm11, %v2592_v21, %v2598_v46  ;;  %v4867_v46 = vld [vmem:[%s5096_s1 + $0x18] sm:$0xff] }
0x20a7   :  { %v2600_v15 = vsel %vm432_vm12, %v2593_v48, %v2599_v4 }
0x20ab   :  { %v2584_v30 = vpop.permute.xlu0 %2583 }
0x20ac   :  { %v2587_v26 = vpop.permute.xlu1 %2586  ;;  %v2594_v20 = vperm.slane %v2584_v30, %v3911_v33  ;;  %v4873_v30 = vld [vmem:[%s5096_s1 + $0x28] sm:$0xff] }
0x20ad   :  { %v2595_v49 = vperm.slane %v2587_v26, %v3911_v33 }
0x20ae   :  { %v2601_v1 = vsel %vm434_vm13, %v2594_v20, %v2600_v15 }
0x20af   :  { %v2602_v32 = vsel %vm436_vm14, %v2595_v49, %v2601_v1  ;;  %v4880_v1 = vld [vmem:[%s5096_s1 + $0x38] sm:$0xff] }
0x20b0   :  { %v2604_v45 = vsel %vm439_vm15, %v2602_v32, 0.0 }
0x20b1   :  { %2605 = vadd.xlane.f32.xlu0 %v2604_v45 }
0x20c5   :  { %2737 = vrot.lane.b32.xlu0 %v4755_v50, %s3624_s25 }
0x2124   :  { %v2606_v2 = vpop.xlane.xlu0 %2605 }
0x2125   :  { %3535 = vrcp.f32 %v2606_v2 }
0x212b   :  { %v3536_v27 = vpop.eup %3535 }
0x212c   :  { %v2610_v42 = vperm.slane %v3536_v27, 1  ;;  %v2609_v3 = vperm.slane %v3536_v27, 0  ;;  %v2614_v10 = vperm.slane %v3536_v27, 5  ;;  %v2611_v28 = vperm.slane %v3536_v27, 2 }
0x212d   :  { %v2616_v12 = vperm.slane %v3536_v27, 7  ;;  %v2612_v8 = vperm.slane %v3536_v27, 3  ;;  %v2613_v17 = vperm.slane %v3536_v27, 4 }
0x212e   :  { %v2626_v7 = vmul.f32 %v3522_v40, %v2610_v42  ;;  %v2625_v19 = vmul.f32 %v4816_v24, %v2609_v3  ;;  %v2630_v18 = vmul.f32 %v3530_v43, %v2614_v10  ;;  %v2627_v14 = vmul.f32 %v3524_v9, %v2611_v28  ;;  %v4846_v9 = vld [vmem:[%s5096_s1] sm:$0xff] }
0x212f   :  { %v2632_v55 = vmul.f32 %v3534_v16, %v2616_v12  ;;  %v2628_v0 = vmul.f32 %v4819_v47, %v2612_v8  ;;  %v2629_v56 = vmul.f32 %v3528_v29, %v2613_v17  ;;  %v2615_v40 = vperm.slane %v3536_v27, 6  ;;  %v4852_v47 = vld [vmem:[%s5096_s1 + $0x10] sm:$0xff] }
0x2130   :  { %2640 = vperm.xlu2 %3393, %v2626_v7   ;;  %2635 = vperm.xlu1 %3395, %v2625_v19  }
0x2131   :  { %v2631_v24 = vmul.f32 %v3532_v31, %v2615_v40  ;;  %v4858_v31 = vld [vmem:[%s5096_s1 + $0x8] sm:$0xff] }
0x2138   :  { %2660 = vperm.xlu2 %3393, %v2630_v18   ;;  %2645 = vperm.xlu1 %3395, %v2627_v14   ;;  %v4888_v14 = vld [vmem:[%s5096_s1 + $0x20] sm:$0xff] }
0x2140   :  { %2670 = vperm.xlu2 %3393, %v2632_v55   ;;  %2650 = vperm.xlu1 %3395, %v2628_v0  }
0x2148   :  { %2655 = vperm.xlu1 %3395, %v2629_v56  }
0x2150   :  { %2665 = vperm.xlu1 %3395, %v2631_v24  }
0x218a   :  { %v2641_v6 = vpop.permute.xlu2 %2640 }
0x218b   :  { %v2674_v51 = vmul.f32 %v4858_v31, %v2641_v6 }
0x218d   :  { %v2688_v22 = vsel %vm276_vm7, %v2674_v51, 0.0 }
0x218e   :  { %v2689_v49 = vrot.slane %v2688_v22, 4 }
0x2190   :  { %v2690_v3 = vadd.f32 %v2689_v49, %v2688_v22 }
0x2192   :  { %v2661_v53 = vpop.permute.xlu2 %2660  ;;  %v2691_v55 = vrot.slane %v2690_v3, 2 }
0x2193   :  { %v2678_v26 = vmul.f32 %v4873_v30, %v2661_v53 }
0x2195   :  { %v2716_v27 = vsel %vm276_vm7, %v2678_v26, 0.0 }
0x2196   :  { %v2717_v28 = vrot.slane %v2716_v27, 4 }
0x2198   :  { %v2718_v24 = vadd.f32 %v2717_v28, %v2716_v27 }
0x219a   :  { %v2671_v21 = vpop.permute.xlu2 %2670 }
0x219b   :  { %v2680_v32 = vmul.f32 %v4880_v1, %v2671_v21 }
0x219d   :  { %v2730_v19 = vsel %vm276_vm7, %v2680_v32, 0.0 }
0x219e   :  { %v2731_v0 = vrot.slane %v2730_v19, 4 }
0x21a2   :  { %v2636_v44 = vpop.permute.xlu1 %2635 }
0x21a3   :  { %v2673_v16 = vmul.f32 %v4846_v9, %v2636_v44 }
0x21a5   :  { %v2681_v63 = vsel %vm276_vm7, %v2673_v16, 0.0  ;;  %v2732_v16 = vadd.f32 %v2731_v0, %v2730_v19 }
0x21a6   :  { %v2682_v48 = vrot.slane %v2681_v63, 4 }
0x21a8   :  { %v2683_v2 = vadd.f32 %v2682_v48, %v2681_v63 }
0x21aa   :  { %v2646_v43 = vpop.permute.xlu1 %2645  ;;  %v2684_v18 = vrot.slane %v2683_v2, 2 }
0x21ab   :  { %v2675_v29 = vmul.f32 %v4852_v47, %v2646_v43  ;;  %v2692_v43 = vadd.f32 %v2691_v55, %v2690_v3 }
0x21ac   :  { %v2685_v6 = vadd.f32 %v2684_v18, %v2683_v2 }
0x21ad   :  { %v2695_v62 = vsel %vm276_vm7, %v2675_v29, 0.0  ;;  %v2693_v26 = vrot.slane %v2692_v43, 1 }
0x21ae   :  { %v2696_v20 = vrot.slane %v2695_v62, 4  ;;  %v2686_v22 = vrot.slane %v2685_v6, 1 }
0x21b0   :  { %v2697_v42 = vadd.f32 %v2696_v20, %v2695_v62  ;;  %v2719_v62 = vrot.slane %v2718_v24, 2  ;;  %v2733_v20 = vrot.slane %v2732_v16, 2  ;;  %v2687_v27 = vadd.f32 %v2686_v22, %v2685_v6 }
0x21b2   :  { %v2651_v41 = vpop.permute.xlu1 %2650  ;;  %v2698_v8 = vrot.slane %v2697_v42, 2  ;;  %v2720_v2 = vadd.f32 %v2719_v62, %v2718_v24  ;;  %v2734_v19 = vadd.f32 %v2733_v20, %v2732_v16 }
0x21b3   :  { %v2676_v4 = vmul.f32 %v4867_v46, %v2651_v41  ;;  %v4895_v41 = vld [vmem:[%s5096_s1 + $0x30] sm:$0xff] }
0x21b4   :  { %v2699_v44 = vadd.f32 %v2698_v8, %v2697_v42 }
0x21b5   :  { %v2702_v15 = vsel %vm276_vm7, %v2676_v4, 0.0 }
0x21b6   :  { %v2703_v45 = vrot.slane %v2702_v15, 4  ;;  %v2700_v48 = vrot.slane %v2699_v44, 1 }
0x21b8   :  { %v2704_v7 = vadd.f32 %v2703_v45, %v2702_v15  ;;  %v2701_v42 = vadd.f32 %v2700_v48, %v2699_v44 }
0x21ba   :  { %v2656_v10 = vpop.permute.xlu1 %2655  ;;  %v2705_v17 = vrot.slane %v2704_v7, 2 }
0x21bb   :  { %v2677_v12 = vmul.f32 %v4888_v14, %v2656_v10 }
0x21bc   :  { %v2706_v29 = vadd.f32 %v2705_v17, %v2704_v7  ;;  %v2694_v7 = vadd.f32 %v2693_v26, %v2692_v43  ;;  %v2735_v17 = vrot.slane %v2734_v19, 1 }
0x21bd   :  { %v2709_v56 = vsel %vm276_vm7, %v2677_v12, 0.0  ;;  %v2721_v12 = vrot.slane %v2720_v2, 1 }
0x21be   :  { %v2710_v40 = vrot.slane %v2709_v56, 4  ;;  %v2707_v49 = vrot.slane %v2706_v29, 1  ;;  %v2748_v8 = vsel %vm424_vm8, %v2694_v7, %v2687_v27 }
0x21bf   :  { %v2749_v55 = vsel %vm426_vm9, %v2701_v42, %v2748_v8  ;;  %v2722_v6 = vadd.f32 %v2721_v12, %v2720_v2 }
0x21c0   :  { %v2711_v53 = vadd.f32 %v2710_v40, %v2709_v56  ;;  %v2708_v10 = vadd.f32 %v2707_v49, %v2706_v29 }
0x21c2   :  { %v2712_v51 = vrot.slane %v2711_v53, 2  ;;  %v2666_v63 = vpop.permute.xlu1 %2665  ;;  %v2750_v56 = vsel %vm428_vm10, %v2708_v10, %v2749_v55 }
0x21c3   :  { %v2679_v21 = vmul.f32 %v4895_v41, %v2666_v63 }
0x21c4   :  { %v2713_v4 = vadd.f32 %v2712_v51, %v2711_v53  ;;  %v2736_v53 = vadd.f32 %v2735_v17, %v2734_v19  ;;  %v2738_v51 = vpop.permute.xlu0 %2737 }
0x21c5   :  { %v2723_v15 = vsel %vm276_vm7, %v2679_v21, 0.0  ;;  %v4914_v21 = vld [vmem:[%s5097_s10] ss:$0 sm:$0xff] }
0x21c6   :  { %v2714_v32 = vrot.slane %v2713_v4, 1  ;;  %v2724_v45 = vrot.slane %v2723_v15, 4 }
0x21c8   :  { %v2725_v3 = vadd.f32 %v2724_v45, %v2723_v15  ;;  %v2715_v28 = vadd.f32 %v2714_v32, %v2713_v4  ;;  %v4928_v45 = vld [vmem:[%s5100_s12] ss:$0 sm:$0xff] }
0x21ca   :  { %v2726_v18 = vrot.slane %v2725_v3, 2  ;;  %v2751_v24 = vsel %vm430_vm11, %v2715_v28, %v2750_v56 }
0x21cb   :  { %v2752_v43 = vsel %vm432_vm12, %v2722_v6, %v2751_v24 }
0x21cc   :  { %v2727_v0 = vadd.f32 %v2726_v18, %v2725_v3 }
0x21ce   :  { %v2728_v40 = vrot.slane %v2727_v0, 1 }
0x21d0   :  { %v2729_v44 = vadd.f32 %v2728_v40, %v2727_v0 }
0x21d2   :  { %v2753_v16 = vsel %vm434_vm13, %v2729_v44, %v2752_v43 }
0x21d3   :  { %v2754_v29 = vsel %vm436_vm14, %v2736_v53, %v2753_v16 }
0x21d4   :  { %2755 = vrot.lane.b32.xlu1 %v2754_v29, %s3624_s25 }
0x21dc   :  { %2813 = vrot.lane.b32.xlu1 %v4755_v50, %s3627_s2  ;;  %v3377_v50 = vld [vmem:[%s5092_s0 + $0x28] sm:$0xff] }
0x2246   :  { %v2756_v63 = vpop.permute.xlu1 %2755 }
0x2247   :  { %v2758_v62 = vsel %vm276_vm7, %v2738_v51, %v2756_v63 }
0x2248   :  { %3374 = vmatmul.msk.f32.vlgmr.msrb.gmra.mxu2 %vm687_vm3, %v2758_v62 }
0x224e   :  { %v2814_v20 = vpop.permute.xlu1 %2813 }
0x22cb   :  { %v2779_v22 = vpop.f32.mrf.mxu2 }
0x22cc   :  { %v2780_v48 = vadd.f32 %v4914_v21, %v2779_v22 }
0x22ce   :  { %3537 = vtanh.f32 %v2780_v48 }
0x22d4   :  { %v3538_v4 = vpop.eup %3537 }
0x22d5   :  { %2810 = vrot.lane.b32.xlu2 %v3538_v4, %s3621_s26  ;;  %3375 = vmatmul.msk.f32.vlgmr.msrb.gmra.mxu3 %vm276_vm7, %v3538_v4 }
0x232f   :  { %v2811_v26 = vpop.permute.xlu2 %2810 }
0x2330   :  { %v2816_v49 = vsel %vm111_vm0, %v3377_v50, %v2811_v26 }
0x2331   :  { %v2817_v15 = vsel %vm113_vm1, %v2816_v49, %v2814_v20 }
0x2332   :  { %3378 = vmatmul.msk.f32.vlgmr.msra.gmra.mxu1 %vm5123_vm6, %v2817_v15 }
0x2358   :  { %v2803_v32 = vpop.f32.mrf.mxu3 }
0x2359   :  { %v2804_v2 = vadd.f32 %v4928_v45, %v2803_v32 }
0x235b   :  { %3376 = vst [vmem:[%s5101_s13 + $0x20] sm:$0xff] %v2804_v2 }
0x23af   :  { %v2838_v27 = vpop.f32.mrf.mxu1 }
0x23b0   :  { %v2839_v42 = vadd.f32 %v4745_v5, %v2838_v27 }
0x23b2   :  { %3539 = vtanh.f32 %v2839_v42  ;;  %v3379_v7 = vmul.f32 -1.442695, %v2839_v42 }
0x23b4   :  { %3541 = vpow2.f32 %v3379_v7 }
0x23b8   :  { %v3540_v3 = vpop.eup %3539 }
0x23b9   :  { %2863 = vrot.lane.b32.xlu2 %v3540_v3, %s3623_s22 }
0x23ba   :  { %v3542_v19 = vpop.eup %3541 }
0x23bb   :  { %v2844_v10 = vadd.f32 1.0, %v3542_v19 }
0x23bd   :  { %3543 = vrcp.f32 %v2844_v10  ;;  %v2856_v0 = vand.u32 2147483648, %v2844_v10  ;;  %vm2850_vm1 = vweird.f32 %v2844_v10  ;;  %v2854_v17 = vand.u32 2147483647, %v2844_v10 }
0x23bf   :  { %v2857_v56 = vor.u32 1.1754944e-38, %v2856_v0  ;;  %vm2855_vm4 = vcmp.eq.f32.partialorder %v2854_v17, 8.507059e+37 }
0x23c3   :  { %v3544_v28 = vpop.eup %3543 }
0x23c4   :  { %v2846_v18 = vmul.f32 %v3544_v28, %v2844_v10  ;;  %vm2851_vm0 = vweird.f32 %v3544_v28 }
0x23c5   :  { %vm2852_vm2 = vmor %vm2850_vm1, %vm2851_vm0 }
0x23c6   :  { %v2847_v12 = vsub.f32 1.0, %v2846_v18 }
0x23c8   :  { %v2848_v8 = vmul.f32 %v3544_v28, %v2847_v12 }
0x23ca   :  { %v2849_v55 = vadd.f32 %v3544_v28, %v2848_v8 }
0x23cc   :  { %v2853_v5 = vsel %vm2852_vm2, %v3544_v28, %v2849_v55 }
0x23cd   :  { %v2858_v24 = vsel %vm2855_vm4, %v2857_v56, %v2853_v5 }
0x23ce   :  { %v2861_v44 = vmul.f32 %v2858_v24, %v4751_v39 }
0x2413   :  { %v2864_v40 = vpop.permute.xlu2 %2863 }
0x2414   :  { %v2866_v6 = vmul.f32 %v2864_v40, %v2858_v24 }
0x2416   :  { %2868 = vrot.lane.b32.xlu1 %v2866_v6, %s3624_s25 }
0x2488   :  { %v2869_v53 = vpop.permute.xlu1 %2868 }
0x2489   :  { %v4938_v43 = vadd.f32 %v2869_v53, %v2861_v44 }
0x248b   :  { %3545 = vtanh.f32 %v4938_v43 }
0x2491   :  { %v3546_v16 = vpop.eup %3545 }
0x2492   :  { %2874 = vrot.lane.b32.xlu2 %v3546_v16, %s3623_s22 }
0x24ec   :  { %v2875_v29 = vpop.permute.xlu2 %2874 }
0x24ed   :  { %v4942_v51 = vmul.f32 %v2875_v29, %v2858_v24 }
0x24ef   :  { %v2886_v63 = vperm.slane %v4942_v51, 0  ;;  %v2880_v62 = vrot.slane %v4942_v51, 2  ;;  %v2879_v22 = vrot.slane %v4942_v51, 1  ;;  %v2881_v50 = vrot.slane %v4942_v51, 3 }
0x24f0   :  { %v2883_v49 = vrot.slane %v4942_v51, 5  ;;  %v2882_v15 = vrot.slane %v4942_v51, 4  ;;  %v2884_v42 = vrot.slane %v4942_v51, 6  ;;  %v2885_v3 = vrot.slane %v4942_v51, 7 }
0x24f1   :  { %v2902_v48 = vmul.f32 %v2886_v63, %v3820_v60  ;;  %v2888_v39 = vperm.slane %v2880_v62, 0  ;;  %v2887_v4 = vperm.slane %v2879_v22, 0  ;;  %v2889_v32 = vperm.slane %v2881_v50, 0 }
0x24f2   :  { %v2891_v60 = vperm.slane %v2883_v49, 0  ;;  %v2890_v2 = vperm.slane %v2882_v15, 0  ;;  %v2892_v7 = vperm.slane %v2884_v42, 0  ;;  %v2893_v19 = vperm.slane %v2885_v3, 0 }
0x24f3   :  { %2918 = vrot.lane.b32.xlu0 %v2902_v48, %s3624_s25  ;;  %v2904_v26 = vmul.f32 %v2888_v39, %v3814_v57  ;;  %v2903_v20 = vmul.f32 %v2887_v4, %v3822_v61  ;;  %v2905_v27 = vmul.f32 %v2889_v32, %v3836_v11 }
0x24f4   :  { %v2907_v57 = vmul.f32 %v2891_v60, %v3816_v58  ;;  %v2906_v61 = vmul.f32 %v2890_v2, %v3840_v13  ;;  %v2908_v10 = vmul.f32 %v2892_v7, %v3850_v23  ;;  %v2909_v11 = vmul.f32 %v2893_v19, %v3852_v25 }
0x24f5   :  { %2922 = vrot.lane.b32.xlu2 %v2904_v26, %s3624_s25  ;;  %2920 = vrot.lane.b32.xlu1 %v2903_v20, %s3624_s25 }
0x24fb   :  { %2924 = vrot.lane.b32.xlu0 %v2905_v27, %s3624_s25 }
0x24fd   :  { %2928 = vrot.lane.b32.xlu2 %v2907_v57, %s3624_s25  ;;  %2926 = vrot.lane.b32.xlu1 %v2906_v61, %s3624_s25 }
0x2503   :  { %2930 = vrot.lane.b32.xlu0 %v2908_v10, %s3624_s25 }
0x2505   :  { %2932 = vrot.lane.b32.xlu1 %v2909_v11, %s3624_s25 }
0x254f   :  { %v2923_v28 = vpop.permute.xlu2 %2922 }
0x2550   :  { %v2948_v58 = vsel %vm276_vm7, %v2923_v28, 0.0 }
0x2551   :  { %2949 = vadd.xlane.f32.xlu1 %v2948_v58 }
0x2557   :  { %v2929_v13 = vpop.permute.xlu2 %2928 }
0x2558   :  { %v2957_v18 = vsel %vm276_vm7, %v2929_v13, 0.0 }
0x2559   :  { %2958 = vadd.xlane.f32.xlu1 %v2957_v18 }
0x2565   :  { %v2919_v12 = vpop.permute.xlu0 %2918 }
0x2566   :  { %v2942_v8 = vsel %vm276_vm7, %v2919_v12, 0.0 }
0x2567   :  { %2943 = vadd.xlane.f32.xlu2 %v2942_v8  ;;  %v2921_v55 = vpop.permute.xlu1 %2920 }
0x2568   :  { %v2945_v23 = vsel %vm276_vm7, %v2921_v55, 0.0 }
0x2569   :  { %2946 = vadd.xlane.f32.xlu0 %v2945_v23 }
0x256d   :  { %v2925_v0 = vpop.permute.xlu0 %2924 }
0x256e   :  { %v2951_v25 = vsel %vm276_vm7, %v2925_v0, 0.0 }
0x256f   :  { %2952 = vadd.xlane.f32.xlu2 %v2951_v25  ;;  %v2927_v17 = vpop.permute.xlu1 %2926 }
0x2570   :  { %v2954_v5 = vsel %vm276_vm7, %v2927_v17, 0.0 }
0x2571   :  { %2955 = vadd.xlane.f32.xlu0 %v2954_v5 }
0x2575   :  { %v2931_v56 = vpop.permute.xlu0 %2930 }
0x2576   :  { %v2960_v40 = vsel %vm276_vm7, %v2931_v56, 0.0 }
0x2577   :  { %2961 = vadd.xlane.f32.xlu2 %v2960_v40  ;;  %v2933_v24 = vpop.permute.xlu1 %2932 }
0x2578   :  { %v2963_v6 = vsel %vm276_vm7, %v2933_v24, 0.0 }
0x2579   :  { %2964 = vadd.xlane.f32.xlu0 %v2963_v6 }
0x25c4   :  { %v2950_v44 = vpop.xlane.xlu1 %2949 }
0x25c5   :  { %v2968_v53 = vadd.f32 %v2950_v44, %v3865_v36 }
0x25c7   :  { %v4977_v16 = vmul.f32 0.17677669, %v2968_v53 }
0x25c9   :  { %2997 = vperm.xlu0 %3394, %v4977_v16  }
0x25cc   :  { %v2959_v39 = vpop.xlane.xlu1 %2958 }
0x25cd   :  { %v2971_v50 = vadd.f32 %v2959_v39, %v5119_v34 }
0x25cf   :  { %v4984_v49 = vmul.f32 0.17677669, %v2971_v50 }
0x25da   :  { %v2944_v29 = vpop.xlane.xlu2 %2943 }
0x25db   :  { %v2966_v63 = vadd.f32 %v2944_v29, %v3818_v59 }
0x25dc   :  { %v2947_v62 = vpop.xlane.xlu0 %2946 }
0x25dd   :  { %v2974_v22 = vmul.f32 0.17677669, %v2966_v63  ;;  %v2967_v48 = vadd.f32 %v2947_v62, %v3863_v35 }
0x25df   :  { %v2975_v4 = vmul.f32 0.17677669, %v2967_v48  ;;  %2991 = vperm.xlu1 %3395, %v2974_v22  }
0x25e1   :  { %2994 = vperm.xlu2 %3393, %v2975_v4  }
0x25e2   :  { %v2953_v26 = vpop.xlane.xlu2 %2952 }
0x25e3   :  { %v2969_v36 = vadd.f32 %v2953_v26, %v3867_v37 }
0x25e4   :  { %v2956_v20 = vpop.xlane.xlu0 %2955 }
0x25e5   :  { %v2977_v15 = vmul.f32 0.17677669, %v2969_v36  ;;  %v2970_v32 = vadd.f32 %v2956_v20, %v5118_v52 }
0x25e7   :  { %v2978_v59 = vmul.f32 0.17677669, %v2970_v32  ;;  %3000 = vperm.xlu0 %3394, %v2977_v15   ;;  %3006 = vperm.xlu1 %3395, %v4984_v49  }
0x25e9   :  { %3003 = vperm.xlu2 %3393, %v2978_v59  }
0x25ea   :  { %v2962_v35 = vpop.xlane.xlu2 %2961 }
0x25eb   :  { %v2972_v60 = vadd.f32 %v2962_v35, %v3876_v54 }
0x25ec   :  { %v2965_v2 = vpop.xlane.xlu0 %2964 }
0x25ed   :  { %v2980_v34 = vmul.f32 0.17677669, %v2972_v60  ;;  %v2973_v27 = vadd.f32 %v2965_v2, %v5120_v38 }
0x25ef   :  { %v4990_v42 = vmul.f32 0.17677669, %v2973_v27  ;;  %3009 = vperm.xlu0 %3394, %v2980_v34  }
0x25f1   :  { %3012 = vperm.xlu2 %3393, %v4990_v42  }
0x263b   :  { %v2995_v37 = vpop.permute.xlu2 %2994  ;;  %v2998_v57 = vpop.permute.xlu0 %2997 }
0x263c   :  { %v3015_v7 = vperm.slane %v2995_v37, %v3911_v33  ;;  %v3016_v10 = vperm.slane %v2998_v57, %v3911_v33 }
0x2643   :  { %v3004_v3 = vpop.permute.xlu2 %3003 }
0x2644   :  { %v3018_v58 = vperm.slane %v3004_v3, %v3911_v33 }
0x264b   :  { %v3013_v18 = vpop.permute.xlu2 %3012 }
0x264c   :  { %v3021_v0 = vperm.slane %v3013_v18, %v3911_v33 }
0x2651   :  { %v2992_v52 = vpop.permute.xlu1 %2991 }
0x2652   :  { %v3014_v61 = vperm.slane %v2992_v52, %v3911_v33 }
0x2654   :  { %v3022_v19 = vsel %vm424_vm8, %v3015_v7, %v3014_v61 }
0x2655   :  { %v3023_v11 = vsel %vm426_vm9, %v3016_v10, %v3022_v19 }
0x2659   :  { %v3001_v54 = vpop.permute.xlu0 %3000  ;;  %v3007_v13 = vpop.permute.xlu1 %3006 }
0x265a   :  { %v3017_v38 = vperm.slane %v3001_v54, %v3911_v33  ;;  %v3019_v8 = vperm.slane %v3007_v13, %v3911_v33 }
0x265c   :  { %v3024_v28 = vsel %vm428_vm10, %v3017_v38, %v3023_v11 }
0x265d   :  { %v3025_v12 = vsel %vm430_vm11, %v3018_v58, %v3024_v28 }
0x265e   :  { %v3026_v25 = vsel %vm432_vm12, %v3019_v8, %v3025_v12 }
0x2661   :  { %v3010_v55 = vpop.permute.xlu0 %3009 }
0x2662   :  { %v3020_v23 = vperm.slane %v3010_v55, %v3911_v33 }
0x2664   :  { %v3027_v17 = vsel %vm434_vm13, %v3020_v23, %v3026_v25 }
0x2665   :  { %v3028_v5 = vsel %vm436_vm14, %v3021_v0, %v3027_v17 }
0x2666   :  { %v3030_v56 = vsel %vm439_vm15, %v3028_v5, -inf }
0x2667   :  { %3031 = vmax.xlane.f32.xlu1 %v3030_v56 }
0x26da   :  { %v3032_v40 = vpop.xlane.xlu1 %3031 }
0x26db   :  { %v3034_v24 = vperm.slane %v3032_v40, 0  ;;  %v3035_v6 = vperm.slane %v3032_v40, 1  ;;  %v3036_v44 = vperm.slane %v3032_v40, 2  ;;  %v3037_v63 = vperm.slane %v3032_v40, 3 }
0x26dc   :  { %v3038_v26 = vperm.slane %v3032_v40, 4  ;;  %v3039_v20 = vperm.slane %v3032_v40, 5  ;;  %v3041_v27 = vperm.slane %v3032_v40, 7 }
0x26dd   :  { %v3050_v53 = vsub.f32 %v2974_v22, %v3034_v24  ;;  %v3051_v29 = vsub.f32 %v2975_v4, %v3035_v6  ;;  %v3052_v39 = vsub.f32 %v4977_v16, %v3036_v44  ;;  %v3053_v50 = vsub.f32 %v2977_v15, %v3037_v63 }
0x26de   :  { %v3054_v2 = vsub.f32 %v2978_v59, %v3038_v26  ;;  %v3055_v22 = vsub.f32 %v4984_v49, %v3039_v20  ;;  %v3040_v4 = vperm.slane %v3032_v40, 6  ;;  %v3057_v61 = vsub.f32 %v4990_v42, %v3041_v27 }
0x26df   :  { %v3058_v62 = vmul.f32 1.442695, %v3050_v53  ;;  %v3060_v48 = vmul.f32 1.442695, %v3051_v29  ;;  %v3062_v36 = vmul.f32 1.442695, %v3052_v39 }
0x26e0   :  { %v3064_v32 = vmul.f32 1.442695, %v3053_v50  ;;  %v3066_v16 = vmul.f32 1.442695, %v3054_v2  ;;  %v3068_v15 = vmul.f32 1.442695, %v3055_v22  ;;  %v3056_v52 = vsub.f32 %v2980_v34, %v3040_v4 }
0x26e1   :  { %3547 = vpow2.f32 %v3058_v62  ;;  %v3072_v3 = vmul.f32 1.442695, %v3057_v61 }
0x26e2   :  { %3549 = vpow2.f32 %v3060_v48  ;;  %v3070_v59 = vmul.f32 1.442695, %v3056_v52 }
0x26e3   :  { %3551 = vpow2.f32 %v3062_v36 }
0x26e4   :  { %3553 = vpow2.f32 %v3064_v32 }
0x26e5   :  { %3555 = vpow2.f32 %v3066_v16 }
0x26e6   :  { %3557 = vpow2.f32 %v3068_v15 }
0x26e7   :  { %v5010_v35 = vpop.eup %3547  ;;  %3559 = vpow2.f32 %v3070_v59 }
0x26e8   :  { %v3550_v60 = vpop.eup %3549  ;;  %3083 = vperm.xlu0 %3394, %v5010_v35   ;;  %3561 = vpow2.f32 %v3072_v3 }
0x26e9   :  { %3086 = vperm.xlu2 %3393, %v3550_v60   ;;  %v3552_v37 = vpop.eup %3551 }
0x26ea   :  { %v5014_v57 = vpop.eup %3553 }
0x26eb   :  { %v3556_v7 = vpop.eup %3555 }
0x26ec   :  { %v3558_v49 = vpop.eup %3557 }
0x26ed   :  { %v3560_v19 = vpop.eup %3559 }
0x26ee   :  { %v3562_v54 = vpop.eup %3561 }
0x26f0   :  { %3089 = vperm.xlu0 %3394, %v3552_v37  }
0x26f1   :  { %3092 = vperm.xlu2 %3393, %v5014_v57  }
0x26f8   :  { %3095 = vperm.xlu0 %3394, %v3556_v7  }
0x26f9   :  { %3098 = vperm.xlu2 %3393, %v3558_v49  }
0x2700   :  { %3101 = vperm.xlu0 %3394, %v3560_v19  }
0x2701   :  { %3104 = vperm.xlu2 %3393, %v3562_v54  }
0x2743   :  { %v3087_v10 = vpop.permute.xlu2 %3086 }
0x2744   :  { %v3107_v13 = vperm.slane %v3087_v10, %v3911_v33 }
0x274b   :  { %v3093_v38 = vpop.permute.xlu2 %3092 }
0x274c   :  { %v3109_v23 = vperm.slane %v3093_v38, %v3911_v33 }
0x2753   :  { %v3099_v28 = vpop.permute.xlu2 %3098 }
0x2754   :  { %v3111_v5 = vperm.slane %v3099_v28, %v3911_v33 }
0x275a   :  { %v3084_v34 = vpop.permute.xlu0 %3083 }
0x275b   :  { %v3106_v42 = vperm.slane %v3084_v34, %v3911_v33  ;;  %v3105_v25 = vpop.permute.xlu2 %3104 }
0x275c   :  { %v3113_v24 = vperm.slane %v3105_v25, %v3911_v33 }
0x275d   :  { %v3114_v12 = vsel %vm424_vm8, %v3107_v13, %v3106_v42 }
0x2762   :  { %v3090_v11 = vpop.permute.xlu0 %3089 }
0x2763   :  { %v3108_v58 = vperm.slane %v3090_v11, %v3911_v33 }
0x2765   :  { %v3115_v8 = vsel %vm426_vm9, %v3108_v58, %v3114_v12 }
0x2766   :  { %v3116_v0 = vsel %vm428_vm10, %v3109_v23, %v3115_v8 }
0x276a   :  { %v3096_v18 = vpop.permute.xlu0 %3095 }
0x276b   :  { %v3110_v55 = vperm.slane %v3096_v18, %v3911_v33 }
0x276d   :  { %v3117_v17 = vsel %vm430_vm11, %v3110_v55, %v3116_v0 }
0x276e   :  { %v3118_v6 = vsel %vm432_vm12, %v3111_v5, %v3117_v17 }
0x2772   :  { %v3102_v56 = vpop.permute.xlu0 %3101 }
0x2773   :  { %v3112_v40 = vperm.slane %v3102_v56, %v3911_v33 }
0x2775   :  { %v3119_v44 = vsel %vm434_vm13, %v3112_v40, %v3118_v6 }
0x2776   :  { %v3120_v53 = vsel %vm436_vm14, %v3113_v24, %v3119_v44 }
0x2777   :  { %v3122_v29 = vsel %vm439_vm15, %v3120_v53, 0.0 }
0x2778   :  { %3123 = vadd.xlane.f32.xlu0 %v3122_v29 }
0x278c   :  { %3255 = vrot.lane.b32.xlu0 %v4942_v51, %s3624_s25 }
0x27eb   :  { %v3124_v63 = vpop.xlane.xlu0 %3123 }
0x27ec   :  { %3563 = vrcp.f32 %v3124_v63 }
0x27f2   :  { %v3564_v62 = vpop.eup %3563 }
0x27f3   :  { %v3128_v48 = vperm.slane %v3564_v62, 1  ;;  %v3127_v39 = vperm.slane %v3564_v62, 0  ;;  %v3132_v26 = vperm.slane %v3564_v62, 5  ;;  %v3129_v36 = vperm.slane %v3564_v62, 2 }
0x27f4   :  { %v3134_v51 = vperm.slane %v3564_v62, 7  ;;  %v3131_v4 = vperm.slane %v3564_v62, 4  ;;  %v3133_v27 = vperm.slane %v3564_v62, 6 }
0x27f5   :  { %v3144_v50 = vmul.f32 %v3550_v60, %v3128_v48  ;;  %v3143_v33 = vmul.f32 %v5010_v35, %v3127_v39  ;;  %v3148_v20 = vmul.f32 %v3558_v49, %v3132_v26  ;;  %v3145_v32 = vmul.f32 %v3552_v37, %v3129_v36 }
0x27f6   :  { %v3130_v60 = vperm.slane %v3564_v62, 3  ;;  %v3150_v22 = vmul.f32 %v3562_v54, %v3134_v51  ;;  %v3147_v16 = vmul.f32 %v3556_v7, %v3131_v4  ;;  %v3149_v15 = vmul.f32 %v3560_v19, %v3133_v27 }
0x27f7   :  { %3158 = vperm.xlu1 %3395, %v3144_v50   ;;  %3153 = vperm.xlu2 %3393, %v3143_v33  }
0x27f8   :  { %v3146_v35 = vmul.f32 %v5014_v57, %v3130_v60 }
0x27fe   :  { %v5037_v2 = vpop.permute.xlu0 %3255 }
0x27ff   :  { %3326 = vst.msk [vmem:[%s5102_s14] sm:$0xff] %vm276_vm7, %v5037_v2  ;;  %3178 = vperm.xlu1 %3395, %v3148_v20   ;;  %3163 = vperm.xlu2 %3393, %v3145_v32  }
0x2807   :  { %3188 = vperm.xlu1 %3395, %v3150_v22   ;;  %3168 = vperm.xlu2 %3393, %v3146_v35  }
0x280f   :  { %3328 = vrot.lane.b32.xlu1 %v4938_v43, %s3625_s30  ;;  %3173 = vperm.xlu2 %3393, %v3147_v16  }
0x2817   :  { %3183 = vperm.xlu2 %3393, %v3149_v15  }
0x2851   :  { %v3154_v37 = vpop.permute.xlu2 %3153 }
0x2852   :  { %v3191_v61 = vmul.f32 %v4846_v9, %v3154_v37 }
0x2854   :  { %v3199_v57 = vsel %vm276_vm7, %v3191_v61, 0.0 }
0x2855   :  { %v3200_v54 = vrot.slane %v3199_v57, 4 }
0x2857   :  { %v3201_v34 = vadd.f32 %v3200_v54, %v3199_v57 }
0x2859   :  { %v3164_v52 = vpop.permute.xlu2 %3163 }
0x285a   :  { %v3193_v59 = vmul.f32 %v4852_v47, %v3164_v52 }
0x285c   :  { %v3213_v7 = vsel %vm276_vm7, %v3193_v59, 0.0 }
0x285d   :  { %v3214_v10 = vrot.slane %v3213_v7, 4 }
0x285f   :  { %v3215_v47 = vadd.f32 %v3214_v10, %v3213_v7 }
0x2861   :  { %v3169_v3 = vpop.permute.xlu2 %3168  ;;  %v3216_v55 = vrot.slane %v3215_v47, 2 }
0x2862   :  { %v3194_v49 = vmul.f32 %v4867_v46, %v3169_v3  ;;  %v3202_v46 = vrot.slane %v3201_v34, 2 }
0x2863   :  { %v3217_v24 = vadd.f32 %v3216_v55, %v3215_v47 }
0x2864   :  { %v3220_v43 = vsel %vm276_vm7, %v3194_v49, 0.0  ;;  %v3203_v23 = vadd.f32 %v3202_v46, %v3201_v34 }
0x2865   :  { %v3221_v28 = vrot.slane %v3220_v43, 4  ;;  %v3218_v36 = vrot.slane %v3217_v24, 1 }
0x2866   :  { %v3204_v53 = vrot.slane %v3203_v23, 1 }
0x2867   :  { %v3222_v12 = vadd.f32 %v3221_v28, %v3220_v43  ;;  %v3219_v16 = vadd.f32 %v3218_v36, %v3217_v24 }
0x2869   :  { %v3159_v19 = vpop.permute.xlu1 %3158  ;;  %v3174_v38 = vpop.permute.xlu2 %3173  ;;  %v3223_v56 = vrot.slane %v3222_v12, 2 }
0x286a   :  { %v3192_v11 = vmul.f32 %v4858_v31, %v3159_v19  ;;  %v3195_v9 = vmul.f32 %v4888_v14, %v3174_v38 }
0x286b   :  { %v3224_v39 = vadd.f32 %v3223_v56, %v3222_v12 }
0x286c   :  { %v3206_v42 = vsel %vm276_vm7, %v3192_v11, 0.0  ;;  %v3227_v58 = vsel %vm276_vm7, %v3195_v9, 0.0 }
0x286d   :  { %v3207_v13 = vrot.slane %v3206_v42, 4  ;;  %v3228_v18 = vrot.slane %v3227_v58, 4  ;;  %v3225_v22 = vrot.slane %v3224_v39, 1 }
0x286f   :  { %v3208_v8 = vadd.f32 %v3207_v13, %v3206_v42  ;;  %v3229_v5 = vadd.f32 %v3228_v18, %v3227_v58  ;;  %v3226_v3 = vadd.f32 %v3225_v22, %v3224_v39 }
0x2871   :  { %v3209_v0 = vrot.slane %v3208_v8, 2  ;;  %v3179_v25 = vpop.permute.xlu1 %3178  ;;  %v3184_v17 = vpop.permute.xlu2 %3183  ;;  %v3230_v48 = vrot.slane %v3229_v5, 2 }
0x2872   :  { %v3196_v31 = vmul.f32 %v4873_v30, %v3179_v25  ;;  %v3197_v14 = vmul.f32 %v4895_v41, %v3184_v17  ;;  %v3205_v30 = vadd.f32 %v3204_v53, %v3203_v23 }
0x2873   :  { %v3210_v40 = vadd.f32 %v3209_v0, %v3208_v8  ;;  %v3231_v51 = vadd.f32 %v3230_v48, %v3229_v5 }
0x2874   :  { %v3234_v6 = vsel %vm276_vm7, %v3196_v31, 0.0  ;;  %v3241_v44 = vsel %vm276_vm7, %v3197_v14, 0.0 }
0x2875   :  { %v3211_v29 = vrot.slane %v3210_v40, 1  ;;  %v3235_v63 = vrot.slane %v3234_v6, 4  ;;  %v3242_v62 = vrot.slane %v3241_v44, 4  ;;  %v3232_v59 = vrot.slane %v3231_v51, 1 }
0x2877   :  { %v3212_v50 = vadd.f32 %v3211_v29, %v3210_v40  ;;  %v3236_v33 = vadd.f32 %v3235_v63, %v3234_v6  ;;  %v3243_v26 = vadd.f32 %v3242_v62, %v3241_v44  ;;  %v3233_v43 = vadd.f32 %v3232_v59, %v3231_v51 }
0x2879   :  { %v3237_v20 = vrot.slane %v3236_v33, 2  ;;  %v3244_v41 = vrot.slane %v3243_v26, 2  ;;  %v3189_v32 = vpop.permute.xlu1 %3188  ;;  %v3266_v35 = vsel %vm424_vm8, %v3212_v50, %v3205_v30 }
0x287a   :  { %v3198_v60 = vmul.f32 %v4880_v1, %v3189_v32  ;;  %v3267_v61 = vsel %vm426_vm9, %v3219_v16, %v3266_v35 }
0x287b   :  { %v3238_v4 = vadd.f32 %v3237_v20, %v3236_v33  ;;  %v3245_v27 = vadd.f32 %v3244_v41, %v3243_v26  ;;  %v3268_v1 = vsel %vm428_vm10, %v3226_v3, %v3267_v61 }
0x287c   :  { %v3248_v15 = vsel %vm276_vm7, %v3198_v60, 0.0  ;;  %v3269_v38 = vsel %vm430_vm11, %v3233_v43, %v3268_v1 }
0x287d   :  { %v3239_v37 = vrot.slane %v3238_v4, 1  ;;  %v3249_v52 = vrot.slane %v3248_v15, 4  ;;  %v3246_v49 = vrot.slane %v3245_v27, 1 }
0x287f   :  { %v3250_v57 = vadd.f32 %v3249_v52, %v3248_v15  ;;  %v3240_v54 = vadd.f32 %v3239_v37, %v3238_v4  ;;  %v3247_v19 = vadd.f32 %v3246_v49, %v3245_v27 }
0x2881   :  { %v3251_v7 = vrot.slane %v3250_v57, 2  ;;  %v3329_v10 = vpop.permute.xlu1 %3328  ;;  %v3270_v9 = vsel %vm432_vm12, %v3240_v54, %v3269_v38 }
0x2882   :  { %3331 = vst.msk [vmem:[%s5103_s15] sm:$0xff] %vm276_vm7, %v3329_v10  ;;  %v3271_v47 = vsel %vm434_vm13, %v3247_v19, %v3270_v9 }
0x2883   :  { %v3252_v34 = vadd.f32 %v3251_v7, %v3250_v57 }
0x2885   :  { %v3253_v11 = vrot.slane %v3252_v34, 1 }
0x2887   :  { %v3254_v28 = vadd.f32 %v3253_v11, %v3252_v34 }
0x2889   :  { %v3272_v42 = vsel %vm436_vm14, %v3254_v28, %v3271_v47 }
0x288a   :  { %3273 = vrot.lane.b32.xlu2 %v3272_v42, %s3624_s25 }
0x28e4   :  { %v3274_v58 = vpop.permute.xlu2 %3273 }
0x28e5   :  { %v3276_v46 = vsel %vm276_vm7, %v5037_v2, %v3274_v58 }
0x28e6   :  { %3380 = vmatmul.msk.f32.vlgmr.msra.gmra.mxu3 %vm687_vm3, %v3276_v46 }
0x2969   :  { %v3297_v13 = vpop.f32.mrf.mxu3 }
0x296a   :  { %v3298_v18 = vadd.f32 %v4914_v21, %v3297_v13 }
0x296c   :  { %3565 = vtanh.f32 %v3298_v18 }
0x2972   :  { %v3566_v12 = vpop.eup %3565 }
0x2973   :  { %3332 = vst.msk [vmem:[%s5104_s16] sm:$0xff] %vm276_vm7, %v3566_v12  ;;  %3381 = vmatmul.msk.f32.vlgmr.msrb.gmra.mxu0 %vm276_vm7, %v3566_v12 }
0x29f0   :  { %v3321_v8 = vpop.f32.mrf.mxu0 }
0x29f1   :  { %v3322_v55 = vadd.f32 %v4928_v45, %v3321_v8 }
0x29f3   :  { %3382 = vst [vmem:[%s5101_s13 + $0x28] sm:$0xff] %v3322_v55 }

</bundles_post_ra>
